<compile_context>
chip_gen: v6e
topology: v6e:2x2x1
jax: 0.10.0
libtpu: 0.0.40
codegen_flags: <defaults>
</compile_context>

<pallas_src>
import functools

import jax
import jax.numpy as jnp
from jax.experimental import pallas as pl
from jax.experimental.pallas import tpu as pltpu


# ---------------------------------------------------------------------------
# Small helpers
# ---------------------------------------------------------------------------
_BN_EPS = 1e-5


def _round_up(x: int, m: int) -> int:
    return (x + m - 1) // m * m


def _cdiv(a: int, b: int) -> int:
    return (a + b - 1) // b


def _tile_div(total: int, cap: int, unit: int = 128) -> int:
    """Largest multiple of `unit` that divides `total` and is <= cap."""
    cap = max(cap, unit)
    best = unit
    t = unit
    lim = min(total, cap)
    while t <= lim:
        if total % t == 0:
            best = t
        t += unit
    return best


# Generation-aware VMEM budgets (computed once).
_BUDGETS = None


def _get_budgets():
    global _BUDGETS
    if _BUDGETS is None:
        vmem = 64 * 1024 * 1024  # conservative default (v7x-sized)
        try:
            info = pltpu.get_tpu_info()
            vmem = int(getattr(info, "vmem_capacity_bytes", vmem))
        except Exception:
            pass
        if vmem >= 96 * 1024 * 1024:      # v5e / v6e: 128 MiB physical
            _BUDGETS = dict(a=8 << 20, w=8 << 20, acc=8 << 20, limit=96 << 20)
        else:                             # v7x: 64 MiB per core
            _BUDGETS = dict(a=4 << 20, w=4 << 20, acc=4 << 20, limit=40 << 20)
    return _BUDGETS


def _choose_tiles(M, Kp, Np, bud):
    """Pick (tm, tk, tn) within budgets; guarantee >= 2 parallel grid tiles."""
    tn = _tile_div(Np, 1024)
    tk = _tile_div(Kp, min(bud["w"] // (tn * 2), 4096))
    tm_cap = min(bud["a"] // (tk * 2), bud["acc"] // (tn * 4), 2048)
    tm_cap = max(16, tm_cap // 16 * 16)
    n_m = _cdiv(M, tm_cap)
    tm = _round_up(_cdiv(M, n_m), 16)          # minimize M padding
    # >= 2 parallel tiles: feed both v7x TensorCores / give the pipeline
    # something to overlap.  Prefer splitting N when M is a single tile.
    if n_m * (Np // tn) < 2:
        if Np >= 256:
            tn = _tile_div(Np, Np // 2)
        elif M >= 32:
            n_m = 2
            tm = _round_up(_cdiv(M, 2), 16)
    Mp = tm * n_m
    return tm, tk, tn, Mp, n_m


# ---------------------------------------------------------------------------
# Fused (bf16 matmul + bias + activation) Pallas kernels
#   (BatchNorm scale is folded into the weights at init time.)
# ---------------------------------------------------------------------------
def _epilogue(y, b, activation):
    y = y + b
    if activation == "leaky_relu":
        return jnp.where(y > 0, y, 0.2 * y)
    if activation == "relu":
        return jnp.maximum(y, 0.0)
    if activation == "tanh":
        return jnp.tanh(y)
    return y


def _mm_kernel_single(a_ref, w_ref, b_ref, o_ref, *, activation):
    # Single K step: no scratch accumulator at all.
    y = jnp.dot(a_ref[...], w_ref[...], preferred_element_type=jnp.float32)
    o_ref[...] = _epilogue(y, b_ref[...], activation).astype(o_ref.dtype)


def _mm_kernel_acc(a_ref, w_ref, b_ref, o_ref, acc_ref, *, activation):
    k = pl.program_id(2)
    y = jnp.dot(a_ref[...], w_ref[...], preferred_element_type=jnp.float32)

    @pl.when(k == 0)
    def _():
        acc_ref[...] = y          # no zero-fill + add at the first step

    @pl.when(k > 0)
    def _():
        acc_ref[...] += y

    @pl.when(k == pl.num_programs(2) - 1)
    def _():
        o_ref[...] = _epilogue(acc_ref[...], b_ref[...],
                               activation).astype(o_ref.dtype)


def fused_matmul(a, w_p, b_p, n_true, activation):
    """out = act(a @ w_p + b_p)[:, :n_true].

    a:   (M, K) bf16, K already a multiple of 128 (no runtime K padding).
    w_p: (K, Np) bf16, pre-padded, BN scale pre-folded (done once at init).
    b_p: (1, Np) f32 bias.
    """
    a = a.astype(jnp.bfloat16)
    M, K = a.shape
    Kp, Np = w_p.shape
    assert K == Kp, (K, Kp)

    bud = _get_budgets()
    tm, tk, tn, Mp, n_m = _choose_tiles(M, Kp, Np, bud)
    if Mp != M:
        # TODO(synk): avoid this HBM round trip by letting the grid handle a
        #             partial final M tile (implicit-GEMM follow-up).
        a = jnp.pad(a, ((0, Mp - M), (0, 0)))

    nk = Kp // tk
    grid = (n_m, Np // tn, nk)

    if nk == 1:
        kernel = functools.partial(_mm_kernel_single, activation=activation)
        scratch = []
    else:
        kernel = functools.partial(_mm_kernel_acc, activation=activation)
        scratch = [pltpu.VMEM((tm, tn), jnp.float32)]

    out = pl.pallas_call(
        kernel,
        out_shape=jax.ShapeDtypeStruct((Mp, Np), jnp.bfloat16),
        grid_spec=pltpu.PrefetchScalarGridSpec(
            num_scalar_prefetch=0,
            grid=grid,
            in_specs=[
                pl.BlockSpec((tm, tk), lambda i, j, k: (i, k)),
                pl.BlockSpec((tk, tn), lambda i, j, k: (k, j)),
                pl.BlockSpec((1, tn), lambda i, j, k: (0, j)),
            ],
            out_specs=pl.BlockSpec((tm, tn), lambda i, j, k: (i, j)),
            scratch_shapes=scratch,
        ),
        compiler_params=pltpu.CompilerParams(
            dimension_semantics=("parallel", "parallel", "arbitrary"),
            vmem_limit_bytes=bud["limit"],
        ),
    )(a, w_p, b_p)

    if Mp != M or Np != n_true:
        out = out[:M, :n_true]
    return out


# ---------------------------------------------------------------------------
# Conv glue (pure slicing/reshape; the hot path is the Pallas matmul)
# ---------------------------------------------------------------------------
def _im2col(x, k, stride):
    """x: (N, Hp, Wp, C) already padded -> ((N*Ho*Wo, k*k*C), (N, Ho, Wo))."""
    n, hp, wp, c = x.shape
    ho = (hp - k) // stride + 1
    wo = (wp - k) // stride + 1
    cols = []
    for i in range(k):
        for j in range(k):
            cols.append(x[:, i:i + ho * stride:stride,
                          j:j + wo * stride:stride, :])
    patches = jnp.stack(cols, axis=3)                 # (N, Ho, Wo, k*k, C)
    # TODO(synk): implicit-GEMM fusion of this patch extraction into the
    #             kernel would remove a full HBM write+read of A per layer.
    return patches.reshape(n * ho * wo, k * k * c), (n, ho, wo)


def conv2d_fused(x, layer, stride, pad_mode, activation):
    """Conv2d(k=4, stride, pad=1) + folded BN + bias + activation. x NHWC."""
    mode = "reflect" if pad_mode == "reflect" else "constant"
    xp = jnp.pad(x, ((0, 0), (1, 1), (1, 1), (0, 0)), mode=mode)
    a, (n, ho, wo) = _im2col(xp, 4, stride)
    out = fused_matmul(a, layer["w"], layer["b"], layer["nmat"], activation)
    return out.reshape(n, ho, wo, layer["cout"])


def conv_transpose2d_fused(x, layer, activation):
    """ConvTranspose2d(k=4, stride=2, pad=1) via the 4-phase (sub-pixel)
    decomposition: one (h+1)(w+1) x (4*Cin) patch matrix of 2x2 windows of the
    zero-padded input times a pre-built (4*Cin, 4*Cout) weight matrix yields
    all four output phases (skips the 75% structural zeros of
    dilate-and-convolve).  x NHWC."""
    n, h, w, cin = x.shape
    cout = layer["cout"]
    xp = jnp.pad(x, ((0, 0), (1, 1), (1, 1), (0, 0)))
    a, (_, ho, wo) = _im2col(xp, 2, 1)                # ho = h+1, wo = w+1
    y = fused_matmul(a, layer["w"], layer["b"], layer["nmat"], activation)
    y = y.reshape(n, ho, wo, 2, 2, cout)              # (n, h+1, w+1, r, s, co)
    # Interleave the four phases: out[2i+r, 2j+s] = y[i+r, j+s, r, s].
    # TODO(synk): fuse this de-interleave (and the skip concat) into the next
    #             layer's patch gather to drop 2-3 HBM round trips per layer.
    rows = jnp.stack([y[:, :h, :, 0], y[:, 1:, :, 1]], axis=2)
    rows = rows.reshape(n, 2 * h, wo, 2, cout)
    cols = jnp.stack([rows[:, :, :w, 0], rows[:, :, 1:, 1]], axis=3)
    return cols.reshape(n, 2 * h, 2 * w, cout)


# ---------------------------------------------------------------------------
# Parameters: synthetic init in PyTorch layouts, converted ONCE to the
# matmul-ready (BN-folded, bf16, 128-padded) form -- hoisted off the hot path.
# ---------------------------------------------------------------------------
def _prep_conv(w, scale, bias, cin_pad=None):
    """w: (Cout, Cin, 4, 4) PyTorch Conv2d layout -> matmul-ready dict."""
    cout, cin = int(w.shape[0]), int(w.shape[1])
    if cin_pad is not None and cin_pad > cin:
        w = jnp.pad(w, ((0, 0), (0, cin_pad - cin), (0, 0), (0, 0)))
        cin = cin_pad
    kp = 16 * cin
    assert kp % 128 == 0
    w_mat = jnp.transpose(w, (2, 3, 1, 0)).reshape(kp, cout)   # (kh,kw,Cin,Cout)
    w_mat = w_mat * scale[None, :].astype(jnp.float32)          # fold BN scale
    np_ = _round_up(cout, 128)
    w_mat = jnp.pad(w_mat, ((0, 0), (0, np_ - cout))).astype(jnp.bfloat16)
    b = jnp.pad(bias.astype(jnp.float32), (0, np_ - cout)).reshape(1, np_)
    return dict(w=w_mat, b=b, nmat=cout, cout=cout)


def _prep_convt(w_t, scale, bias):
    """w_t: (Cin, Cout, 4, 4) PyTorch ConvTranspose2d layout -> 4-phase
    (4*Cin, 4*Cout) matmul weight with BN scale folded in."""
    cin, cout = int(w_t.shape[0]), int(w_t.shape[1])
    kp = 4 * cin
    assert kp % 128 == 0
    wk = w_t[:, :, ::-1, ::-1].reshape(cin, cout, 2, 2, 2, 2)
    w_mat = jnp.transpose(wk, (2, 4, 0, 3, 5, 1)).reshape(kp, 4 * cout)
    scale4 = jnp.tile(scale.astype(jnp.float32), 4)
    bias4 = jnp.tile(bias.astype(jnp.float32), 4)
    w_mat = w_mat * scale4[None, :]                              # fold BN scale
    nmat = 4 * cout
    np_ = _round_up(nmat, 128)
    w_mat = jnp.pad(w_mat, ((0, 0), (0, np_ - nmat))).astype(jnp.bfloat16)
    b = jnp.pad(bias4, (0, np_ - nmat)).reshape(1, np_)
    return dict(w=w_mat, b=b, nmat=nmat, cout=cout)


def init_generator_params(key, in_channels=3):
    def nxt():
        nonlocal key
        key, sub = jax.random.split(key)
        return sub

    def conv_w(cout, cin):
        return jax.random.normal(nxt(), (cout, cin, 4, 4), jnp.float32) * 0.05

    def convt_w(cin, cout):
        return jax.random.normal(nxt(), (cin, cout, 4, 4), jnp.float32) * 0.05

    def bn_scale(c):
        # eval-mode BN, fresh running stats: gamma/sqrt(var+eps) = 1/sqrt(1+eps)
        return jnp.full((c,), 1.0 / jnp.sqrt(1.0 + _BN_EPS), jnp.float32)

    cin_pad = _round_up(in_channels, 8)
    p = {}

    down_cfg = [("down1", in_channels, 64, False), ("down2", 64, 128, True),
                ("down3", 128, 256, True), ("down4", 256, 512, True),
                ("down5", 512, 512, True), ("down6", 512, 512, True),
                ("down7", 512, 512, True)]
    for name, cin, cout, use_norm in down_cfg:
        scale = bn_scale(cout) if use_norm else jnp.ones((cout,), jnp.float32)
        shift = jnp.zeros((cout,), jnp.float32)   # BN beta = 0, conv bias=False
        p[name] = _prep_conv(conv_w(cout, cin), scale, shift,
                             cin_pad=cin_pad if name == "down1" else None)

    # bottleneck: Conv2d(512, 512, 4, 2, 1) with bias (zero padding), ReLU
    p["bottleneck"] = _prep_conv(
        conv_w(512, 512), jnp.ones((512,), jnp.float32),
        jax.random.normal(nxt(), (512,), jnp.float32) * 0.05)

    up_cfg = [("up1", 512, 512), ("up2", 1024, 512), ("up3", 1024, 512),
              ("up4", 1024, 512), ("up5", 1024, 256), ("up6", 512, 128),
              ("up7", 256, 64)]
    for name, cin, cout in up_cfg:
        p[name] = _prep_convt(convt_w(cin, cout), bn_scale(cout),
                              jnp.zeros((cout,), jnp.float32))

    # up8: ConvTranspose2d(128, in_channels) with bias, Tanh
    p["up8"] = _prep_convt(
        convt_w(128, in_channels), jnp.ones((in_channels,), jnp.float32),
        jax.random.normal(nxt(), (in_channels,), jnp.float32) * 0.05)
    return p


# ---------------------------------------------------------------------------
# Generator forward (eval mode)
# ---------------------------------------------------------------------------
def generator_forward(params, x_nchw):
    n, c, h, w = x_nchw.shape
    x = jnp.transpose(x_nchw, (0, 2, 3, 1)).astype(jnp.bfloat16)   # -> NHWC
    cpad = _round_up(c, 8)
    if cpad != c:   # pad channels once so down1's K is already a 128-multiple
        x = jnp.pad(x, ((0, 0), (0, 0), (0, 0), (0, cpad - c)))

    down = lambda name, t: conv2d_fused(t, params[name], 2, "reflect",
                                        "leaky_relu")
    up = lambda name, t, act="relu": conv_transpose2d_fused(t, params[name], act)
    cat = lambda a, b: jnp.concatenate([a, b], axis=-1)

    d1 = down("down1", x)
    d2 = down("down2", d1)
    d3 = down("down3", d2)
    d4 = down("down4", d3)
    d5 = down("down5", d4)
    d6 = down("down6", d5)
    d7 = down("down7", d6)

    bt = conv2d_fused(d7, params["bottleneck"], 2, "zero", "relu")

    u1 = up("up1", bt)                      # Dropout(0.5) is identity in eval
    u2 = up("up2", cat(u1, d7))
    u3 = up("up3", cat(u2, d6))
    u4 = up("up4", cat(u3, d5))
    u5 = up("up5", cat(u4, d4))
    u6 = up("up6", cat(u5, d3))
    u7 = up("up7", cat(u6, d2))
    u8 = up("up8", cat(u7, d1), "tanh")

    return jnp.transpose(u8, (0, 3, 1, 2)).astype(jnp.float32)     # -> NCHW f32


# ---------------------------------------------------------------------------
if __name__ == "__main__":
    key = jax.random.PRNGKey(0)
    pkey, xkey = jax.random.split(key)

    in_channels = 3
    # The architecture has 8 stride-2 stages, so the minimal valid spatial
    # size is 256 (anything smaller collapses to 0 at the bottleneck).
    x = jax.random.normal(xkey, (1, in_channels, 256, 256), jnp.float32)

    params = init_generator_params(pkey, in_channels)
    out = generator_forward(params, x)
    out = jax.block_until_ready(out)

    assert out.shape == (1, in_channels, 256, 256), out.shape
    assert bool(jnp.all(jnp.isfinite(out)))
    print("KERNEL_OK")
</pallas_src>

<mosaic_0001>
module attributes {stable_mosaic.version = 11 : i64} {
  func.func @_mm_kernel_single(%arg0: i32, %arg1: i32, %arg2: i32, %arg3: memref<2048x128xbf16, #tpu.memory_space<vmem>>, %arg4: memref<128x128xbf16, #tpu.memory_space<vmem>>, %arg5: memref<1x128xf32, #tpu.memory_space<vmem>>, %arg6: memref<2048x128xbf16, #tpu.memory_space<vmem>>) attributes {dimension_semantics = [#tpu.dimension_semantics<parallel>, #tpu.dimension_semantics<parallel>, #tpu.dimension_semantics<arbitrary>], iteration_bounds = array<i64: 8, 1, 1>, scalar_prefetch = 0 : i64, scratch_operands = 0 : i64, tpu.core_type = #tpu.core_type<tc>, window_params = [{transform_indices = @transform_0, window_bounds = array<i64: 2048, 128>}, {transform_indices = @transform_1, window_bounds = array<i64: 128, 128>}, {transform_indices = @transform_2, window_bounds = array<i64: 1, 128>}, {transform_indices = @transform_3, window_bounds = array<i64: 2048, 128>}]} {
    %c0 = arith.constant 0 : index
    %c0_0 = arith.constant 0 : index
    %0 = vector.load %arg3[%c0, %c0_0] : memref<2048x128xbf16, #tpu.memory_space<vmem>>, vector<2048x128xbf16>
    %c0_1 = arith.constant 0 : index
    %c0_2 = arith.constant 0 : index
    %1 = vector.load %arg4[%c0_1, %c0_2] : memref<128x128xbf16, #tpu.memory_space<vmem>>, vector<128x128xbf16>
    %cst = arith.constant dense<0.000000e+00> : vector<2048x128xf32>
    %2 = tpu.matmul %0, %1, %cst {dimension_numbers = #tpu.dot_dimension_numbers<[1], [0], [0], [1], [0, 0, 1, 1], [], []>} : vector<2048x128xbf16>, vector<128x128xbf16>, vector<2048x128xf32> -> vector<2048x128xf32>
    %c0_3 = arith.constant 0 : index
    %c0_4 = arith.constant 0 : index
    %3 = vector.load %arg5[%c0_3, %c0_4] : memref<1x128xf32, #tpu.memory_space<vmem>>, vector<1x128xf32>
    %4 = vector.broadcast %3 : vector<1x128xf32> to vector<2048x128xf32>
    %5 = arith.addf %2, %4 : vector<2048x128xf32>
    %cst_5 = arith.constant 0.000000e+00 : f32
    %6 = vector.broadcast %cst_5 : f32 to vector<2048x128xf32>
    %7 = arith.cmpf ogt, %5, %6 : vector<2048x128xf32>
    %cst_6 = arith.constant 2.000000e-01 : f32
    %8 = vector.broadcast %cst_6 : f32 to vector<2048x128xf32>
    %9 = arith.mulf %8, %5 : vector<2048x128xf32>
    %10 = arith.select %7, %5, %9 : vector<2048x128xi1>, vector<2048x128xf32>
    %11 = arith.truncf %10 : vector<2048x128xf32> to vector<2048x128xbf16>
    %c0_7 = arith.constant 0 : index
    %c0_8 = arith.constant 0 : index
    %12 = vector.load %arg6[%c0_7, %c0_8] : memref<2048x128xbf16, #tpu.memory_space<vmem>>, vector<2048x128xbf16>
    tpu.vector_store %arg6[%c0_7, %c0_8], %11 {strides = array<i32>} : memref<2048x128xbf16, #tpu.memory_space<vmem>>, vector<2048x128xbf16>,
    return
  }
  func.func @transform_0(%arg0: i32, %arg1: i32, %arg2: i32) -> (i32, i32) {
    %c0_i32 = arith.constant 0 : i32
    return %arg0, %arg2 : i32, i32
  }
  func.func @transform_1(%arg0: i32, %arg1: i32, %arg2: i32) -> (i32, i32) {
    %c0_i32 = arith.constant 0 : i32
    return %arg2, %arg1 : i32, i32
  }
  func.func @transform_2(%arg0: i32, %arg1: i32, %arg2: i32) -> (i32, i32) {
    %c0_i32 = arith.constant 0 : i32
    %c0_i32_0 = arith.constant 0 : i32
    return %c0_i32, %arg1 : i32, i32
  }
  func.func @transform_3(%arg0: i32, %arg1: i32, %arg2: i32) -> (i32, i32) {
    %c0_i32 = arith.constant 0 : i32
    return %arg0, %arg1 : i32, i32
  }
}

</mosaic_0001>

<bundles_post_ra>
// kernel: tpu_custom_call.1
= control target key start
LH: loop header
LB: loop body
LE: loop exit
PB: predicated region body
PF: predicated region fallthrough
CT: control target
= control target key end

     0   :  { %8 = vsyncpa [#allocation3], 0  ;;  %s8074_s0 = inlined_call_operand.hbm [shape: bf16[16384,128], index: 0, kind: input, shape index: {}]   ;;  %s8075_s1 = inlined_call_operand.hbm [shape: bf16[128,128], index: 1, kind: input, shape index: {}]   ;;  %s8076_s2 = inlined_call_operand.hbm [shape: f32[1,128], index: 2, kind: input, shape index: {}]   ;;  %s8077_s3 = inlined_call_operand.hbm [shape: bf16[16384,128], index: 3, kind: output, shape index: {}]  }
   0x1   :  { %10 = vsyncpa [#allocation3 + $0x1], 0 }
   0x2   :  { %11 = vsyncpa [#allocation6], 0 }
   0x3   :  { %12 = vsyncpa [#allocation4], 0 }
   0x4   :  { %14 = vsyncpa [#allocation4 + $0x1], 0  ;;  %s6871_s12 = smov 0   ;;  %s6873_s13 = smov 0  }
   0x5   :  { %s6875_s14 = smov 0   ;;  %s6877_s15 = smov 0  }
   0x6   :  { %s6879_s16 = smov 0   ;;  %s6881_s17 = smov 0  }
   0x7 LB: > { %s4590_s18 = sadd.s32 4294967295, %s6841_s17   ;;  %s4591_s19 = sadd.s32 4294967294, %s6841_s17   ;;  %s6841_s17 = sphi %s6881_s17, %s20_s17   ;;  %s6837_s16 = sphi %s6879_s16, %s8093_s16   ;;  %s6833_s15 = sphi %s6877_s15, %s8092_s15   ;;  %s6829_s14 = sphi %s6875_s14, %s8091_s14   ;;  %s6825_s13 = sphi %s6873_s13, %s8090_s13   ;;  %s6821_s12 = sphi %s6871_s12, %s8089_s12  }
   0x8   : > { %p61_p0 = scmp.ne.s32.totalorder %s6825_s13, %s6821_s12  ;;  %p6905_p1 = scmp.eq.s32.totalorder %s4590_s18, 0 }
   0x9   : > { %p6909_p2 = scmp.eq.s32.totalorder %s4590_s18, 7  ;;  %p147_p3 = scmp.eq.s32.totalorder %s4591_s19, 7 }
   0xa   : > { %p6915_p4 = por %p6905_p1, %p61_p0  ;;  %p4592_p5 = scmp.ge.s32.totalorder %s6841_s17, 1 }
   0xb   : > { %p6920_p6 = por %p147_p3, %p61_p0  ;;  %p154_p7 = scmp.lt.s32.totalorder %s6841_s17, 9 }
   0xc   : > { %s6843_s25 = smov [#allocation5]   ;;  %s6844_s28 = smov [#allocation7]  }
   0xd   : > { %s8082_s23 = scalar_select %p6920_p6, 1, 0 }
   0xe   : > { %p6925_p8 = pnand %p4592_p5, %p154_p7  ;;  %s170_s26 = sshll.u32 %s6843_s25, 4  ;;  %s171_s26 = int_to_ptr.vmem [resolvable:$true] %s170_s26 }
   0xf   : > { %s186_s29 = sshll.u32 %s6844_s28, 4  ;;  %s6688_s30 = scalar_lea.vmem %s171_s26, 1024  ;;  %s187_s29 = int_to_ptr.vmem [resolvable:$true] %s186_s29 }
  0x10   : > { %p6463_p9 = pneg %p6925_p8  ;;  %p6689_p12 = scmp.ne.s32.totalorder %s171_s26, %s6688_s30 }
  0x11   : > { %p6696_p3 = scmp.lt.s32.totalorder %s171_s26, %s171_s26  ;;  %p6697_p5 = scmp.lt.s32.totalorder %s6688_s30, %s6688_s30 }
  0x12   : > { %p6933_p10 = pnand %p6463_p9, %p6905_p1 }
  0x13   : > { %p6698_p7 = por %p6697_p5, %p6696_p3 }
  0x14   : > { %p6679_p11 = pneg %p6933_p10 }
  0x16   : > { %p6691_p13 = pnand %p6689_p12, %p6679_p11 }
  0x18   : > { %p6692_p0 = pneg %p6691_p13 }
  0x1a   : > { %p6699_p9 = pnand %p6698_p7, %p6692_p0 }
  0x1c   : > { %6702 = shalt.err (!%p6699_p9)
}
  0x1d   : > { %s8078_s4 = smov 64   ;;  %s6846_s5 = smov 4  }
  0x1e   : > { %6466 = dma.hbm_to_vmem [thread:$0]  (!%p6933_p10), %s8075_s1, 1024, %s171_s26, [#allocation6], %s8078_s4, %s8078_s4, %s6846_s5  }
  0x1f   : > { %s6714_s8 = scalar_lea.vmem %s187_s29, 16  ;;  %s6721_s9 = scalar_lea.vmem %s187_s29, 32 }
  0x20   : > { %p6715_p12 = scmp.ne.s32.totalorder %s187_s29, %s6714_s8  ;;  %p6722_p0 = scmp.lt.s32.totalorder %s187_s29, %s187_s29 }
  0x21   : > { %p6723_p5 = scmp.lt.s32.totalorder %s6721_s9, %s6714_s8 }
  0x22   : > { %p6717_p13 = pnand %p6715_p12, %p6679_p11 }
  0x23   : > { %p6724_p7 = por %p6723_p5, %p6722_p0 }
  0x24   : > { %p6718_p3 = pneg %p6717_p13 }
  0x26   : > { %p6725_p9 = pnand %p6724_p7, %p6718_p3 }
  0x28   : > { %6728 = shalt.err (!%p6725_p9)
}
  0x29   : > { %6469 = dma.hbm_to_vmem [thread:$0]  (!%p6933_p10), %s8076_s2, 16, %s187_s29, [#allocation6]  }
  0x2a   : > { %s39_s18 = sadd.s32 1, %s6837_s16  ;;  %s48_s19 = sadd.s32 1, %s6829_s14 }
  0x2b   : > { %p41_p11 = scmp.ge.s32.totalorder %s39_s18, 8  ;;  %p55_p12 = scmp.ne.s32.totalorder %s6829_s14, %s6825_s13 }
  0x2c   : > { %p56_p13 = scmp.eq.s32.totalorder %s6841_s17, 0  ;;  %p6480_p3 = scmp.lt.s32.totalorder %s6841_s17, 8 }
  0x2d   : > { %s8095_s18 = smov (%p41_p11, %s39_s18), 0  ;;  %p6968_p5 = por %p6909_p2, %p55_p12 }
  0x2e   : > { %p57_p0 = por %p56_p13, %p55_p12  ;;  %s43_s26 = ssub.s32 %s6837_s16, %s8095_s18 }
  0x2f   : > { %s197_s27 = sand.u32 1, %s6829_s14   ;;  %p46_p7 = scmp.eq.s32.totalorder %s43_s26, 0 }
  0x30   : > { %s4596_s28 = sshll.u32 %s197_s27, 10  ;;  %s5002_s29 = sshll.u32 %s6837_s16, 14 }
  0x31   : > { %s6977_s30 = scalar_select %p46_p7, %s6829_s14, %s48_s19  }
  0x32   : > { %s208_s8 = scalar_lea.hbm %s8074_s0, %s5002_s29  ;;  %s201_s9 = scalar_lea.vmem [#allocation2], %s4596_s28 }
  0x33   : > { %s209_s10 = sshll.u32 %s201_s9, 4  ;;  %p6984_p10 = pnand %p6480_p3, %p57_p0  ;;  %s210_s10 = int_to_ptr.vmem [resolvable:$true] %s209_s10 }
  0x34   : > { %s198_s11 = scalar_lea.sflag [#allocation3], %s197_s27  ;;  %s6742_s26 = scalar_lea.vmem %s210_s10, 16384 }
  0x35   : > { %p6731_p2 = pneg %p6984_p10  ;;  %p6743_p9 = scmp.ne.s32.totalorder %s210_s10, %s6742_s26 }
  0x36   : > { %s6847_s19 = smov [#allocation2]  }
  0x37   : > { %p6745_p11 = pnand %p6743_p9, %p6731_p2  ;;  %s6747_s4 = sshll.u32 %s6847_s19, 4  ;;  %s6748_s4 = int_to_ptr.vmem [resolvable:$false] %s6747_s4 }
  0x38   : > { %s6749_s29 = scalar_lea.vmem %s6748_s4, 32768  ;;  %p6750_p13 = scmp.lt.s32.totalorder %s210_s10, %s6748_s4 }
  0x39   : > { %p6746_p12 = pneg %p6745_p11  ;;  %p6751_p7 = scmp.lt.s32.totalorder %s6749_s29, %s6742_s26 }
  0x3b   : > { %p6752_p6 = por %p6751_p7, %p6750_p13 }
  0x3d   : > { %p6753_p3 = pnand %p6752_p6, %p6746_p12 }
  0x3f   : > { %6756 = shalt.err (!%p6753_p3)
}
  0x40   : > { %s8087_s28 = smov 64   ;;  %221 = sbr.rel (%p6925_p8) target bundleno = 606 (0x25e), region = 32 }
  0x41   : > { %6473 = dma.hbm_to_vmem [thread:$0]  (!%p6984_p10), %s208_s8, 16384, %s210_s10, %s198_s11, %s8087_s28, %s8087_s28, %s6846_s5  }
  0x42   : > { %s6998_s27 = sand.u32 (!%p6925_p8), 1, %s6825_s13  }
  0x43   : > { %s4600_s4 = sshll.u32 (!%p6925_p8), %s6998_s27, 10  ;;  %s224_s6 = scalar_lea.sflag (!%p6925_p8), [#allocation3], %s6998_s27 }
  0x44   : > { %s7004_s7 = scalar_lea.vmem (!%p6925_p8), [#allocation2], %s4600_s4 }
  0x45   : > { %6808 = dma.done.wait (%p6915_p4), %s224_s6, 16384  }
  0x46   : > { %6810 = vsyncadd (%p6915_p4), %s224_s6, 4294950912 }
  0x47   : > { %6812 = dma.done.wait (%p6905_p1), [#allocation6], 1040  }
  0x48   : > { %6814 = vsyncadd (%p6905_p1), [#allocation6], 4294966256  ;;  %v6538_v0 = vld [vmem:[#allocation5 + $0x38] sm:$0xff]   ;;  %v6539_v1 = vld [vmem:[#allocation5 + $0x30] sm:$0xff]   ;;  %s7135_s20 = scalar_lea.vmem [#allocation8], %s4600_s4  ;;  %s5259_s22 = sshll.u32 %s6833_s15, 14 }
  0x49   : > { %6163 = vmatprep.subr.bf16.mxu0 %v6538_v0  ;;  %6435 = vmatprep.subr.bf16.mxu1 %v6538_v0  ;;  %v6540_v2 = vld [vmem:[#allocation5 + $0x28] sm:$0xff]   ;;  %v6541_v3 = vld [vmem:[#allocation5 + $0x20] sm:$0xff]   ;;  %v6542_v6 = vld [vmem:[#allocation5 + $0x18] sm:$0xff]   ;;  %s4477_s24 = sshll.u32 %s7135_s20, 4  ;;  %s8023_s9 = scalar_lea.hbm %s8077_s3, %s5259_s22  ;;  %s8025_s24 = int_to_ptr.vmem [resolvable:$true] %s4477_s24 }
  0x4a   : > { %6164 = vmatpush3.bf16.msra.mxu0 %v6538_v0  ;;  %6443 = vmatpush3.bf16.msra.mxu1 %v6538_v0  ;;  %v6546_v4 = vld [vmem:[%s7004_s7] sm:$0xff]   ;;  %v6543_v7 = vld [vmem:[#allocation5 + $0x10] sm:$0xff]   ;;  %v6544_v8 = vld [vmem:[#allocation5 + $0x8] sm:$0xff]   ;;  %s4463_s15 = scalar_lea.sflag [#allocation4], %s6998_s27  ;;  %s6757_s10 = scalar_lea.vmem %s8025_s24, 16384 }
  0x4b   : > { %6165 = vmatprep.subr.bf16.mxu0 %v6539_v1  ;;  %6436 = vmatprep.subr.bf16.mxu1 %v6539_v1  ;;  %v6547_v5 = vld [vmem:[%s7004_s7 + $0x200] sm:$0xff]   ;;  %v6548_v10 = vld [vmem:[%s7004_s7 + $0x8] sm:$0xff]   ;;  %v6550_v12 = vld [vmem:[%s7004_s7 + $0x10] sm:$0xff]   ;;  %p6758_p1 = scmp.ne.s32.totalorder %s8025_s24, %s6757_s10  ;;  %s6848_s21 = smov [#allocation8]  }
  0x4c   : > { %6179 = vmatprep.mubr.bf16.mxu0 %v6546_v4  ;;  %6307 = vmatprep.mubr.bf16.mxu1 %v6547_v5  ;;  %v6545_v9 = vld [vmem:[#allocation5] sm:$0xff]   ;;  %v6549_v11 = vld [vmem:[%s7004_s7 + $0x208] sm:$0xff]   ;;  %v6551_v13 = vld [vmem:[%s7004_s7 + $0x210] sm:$0xff]   ;;  %s6761_s11 = sshll.u32 %s6848_s21, 4  ;;  %s6762_s11 = int_to_ptr.vmem [resolvable:$false] %s6761_s11 }
  0x4d   : > { %v6552_v14 = vld [vmem:[%s7004_s7 + $0x18] sm:$0xff]   ;;  %v6554_v16 = vld [vmem:[%s7004_s7 + $0x20] sm:$0xff]   ;;  %v6556_v18 = vld [vmem:[%s7004_s7 + $0x28] sm:$0xff]   ;;  %p6759_p4 = pnand %p6758_p1, %p6968_p5  ;;  %s6763_s26 = scalar_lea.vmem %s6762_s11, 32768 }
  0x4e   : > { %6166 = vmatpush3.bf16.msra.mxu0 %v6539_v1  ;;  %6444 = vmatpush3.bf16.msra.mxu1 %v6539_v1  ;;  %v6553_v15 = vld [vmem:[%s7004_s7 + $0x218] sm:$0xff]   ;;  %v6555_v17 = vld [vmem:[%s7004_s7 + $0x220] sm:$0xff]   ;;  %v6557_v19 = vld [vmem:[%s7004_s7 + $0x228] sm:$0xff]   ;;  %p6764_p8 = scmp.lt.s32.totalorder %s8025_s24, %s6762_s11  ;;  %p6765_p0 = scmp.lt.s32.totalorder %s6763_s26, %s6757_s10 }
  0x4f   : > { %6167 = vmatprep.subr.bf16.mxu0 %v6540_v2  ;;  %6437 = vmatprep.subr.bf16.mxu1 %v6540_v2  ;;  %v6558_v20 = vld [vmem:[%s7004_s7 + $0x30] sm:$0xff]   ;;  %v6560_v22 = vld [vmem:[%s7004_s7 + $0x38] sm:$0xff]   ;;  %v6562_v24 = vld [vmem:[%s7004_s7 + $0x40] sm:$0xff]   ;;  %p6760_p6 = pneg %p6759_p4 }
  0x50   : > { %v6559_v21 = vld [vmem:[%s7004_s7 + $0x230] sm:$0xff]   ;;  %v6561_v23 = vld [vmem:[%s7004_s7 + $0x238] sm:$0xff]   ;;  %v6563_v25 = vld [vmem:[%s7004_s7 + $0x240] sm:$0xff]   ;;  %p6766_p10 = por %p6765_p0, %p6764_p8 }
  0x51   : > { %v6564_v26 = vld [vmem:[%s7004_s7 + $0x48] sm:$0xff]   ;;  %v6566_v28 = vld [vmem:[%s7004_s7 + $0x50] sm:$0xff]   ;;  %v6568_v30 = vld [vmem:[%s7004_s7 + $0x58] sm:$0xff]  }
  0x52   : > { %6168 = vmatpush3.bf16.msra.mxu0 %v6540_v2  ;;  %6445 = vmatpush3.bf16.msra.mxu1 %v6540_v2  ;;  %v6565_v27 = vld [vmem:[%s7004_s7 + $0x248] sm:$0xff]   ;;  %v6567_v29 = vld [vmem:[%s7004_s7 + $0x250] sm:$0xff]   ;;  %v6569_v31 = vld [vmem:[%s7004_s7 + $0x258] sm:$0xff]   ;;  %p6767_p2 = pnand %p6766_p10, %p6760_p6 }
  0x53   : > { %6169 = vmatprep.subr.bf16.mxu0 %v6541_v3  ;;  %6438 = vmatprep.subr.bf16.mxu1 %v6541_v3  ;;  %v6570_v32 = vld [vmem:[%s7004_s7 + $0x60] sm:$0xff]   ;;  %v6572_v34 = vld [vmem:[%s7004_s7 + $0x68] sm:$0xff]   ;;  %v6574_v36 = vld [vmem:[%s7004_s7 + $0x70] sm:$0xff]  }
  0x54   : > { %v6571_v33 = vld [vmem:[%s7004_s7 + $0x260] sm:$0xff]   ;;  %v6573_v35 = vld [vmem:[%s7004_s7 + $0x268] sm:$0xff]   ;;  %v6575_v37 = vld [vmem:[%s7004_s7 + $0x270] sm:$0xff]  }
  0x55   : > { %v6576_v38 = vld [vmem:[%s7004_s7 + $0x78] sm:$0xff]   ;;  %v6578_v40 = vld [vmem:[%s7004_s7 + $0x80] sm:$0xff]   ;;  %v6580_v42 = vld [vmem:[%s7004_s7 + $0x88] sm:$0xff]  }
  0x56   : > { %6170 = vmatpush3.bf16.msra.mxu0 %v6541_v3  ;;  %6446 = vmatpush3.bf16.msra.mxu1 %v6541_v3  ;;  %v6577_v39 = vld [vmem:[%s7004_s7 + $0x278] sm:$0xff]   ;;  %v6579_v41 = vld [vmem:[%s7004_s7 + $0x280] sm:$0xff]   ;;  %v6581_v43 = vld [vmem:[%s7004_s7 + $0x288] sm:$0xff]  }
  0x57   : > { %6171 = vmatprep.subr.bf16.mxu0 %v6542_v6  ;;  %6439 = vmatprep.subr.bf16.mxu1 %v6542_v6  ;;  %v6582_v44 = vld [vmem:[%s7004_s7 + $0x90] sm:$0xff]   ;;  %v6584_v46 = vld [vmem:[%s7004_s7 + $0x98] sm:$0xff]   ;;  %v6586_v48 = vld [vmem:[%s7004_s7 + $0xa0] sm:$0xff]  }
  0x58   : > { %v6583_v45 = vld [vmem:[%s7004_s7 + $0x290] sm:$0xff]   ;;  %v6585_v47 = vld [vmem:[%s7004_s7 + $0x298] sm:$0xff]   ;;  %v6587_v49 = vld [vmem:[%s7004_s7 + $0x2a0] sm:$0xff]  }
  0x59   : > { %v6588_v50 = vld [vmem:[%s7004_s7 + $0xa8] sm:$0xff]   ;;  %v6590_v52 = vld [vmem:[%s7004_s7 + $0xb0] sm:$0xff]   ;;  %v6592_v54 = vld [vmem:[%s7004_s7 + $0xb8] sm:$0xff]  }
  0x5a   : > { %6172 = vmatpush3.bf16.msra.mxu0 %v6542_v6  ;;  %6447 = vmatpush3.bf16.msra.mxu1 %v6542_v6  ;;  %v6589_v51 = vld [vmem:[%s7004_s7 + $0x2a8] sm:$0xff]   ;;  %v6591_v53 = vld [vmem:[%s7004_s7 + $0x2b0] sm:$0xff]   ;;  %v6593_v55 = vld [vmem:[%s7004_s7 + $0x2b8] sm:$0xff]  }
  0x5b   : > { %6173 = vmatprep.subr.bf16.mxu0 %v6543_v7  ;;  %6440 = vmatprep.subr.bf16.mxu1 %v6543_v7  ;;  %v6594_v56 = vld [vmem:[%s7004_s7 + $0xc0] sm:$0xff]   ;;  %v6596_v58 = vld [vmem:[%s7004_s7 + $0xc8] sm:$0xff]   ;;  %v6598_v60 = vld [vmem:[%s7004_s7 + $0xd0] sm:$0xff]  }
  0x5c   : > { %v6595_v57 = vld [vmem:[%s7004_s7 + $0x2c0] sm:$0xff]   ;;  %v6597_v59 = vld [vmem:[%s7004_s7 + $0x2c8] sm:$0xff]   ;;  %v6599_v61 = vld [vmem:[%s7004_s7 + $0x2d0] sm:$0xff]  }
  0x5d   : > { %v6600_v62 = vld [vmem:[%s7004_s7 + $0xd8] sm:$0xff]   ;;  %v6602_v0 = vld [vmem:[%s7004_s7 + $0xe0] sm:$0xff]   ;;  %v6604_v2 = vld [vmem:[%s7004_s7 + $0xe8] sm:$0xff]  }
  0x5e   : > { %6174 = vmatpush3.bf16.msra.mxu0 %v6543_v7  ;;  %6448 = vmatpush3.bf16.msra.mxu1 %v6543_v7  ;;  %v6601_v63 = vld [vmem:[%s7004_s7 + $0x2d8] sm:$0xff]   ;;  %v6603_v1 = vld [vmem:[%s7004_s7 + $0x2e0] sm:$0xff]   ;;  %v6605_v3 = vld [vmem:[%s7004_s7 + $0x2e8] sm:$0xff]  }
  0x5f   : > { %6175 = vmatprep.subr.bf16.mxu0 %v6544_v8  ;;  %6441 = vmatprep.subr.bf16.mxu1 %v6544_v8  ;;  %v6606_v4 = vld [vmem:[%s7004_s7 + $0xf0] sm:$0xff]   ;;  %v6608_v6 = vld [vmem:[%s7004_s7 + $0xf8] sm:$0xff]  }
  0x60   : > { %v6607_v5 = vld [vmem:[%s7004_s7 + $0x2f0] sm:$0xff]   ;;  %v6609_v7 = vld [vmem:[%s7004_s7 + $0x2f8] sm:$0xff]  }
  0x62   : > { %6176 = vmatpush3.bf16.msra.mxu0 %v6544_v8  ;;  %6449 = vmatpush3.bf16.msra.mxu1 %v6544_v8  ;;  %v6610_v8 = vld [vmem:[%s7004_s7 + $0x100] sm:$0xff]  }
  0x63   : > { %6177 = vmatprep.subr.bf16.mxu0 %v6545_v9  ;;  %6442 = vmatprep.subr.bf16.mxu1 %v6545_v9 }
  0x66   : > { %6178 = vmatpush3.bf16.msra.mxu0 %v6545_v9  ;;  %6450 = vmatpush3.bf16.msra.mxu1 %v6545_v9  ;;  %v6611_v9 = vld [vmem:[%s7004_s7 + $0x300] sm:$0xff]  }
  0x69   : > { %6180 = vmatmul.mubr.bf16.vlgmr.msra.gmra.mxu0 %v6548_v10  ;;  %6308 = vmatmul.mubr.bf16.vlgmr.msra.gmra.mxu1 %v6549_v11  ;;  %v6612_v10 = vld [vmem:[%s7004_s7 + $0x108] sm:$0xff]  }
  0x6a   : > { %6183 = vmatprep.mubr.bf16.mxu0 %v6550_v12  ;;  %6311 = vmatprep.mubr.bf16.mxu1 %v6551_v13  ;;  %v6613_v11 = vld [vmem:[%s7004_s7 + $0x308] sm:$0xff]   ;;  %v6614_v12 = vld [vmem:[%s7004_s7 + $0x110] sm:$0xff]  }
  0x6b   : > { %v6615_v13 = vld [vmem:[%s7004_s7 + $0x310] sm:$0xff]  }
  0x71   : > { %6184 = vmatmul.mubr.bf16.gmra.mxu0 %v6552_v14  ;;  %6312 = vmatmul.mubr.bf16.gmra.mxu1 %v6553_v15  ;;  %v6616_v14 = vld [vmem:[%s7004_s7 + $0x118] sm:$0xff]  }
  0x72   : > { %6187 = vmatprep.mubr.bf16.mxu0 %v6554_v16  ;;  %6315 = vmatprep.mubr.bf16.mxu1 %v6555_v17  ;;  %v6617_v15 = vld [vmem:[%s7004_s7 + $0x318] sm:$0xff]   ;;  %v6618_v16 = vld [vmem:[%s7004_s7 + $0x120] sm:$0xff]  }
  0x73   : > { %v6619_v17 = vld [vmem:[%s7004_s7 + $0x320] sm:$0xff]  }
  0x79   : > { %6188 = vmatmul.mubr.bf16.gmra.mxu0 %v6556_v18  ;;  %6316 = vmatmul.mubr.bf16.gmra.mxu1 %v6557_v19  ;;  %v6620_v18 = vld [vmem:[%s7004_s7 + $0x128] sm:$0xff]  }
  0x7a   : > { %6191 = vmatprep.mubr.bf16.mxu0 %v6558_v20  ;;  %6319 = vmatprep.mubr.bf16.mxu1 %v6559_v21  ;;  %v6621_v19 = vld [vmem:[%s7004_s7 + $0x328] sm:$0xff]   ;;  %v6622_v20 = vld [vmem:[%s7004_s7 + $0x130] sm:$0xff]  }
  0x7b   : > { %v6623_v21 = vld [vmem:[%s7004_s7 + $0x330] sm:$0xff]  }
  0x81   : > { %6192 = vmatmul.mubr.bf16.gmra.mxu0 %v6560_v22  ;;  %6320 = vmatmul.mubr.bf16.gmra.mxu1 %v6561_v23  ;;  %v6624_v22 = vld [vmem:[%s7004_s7 + $0x138] sm:$0xff]  }
  0x82   : > { %6195 = vmatprep.mubr.bf16.mxu0 %v6562_v24  ;;  %6323 = vmatprep.mubr.bf16.mxu1 %v6563_v25  ;;  %v6625_v23 = vld [vmem:[%s7004_s7 + $0x338] sm:$0xff]   ;;  %v6626_v24 = vld [vmem:[%s7004_s7 + $0x140] sm:$0xff]  }
  0x83   : > { %v6627_v25 = vld [vmem:[%s7004_s7 + $0x340] sm:$0xff]  }
  0x89   : > { %6196 = vmatmul.mubr.bf16.gmra.mxu0 %v6564_v26  ;;  %6324 = vmatmul.mubr.bf16.gmra.mxu1 %v6565_v27  ;;  %v6628_v26 = vld [vmem:[%s7004_s7 + $0x148] sm:$0xff]  }
  0x8a   : > { %6199 = vmatprep.mubr.bf16.mxu0 %v6566_v28  ;;  %6327 = vmatprep.mubr.bf16.mxu1 %v6567_v29  ;;  %v6629_v27 = vld [vmem:[%s7004_s7 + $0x348] sm:$0xff]   ;;  %v6630_v28 = vld [vmem:[%s7004_s7 + $0x150] sm:$0xff]  }
  0x8b   : > { %v6631_v29 = vld [vmem:[%s7004_s7 + $0x350] sm:$0xff]  }
  0x91   : > { %6200 = vmatmul.mubr.bf16.gmra.mxu0 %v6568_v30  ;;  %6328 = vmatmul.mubr.bf16.gmra.mxu1 %v6569_v31  ;;  %v6632_v30 = vld [vmem:[%s7004_s7 + $0x158] sm:$0xff]  }
  0x92   : > { %6203 = vmatprep.mubr.bf16.mxu0 %v6570_v32  ;;  %6331 = vmatprep.mubr.bf16.mxu1 %v6571_v33  ;;  %v6633_v31 = vld [vmem:[%s7004_s7 + $0x358] sm:$0xff]   ;;  %v6634_v32 = vld [vmem:[%s7004_s7 + $0x160] sm:$0xff]  }
  0x93   : > { %v6635_v33 = vld [vmem:[%s7004_s7 + $0x360] sm:$0xff]  }
  0x99   : > { %6204 = vmatmul.mubr.bf16.gmra.mxu0 %v6572_v34  ;;  %6332 = vmatmul.mubr.bf16.gmra.mxu1 %v6573_v35  ;;  %v6636_v34 = vld [vmem:[%s7004_s7 + $0x168] sm:$0xff]  }
  0x9a   : > { %6207 = vmatprep.mubr.bf16.mxu0 %v6574_v36  ;;  %6335 = vmatprep.mubr.bf16.mxu1 %v6575_v37  ;;  %v6637_v35 = vld [vmem:[%s7004_s7 + $0x368] sm:$0xff]   ;;  %v6638_v36 = vld [vmem:[%s7004_s7 + $0x170] sm:$0xff]  }
  0x9b   : > { %v6639_v37 = vld [vmem:[%s7004_s7 + $0x370] sm:$0xff]  }
  0xa1   : > { %6208 = vmatmul.mubr.bf16.gmra.mxu0 %v6576_v38  ;;  %6336 = vmatmul.mubr.bf16.gmra.mxu1 %v6577_v39  ;;  %v6640_v38 = vld [vmem:[%s7004_s7 + $0x178] sm:$0xff]  }
  0xa2   : > { %6211 = vmatprep.mubr.bf16.mxu0 %v6578_v40  ;;  %6339 = vmatprep.mubr.bf16.mxu1 %v6579_v41  ;;  %v6641_v39 = vld [vmem:[%s7004_s7 + $0x378] sm:$0xff]   ;;  %v6642_v40 = vld [vmem:[%s7004_s7 + $0x180] sm:$0xff]  }
  0xa3   : > { %v6643_v41 = vld [vmem:[%s7004_s7 + $0x380] sm:$0xff]  }
  0xa9   : > { %6212 = vmatmul.mubr.bf16.gmra.mxu0 %v6580_v42  ;;  %6340 = vmatmul.mubr.bf16.gmra.mxu1 %v6581_v43  ;;  %v6644_v42 = vld [vmem:[%s7004_s7 + $0x188] sm:$0xff]  }
  0xaa   : > { %6215 = vmatprep.mubr.bf16.mxu0 %v6582_v44  ;;  %6343 = vmatprep.mubr.bf16.mxu1 %v6583_v45  ;;  %v6645_v43 = vld [vmem:[%s7004_s7 + $0x388] sm:$0xff]   ;;  %v6646_v44 = vld [vmem:[%s7004_s7 + $0x190] sm:$0xff]  }
  0xab   : > { %v6647_v45 = vld [vmem:[%s7004_s7 + $0x390] sm:$0xff]  }
  0xb1   : > { %6216 = vmatmul.mubr.bf16.gmra.mxu0 %v6584_v46  ;;  %6344 = vmatmul.mubr.bf16.gmra.mxu1 %v6585_v47  ;;  %v7116_v46 = vld [vmem:[#allocation7] ss:$0 sm:$0xff] }
  0xb2   : > { %6219 = vmatprep.mubr.bf16.mxu0 %v6586_v48  ;;  %6347 = vmatprep.mubr.bf16.mxu1 %v6587_v49 }
  0xb9   : > { %6220 = vmatmul.mubr.bf16.gmra.mxu0 %v6588_v50  ;;  %6348 = vmatmul.mubr.bf16.gmra.mxu1 %v6589_v51 }
  0xba   : > { %6223 = vmatprep.mubr.bf16.mxu0 %v6590_v52  ;;  %6351 = vmatprep.mubr.bf16.mxu1 %v6591_v53 }
  0xc1   : > { %6224 = vmatmul.mubr.bf16.gmra.mxu0 %v6592_v54  ;;  %6352 = vmatmul.mubr.bf16.gmra.mxu1 %v6593_v55 }
  0xc2   : > { %6227 = vmatprep.mubr.bf16.mxu0 %v6594_v56  ;;  %6355 = vmatprep.mubr.bf16.mxu1 %v6595_v57 }
  0xc9   : > { %6228 = vmatmul.mubr.bf16.gmra.mxu0 %v6596_v58  ;;  %6356 = vmatmul.mubr.bf16.gmra.mxu1 %v6597_v59  ;;  %v6648_v59 = vld [vmem:[%s7004_s7 + $0x198] sm:$0xff]  }
  0xca   : > { %6231 = vmatprep.mubr.bf16.mxu0 %v6598_v60  ;;  %6359 = vmatprep.mubr.bf16.mxu1 %v6599_v61 }
  0xd1   : > { %6232 = vmatmul.mubr.bf16.gmra.mxu0 %v6600_v62  ;;  %6360 = vmatmul.mubr.bf16.gmra.mxu1 %v6601_v63  ;;  %v6649_v63 = vld [vmem:[%s7004_s7 + $0x398] sm:$0xff]  }
  0xd2   : > { %6235 = vmatprep.mubr.bf16.mxu0 %v6602_v0  ;;  %6363 = vmatprep.mubr.bf16.mxu1 %v6603_v1 }
  0xd9   : > { %6236 = vmatmul.mubr.bf16.gmra.mxu0 %v6604_v2  ;;  %6364 = vmatmul.mubr.bf16.gmra.mxu1 %v6605_v3 }
  0xda   : > { %6239 = vmatprep.mubr.bf16.mxu0 %v6606_v4  ;;  %6367 = vmatprep.mubr.bf16.mxu1 %v6607_v5  ;;  %v6650_v4 = vld [vmem:[%s7004_s7 + $0x1a0] sm:$0xff]  }
  0xdb   : > { %v6651_v5 = vld [vmem:[%s7004_s7 + $0x3a0] sm:$0xff]  }
  0xe1   : > { %6240 = vmatmul.mubr.bf16.gmra.mxu0 %v6608_v6  ;;  %6368 = vmatmul.mubr.bf16.gmra.mxu1 %v6609_v7 }
  0xe2   : > { %6243 = vmatprep.mubr.bf16.mxu0 %v6610_v8  ;;  %6371 = vmatprep.mubr.bf16.mxu1 %v6611_v9 }
  0xe9   : > { %6244 = vmatmul.mubr.bf16.gmra.mxu0 %v6612_v10  ;;  %6372 = vmatmul.mubr.bf16.gmra.mxu1 %v6613_v11 }
  0xea   : > { %6247 = vmatprep.mubr.bf16.mxu0 %v6614_v12  ;;  %6375 = vmatprep.mubr.bf16.mxu1 %v6615_v13 }
  0xf1   : > { %6248 = vmatmul.mubr.bf16.gmra.mxu0 %v6616_v14  ;;  %6376 = vmatmul.mubr.bf16.gmra.mxu1 %v6617_v15 }
  0xf2   : > { %6251 = vmatprep.mubr.bf16.mxu0 %v6618_v16  ;;  %6379 = vmatprep.mubr.bf16.mxu1 %v6619_v17 }
  0xf9   : > { %6252 = vmatmul.mubr.bf16.gmra.mxu0 %v6620_v18  ;;  %6380 = vmatmul.mubr.bf16.gmra.mxu1 %v6621_v19 }
  0xfa   : > { %6255 = vmatprep.mubr.bf16.mxu0 %v6622_v20  ;;  %6383 = vmatprep.mubr.bf16.mxu1 %v6623_v21 }
 0x101   : > { %6256 = vmatmul.mubr.bf16.gmra.mxu0 %v6624_v22  ;;  %6384 = vmatmul.mubr.bf16.gmra.mxu1 %v6625_v23 }
 0x102   : > { %6259 = vmatprep.mubr.bf16.mxu0 %v6626_v24  ;;  %6387 = vmatprep.mubr.bf16.mxu1 %v6627_v25 }
 0x109   : > { %6260 = vmatmul.mubr.bf16.gmra.mxu0 %v6628_v26  ;;  %6388 = vmatmul.mubr.bf16.gmra.mxu1 %v6629_v27 }
 0x10a   : > { %6263 = vmatprep.mubr.bf16.mxu0 %v6630_v28  ;;  %6391 = vmatprep.mubr.bf16.mxu1 %v6631_v29 }
 0x111   : > { %6264 = vmatmul.mubr.bf16.gmra.mxu0 %v6632_v30  ;;  %6392 = vmatmul.mubr.bf16.gmra.mxu1 %v6633_v31  ;;  %v6652_v31 = vld [vmem:[%s7004_s7 + $0x1a8] sm:$0xff]  }
 0x112   : > { %6267 = vmatprep.mubr.bf16.mxu0 %v6634_v32  ;;  %6395 = vmatprep.mubr.bf16.mxu1 %v6635_v33 }
 0x119   : > { %6268 = vmatmul.mubr.bf16.gmra.mxu0 %v6636_v34  ;;  %6396 = vmatmul.mubr.bf16.gmra.mxu1 %v6637_v35  ;;  %v6653_v35 = vld [vmem:[%s7004_s7 + $0x3a8] sm:$0xff]  }
 0x11a   : > { %6271 = vmatprep.mubr.bf16.mxu0 %v6638_v36  ;;  %6399 = vmatprep.mubr.bf16.mxu1 %v6639_v37  ;;  %v6654_v36 = vld [vmem:[%s7004_s7 + $0x1b0] sm:$0xff]  }
 0x121   : > { %6272 = vmatmul.mubr.bf16.gmra.mxu0 %v6640_v38  ;;  %6400 = vmatmul.mubr.bf16.gmra.mxu1 %v6641_v39 }
 0x122   : > { %6275 = vmatprep.mubr.bf16.mxu0 %v6642_v40  ;;  %6403 = vmatprep.mubr.bf16.mxu1 %v6643_v41 }
 0x129   : > { %v6181_v47 = vpop.f32.mrf.mxu0  ;;  %6276 = vmatmul.mubr.bf16.gmra.mxu0 %v6644_v42  ;;  %v6309_v48 = vpop.f32.mrf.mxu1  ;;  %6404 = vmatmul.mubr.bf16.gmra.mxu1 %v6645_v43  ;;  %v6655_v42 = vld [vmem:[%s7004_s7 + $0x3b0] sm:$0xff]  }
 0x12a   : > { %v1400_v49 = vadd.f32 %v6181_v47, %v7116_v46  ;;  %v1912_v50 = vadd.f32 %v6309_v48, %v7116_v46  ;;  %6279 = vmatprep.mubr.bf16.mxu0 %v6646_v44  ;;  %6407 = vmatprep.mubr.bf16.mxu1 %v6647_v45 }
 0x12b   : > { %v1391_v51 = vpop.f32.mrf.mxu0  ;;  %v1903_v52 = vpop.f32.mrf.mxu1 }
 0x12c   : > { %vm2416_vm0 = vcmp.gt.f32.partialorder %v1400_v49, 0.0  ;;  %v2672_v53 = vmul.f32 0.2, %v1400_v49  ;;  %vm2544_vm1 = vcmp.gt.f32.partialorder %v1912_v50, 0.0  ;;  %v2800_v54 = vmul.f32 0.2, %v1912_v50 }
 0x12d   : > { %v1392_v55 = vadd.f32 %v7116_v46, %v1391_v51  ;;  %v1904_v56 = vadd.f32 %v7116_v46, %v1903_v52  ;;  %v6182_v57 = vpop.f32.mrf.mxu0  ;;  %v6310_v58 = vpop.f32.mrf.mxu1 }
 0x12e   : > { %v2928_v60 = vsel %vm2416_vm0, %v1400_v49, %v2672_v53  ;;  %v1403_v61 = vadd.f32 %v6182_v57, %v7116_v46  ;;  %v1915_v62 = vadd.f32 %v6310_v58, %v7116_v46  ;;  %v3056_v0 = vsel %vm2544_vm1, %v1912_v50, %v2800_v54 }
 0x12f   : > { %vm2414_vm2 = vcmp.gt.f32.partialorder %v1392_v55, 0.0  ;;  %v2670_v1 = vmul.f32 0.2, %v1392_v55  ;;  %vm2542_vm3 = vcmp.gt.f32.partialorder %v1904_v56, 0.0  ;;  %v1394_v2 = vpop.f32.mrf.mxu0  ;;  %v1906_v3 = vpop.f32.mrf.mxu1  ;;  %v2798_v9 = vmul.f32 0.2, %v1904_v56 }
 0x130   : > { %vm2417_vm4 = vcmp.gt.f32.partialorder %v1403_v61, 0.0  ;;  %v2673_v6 = vmul.f32 0.2, %v1403_v61  ;;  %vm2545_vm5 = vcmp.gt.f32.partialorder %v1915_v62, 0.0  ;;  %v2801_v7 = vmul.f32 0.2, %v1915_v62 }
 0x131   : > { %v2926_v8 = vsel %vm2414_vm2, %v1392_v55, %v2670_v1  ;;  %v1395_v10 = vadd.f32 %v7116_v46, %v1394_v2  ;;  %v1907_v11 = vadd.f32 %v7116_v46, %v1906_v3  ;;  %v6185_v12 = vpop.f32.mrf.mxu0  ;;  %6280 = vmatmul.mubr.bf16.gmra.mxu0 %v6648_v59  ;;  %v6313_v13 = vpop.f32.mrf.mxu1  ;;  %6408 = vmatmul.mubr.bf16.gmra.mxu1 %v6649_v63 }
 0x132   : > { %v2929_v14 = vsel %vm2417_vm4, %v1403_v61, %v2673_v6  ;;  %v3057_v15 = vsel %vm2545_vm5, %v1915_v62, %v2801_v7  ;;  %v1416_v16 = vadd.f32 %v6185_v12, %v7116_v46  ;;  %v1928_v17 = vadd.f32 %v6313_v13, %v7116_v46  ;;  %6283 = vmatprep.mubr.bf16.mxu0 %v6650_v4 }
 0x133   : > { %v5268_v18 = vpack.c.bf16 %v2929_v14, %v2928_v60  ;;  %v5588_v19 = vpack.c.bf16 %v3057_v15, %v3056_v0  ;;  %vm2415_vm6 = vcmp.gt.f32.partialorder %v1395_v10, 0.0  ;;  %v2671_v20 = vmul.f32 0.2, %v1395_v10  ;;  %v1407_v21 = vpop.f32.mrf.mxu0  ;;  %v1919_v22 = vpop.f32.mrf.mxu1  ;;  %6411 = vmatprep.mubr.bf16.mxu1 %v6651_v5  ;;  %v6656_v5 = vld [vmem:[%s7004_s7 + $0x1b8] sm:$0xff]  }
 0x134   : > { %vm2543_vm7 = vcmp.gt.f32.partialorder %v1907_v11, 0.0  ;;  %v2799_v23 = vmul.f32 0.2, %v1907_v11  ;;  %vm2420_vm8 = vcmp.gt.f32.partialorder %v1416_v16, 0.0  ;;  %v2676_v24 = vmul.f32 0.2, %v1416_v16 }
 0x135   : > { %v3054_v25 = vsel %vm2542_vm3, %v1904_v56, %v2798_v9  ;;  %5900 = vst [vmem:[%s7135_s20 + $0x8] sm:$0xff] %v5268_v18   ;;  %5964 = vst [vmem:[%s7135_s20 + $0x208] sm:$0xff] %v5588_v19   ;;  %v2927_v26 = vsel %vm2415_vm6, %v1395_v10, %v2671_v20  ;;  %v2804_v27 = vmul.f32 0.2, %v1928_v17  ;;  %v1408_v28 = vadd.f32 %v7116_v46, %v1407_v21  ;;  %v6186_v29 = vpop.f32.mrf.mxu0  ;;  %v6314_v30 = vpop.f32.mrf.mxu1  ;;  %v6657_v9 = vld [vmem:[%s7004_s7 + $0x3b8] sm:$0xff]   ;;  %v6658_v10 = vld [vmem:[%s7004_s7 + $0x1c0] sm:$0xff]  }
 0x136   : > { %v5263_v32 = vpack.c.bf16 %v2927_v26, %v2926_v8  ;;  %v3055_v33 = vsel %vm2543_vm7, %v1907_v11, %v2799_v23  ;;  %vm2548_vm9 = vcmp.gt.f32.partialorder %v1928_v17, 0.0  ;;  %v1920_v34 = vadd.f32 %v7116_v46, %v1919_v22 }
 0x137   : > { %v5583_v37 = vpack.c.bf16 %v3055_v33, %v3054_v25  ;;  %v2932_v38 = vsel %vm2420_vm8, %v1416_v16, %v2676_v24  ;;  %vm2418_vm10 = vcmp.gt.f32.partialorder %v1408_v28, 0.0  ;;  %v2674_v39 = vmul.f32 0.2, %v1408_v28  ;;  %v1410_v40 = vpop.f32.mrf.mxu0  ;;  %v1922_v41 = vpop.f32.mrf.mxu1  ;;  %v6659_v16 = vld [vmem:[%s7004_s7 + $0x3c0] sm:$0xff]  }
 0x138   : > { %5264 = vst [vmem:[%s7135_s20] sm:$0xff] %v5263_v32   ;;  %vm2546_vm11 = vcmp.gt.f32.partialorder %v1920_v34, 0.0  ;;  %v2802_v43 = vmul.f32 0.2, %v1920_v34  ;;  %v1419_v44 = vadd.f32 %v6186_v29, %v7116_v46  ;;  %v1931_v45 = vadd.f32 %v6314_v30, %v7116_v46 }
 0x139   : > { %5963 = vst [vmem:[%s7135_s20 + $0x200] sm:$0xff] %v5583_v37   ;;  %v3060_v47 = vsel %vm2548_vm9, %v1928_v17, %v2804_v27  ;;  %v2930_v48 = vsel %vm2418_vm10, %v1408_v28, %v2674_v39  ;;  %v1411_v49 = vadd.f32 %v7116_v46, %v1410_v40  ;;  %v1923_v50 = vadd.f32 %v7116_v46, %v1922_v41  ;;  %v6189_v51 = vpop.f32.mrf.mxu0  ;;  %v6317_v52 = vpop.f32.mrf.mxu1 }
 0x13a   : > { %6284 = vmatmul.mubr.bf16.gmra.mxu0 %v6652_v31  ;;  %v3058_v53 = vsel %vm2546_vm11, %v1920_v34, %v2802_v43  ;;  %vm2421_vm12 = vcmp.gt.f32.partialorder %v1419_v44, 0.0  ;;  %v2677_v54 = vmul.f32 0.2, %v1419_v44  ;;  %vm2549_vm13 = vcmp.gt.f32.partialorder %v1931_v45, 0.0  ;;  %6412 = vmatmul.mubr.bf16.gmra.mxu1 %v6653_v35 }
 0x13b   : > { %6287 = vmatprep.mubr.bf16.mxu0 %v6654_v36  ;;  %v2805_v55 = vmul.f32 0.2, %v1931_v45  ;;  %vm2419_vm14 = vcmp.gt.f32.partialorder %v1411_v49, 0.0  ;;  %v2675_v56 = vmul.f32 0.2, %v1411_v49  ;;  %vm2547_vm15 = vcmp.gt.f32.partialorder %v1923_v50, 0.0  ;;  %v1423_v57 = vpop.f32.mrf.mxu0  ;;  %v1935_v58 = vpop.f32.mrf.mxu1  ;;  %6415 = vmatprep.mubr.bf16.mxu1 %v6655_v42 }
 0x13c   : > { %v2933_v59 = vsel %vm2421_vm12, %v1419_v44, %v2677_v54  ;;  %v2803_v60 = vmul.f32 0.2, %v1923_v50  ;;  %v1432_v61 = vadd.f32 %v6189_v51, %v7116_v46  ;;  %v1944_v62 = vadd.f32 %v6317_v52, %v7116_v46  ;;  %v6660_v42 = vld [vmem:[%s7004_s7 + $0x1c8] sm:$0xff]   ;;  %v6663_v54 = vld [vmem:[%s7004_s7 + $0x3d0] sm:$0xff]  }
 0x13d   : > { %v5278_v63 = vpack.c.bf16 %v2933_v59, %v2932_v38  ;;  %v3061_v0 = vsel %vm2549_vm13, %v1931_v45, %v2805_v55  ;;  %v2931_v1 = vsel %vm2419_vm14, %v1411_v49, %v2675_v56  ;;  %v1424_v2 = vadd.f32 %v7116_v46, %v1423_v57  ;;  %v6190_v3 = vpop.f32.mrf.mxu0  ;;  %v6318_v4 = vpop.f32.mrf.mxu1 }
 0x13e   : > { %v5598_v6 = vpack.c.bf16 %v3061_v0, %v3060_v47  ;;  %v5273_v7 = vpack.c.bf16 %v2931_v1, %v2930_v48  ;;  %v3059_v8 = vsel %vm2547_vm15, %v1923_v50, %v2803_v60  ;;  %vm2424_vm0 = vcmp.gt.f32.partialorder %v1432_v61, 0.0  ;;  %v6661_v47 = vld [vmem:[%s7004_s7 + $0x3c8] sm:$0xff]   ;;  %v6662_v48 = vld [vmem:[%s7004_s7 + $0x1d0] sm:$0xff]  }
 0x13f   : > { %5902 = vst [vmem:[%s7135_s20 + $0x18] sm:$0xff] %v5278_v63   ;;  %v5593_v11 = vpack.c.bf16 %v3059_v8, %v3058_v53  ;;  %v2680_v12 = vmul.f32 0.2, %v1432_v61  ;;  %vm2552_vm1 = vcmp.gt.f32.partialorder %v1944_v62, 0.0  ;;  %v2808_v13 = vmul.f32 0.2, %v1944_v62  ;;  %v1426_v14 = vpop.f32.mrf.mxu0  ;;  %v1938_v15 = vpop.f32.mrf.mxu1 }
 0x140   : > { %5966 = vst [vmem:[%s7135_s20 + $0x218] sm:$0xff] %v5598_v6   ;;  %5901 = vst [vmem:[%s7135_s20 + $0x10] sm:$0xff] %v5273_v7   ;;  %vm2422_vm2 = vcmp.gt.f32.partialorder %v1424_v2, 0.0  ;;  %v2678_v17 = vmul.f32 0.2, %v1424_v2  ;;  %v1936_v18 = vadd.f32 %v7116_v46, %v1935_v58  ;;  %v1435_v19 = vadd.f32 %v6190_v3, %v7116_v46 }
 0x141   : > { %5965 = vst [vmem:[%s7135_s20 + $0x210] sm:$0xff] %v5593_v11   ;;  %v2936_v20 = vsel %vm2424_vm0, %v1432_v61, %v2680_v12  ;;  %v3064_v21 = vsel %vm2552_vm1, %v1944_v62, %v2808_v13  ;;  %v1947_v22 = vadd.f32 %v6318_v4, %v7116_v46  ;;  %v1427_v23 = vadd.f32 %v7116_v46, %v1426_v14  ;;  %v6193_v24 = vpop.f32.mrf.mxu0  ;;  %v6321_v25 = vpop.f32.mrf.mxu1 }
 0x142   : > { %6288 = vmatmul.mubr.bf16.gmra.mxu0 %v6656_v5  ;;  %v2934_v26 = vsel %vm2422_vm2, %v1424_v2, %v2678_v17  ;;  %vm2550_vm3 = vcmp.gt.f32.partialorder %v1936_v18, 0.0  ;;  %v2806_v27 = vmul.f32 0.2, %v1936_v18  ;;  %vm2425_vm4 = vcmp.gt.f32.partialorder %v1435_v19, 0.0  ;;  %6416 = vmatmul.mubr.bf16.gmra.mxu1 %v6657_v9 }
 0x143   : > { %6291 = vmatprep.mubr.bf16.mxu0 %v6658_v10  ;;  %v2681_v28 = vmul.f32 0.2, %v1435_v19  ;;  %vm2553_vm5 = vcmp.gt.f32.partialorder %v1947_v22, 0.0  ;;  %v2809_v29 = vmul.f32 0.2, %v1947_v22  ;;  %vm2423_vm6 = vcmp.gt.f32.partialorder %v1427_v23, 0.0  ;;  %v1439_v30 = vpop.f32.mrf.mxu0  ;;  %v1951_v31 = vpop.f32.mrf.mxu1  ;;  %6419 = vmatprep.mubr.bf16.mxu1 %v6659_v16 }
 0x144   : > { %v3062_v32 = vsel %vm2550_vm3, %v1936_v18, %v2806_v27  ;;  %v2679_v33 = vmul.f32 0.2, %v1427_v23  ;;  %v1939_v34 = vadd.f32 %v7116_v46, %v1938_v15  ;;  %v1448_v35 = vadd.f32 %v6193_v24, %v7116_v46  ;;  %v6664_v16 = vld [vmem:[%s7004_s7 + $0x1d8] sm:$0xff]  }
 0x145   : > { %v2937_v36 = vsel %vm2425_vm4, %v1435_v19, %v2681_v28  ;;  %v3065_v37 = vsel %vm2553_vm5, %v1947_v22, %v2809_v29  ;;  %v1960_v38 = vadd.f32 %v6321_v25, %v7116_v46  ;;  %v1440_v39 = vadd.f32 %v7116_v46, %v1439_v30  ;;  %v6194_v40 = vpop.f32.mrf.mxu0  ;;  %v6322_v41 = vpop.f32.mrf.mxu1  ;;  %v6666_v25 = vld [vmem:[%s7004_s7 + $0x1e0] sm:$0xff]  }
 0x146   : > { %v5288_v43 = vpack.c.bf16 %v2937_v36, %v2936_v20  ;;  %v5608_v44 = vpack.c.bf16 %v3065_v37, %v3064_v21  ;;  %v2935_v45 = vsel %vm2423_vm6, %v1427_v23, %v2679_v33  ;;  %vm2551_vm7 = vcmp.gt.f32.partialorder %v1939_v34, 0.0  ;;  %v6665_v20 = vld [vmem:[%s7004_s7 + $0x3d8] sm:$0xff]  }
 0x147   : > { %v5283_v49 = vpack.c.bf16 %v2935_v45, %v2934_v26  ;;  %v2807_v50 = vmul.f32 0.2, %v1939_v34  ;;  %vm2428_vm8 = vcmp.gt.f32.partialorder %v1448_v35, 0.0  ;;  %v2684_v51 = vmul.f32 0.2, %v1448_v35  ;;  %v1442_v52 = vpop.f32.mrf.mxu0  ;;  %v1954_v53 = vpop.f32.mrf.mxu1  ;;  %v6667_v26 = vld [vmem:[%s7004_s7 + $0x3e0] sm:$0xff]  }
 0x148   : > { %5904 = vst [vmem:[%s7135_s20 + $0x28] sm:$0xff] %v5288_v43   ;;  %5968 = vst [vmem:[%s7135_s20 + $0x228] sm:$0xff] %v5608_v44   ;;  %vm2556_vm9 = vcmp.gt.f32.partialorder %v1960_v38, 0.0  ;;  %v2812_v55 = vmul.f32 0.2, %v1960_v38  ;;  %vm2426_vm10 = vcmp.gt.f32.partialorder %v1440_v39, 0.0  ;;  %v1952_v59 = vadd.f32 %v7116_v46, %v1951_v31 }
 0x149   : > { %v2682_v56 = vmul.f32 0.2, %v1440_v39  ;;  %5903 = vst [vmem:[%s7135_s20 + $0x20] sm:$0xff] %v5283_v49   ;;  %v3063_v57 = vsel %vm2551_vm7, %v1939_v34, %v2807_v50  ;;  %v2940_v58 = vsel %vm2428_vm8, %v1448_v35, %v2684_v51  ;;  %v1451_v60 = vadd.f32 %v6194_v40, %v7116_v46  ;;  %v6197_v61 = vpop.f32.mrf.mxu0  ;;  %v6325_v62 = vpop.f32.mrf.mxu1 }
 0x14a   : > { %6292 = vmatmul.mubr.bf16.gmra.mxu0 %v6660_v42  ;;  %v5603_v63 = vpack.c.bf16 %v3063_v57, %v3062_v32  ;;  %v3068_v0 = vsel %vm2556_vm9, %v1960_v38, %v2812_v55  ;;  %v1963_v2 = vadd.f32 %v6322_v41, %v7116_v46  ;;  %6420 = vmatmul.mubr.bf16.gmra.mxu1 %v6661_v47  ;;  %vm2554_vm11 = vcmp.gt.f32.partialorder %v1952_v59, 0.0  ;;  %v6669_v57 = vld [vmem:[%s7004_s7 + $0x3e8] sm:$0xff]  }
 0x14b   : > { %v2938_v1 = vsel %vm2426_vm10, %v1440_v39, %v2682_v56  ;;  %v2810_v3 = vmul.f32 0.2, %v1952_v59  ;;  %vm2429_vm12 = vcmp.gt.f32.partialorder %v1451_v60, 0.0  ;;  %v2685_v4 = vmul.f32 0.2, %v1451_v60  ;;  %v1455_v5 = vpop.f32.mrf.mxu0  ;;  %v1967_v6 = vpop.f32.mrf.mxu1  ;;  %6295 = vmatprep.mubr.bf16.mxu0 %v6662_v48  ;;  %6423 = vmatprep.mubr.bf16.mxu1 %v6663_v54  ;;  %v6668_v54 = vld [vmem:[%s7004_s7 + $0x1e8] sm:$0xff]  }
 0x14c   : > { %5967 = vst [vmem:[%s7135_s20 + $0x220] sm:$0xff] %v5603_v63   ;;  %vm2557_vm13 = vcmp.gt.f32.partialorder %v1963_v2, 0.0  ;;  %v2813_v7 = vmul.f32 0.2, %v1963_v2  ;;  %v1443_v8 = vadd.f32 %v7116_v46, %v1442_v52  ;;  %v1955_v9 = vadd.f32 %v7116_v46, %v1954_v53 }
 0x14d   : > { %v3066_v10 = vsel %vm2554_vm11, %v1952_v59, %v2810_v3  ;;  %v2941_v11 = vsel %vm2429_vm12, %v1451_v60, %v2685_v4  ;;  %v1464_v12 = vadd.f32 %v6197_v61, %v7116_v46  ;;  %v1976_v13 = vadd.f32 %v6325_v62, %v7116_v46  ;;  %v6198_v14 = vpop.f32.mrf.mxu0  ;;  %v6326_v15 = vpop.f32.mrf.mxu1 }
 0x14e   : > { %v5298_v17 = vpack.c.bf16 %v2941_v11, %v2940_v58  ;;  %v3069_v18 = vsel %vm2557_vm13, %v1963_v2, %v2813_v7  ;;  %vm2427_vm14 = vcmp.gt.f32.partialorder %v1443_v8, 0.0  ;;  %v2683_v19 = vmul.f32 0.2, %v1443_v8  ;;  %v6670_v58 = vld [vmem:[%s7004_s7 + $0x1f0] sm:$0xff]  }
 0x14f   : > { %v5618_v21 = vpack.c.bf16 %v3069_v18, %v3068_v0  ;;  %vm2555_vm15 = vcmp.gt.f32.partialorder %v1955_v9, 0.0  ;;  %v2811_v22 = vmul.f32 0.2, %v1955_v9  ;;  %vm2432_vm0 = vcmp.gt.f32.partialorder %v1464_v12, 0.0  ;;  %v1458_v23 = vpop.f32.mrf.mxu0  ;;  %v1970_v24 = vpop.f32.mrf.mxu1  ;;  %v6671_v0 = vld [vmem:[%s7004_s7 + $0x3f0] sm:$0xff]  }
 0x150   : > { %5906 = vst [vmem:[%s7135_s20 + $0x38] sm:$0xff] %v5298_v17   ;;  %v2939_v27 = vsel %vm2427_vm14, %v1443_v8, %v2683_v19  ;;  %v2688_v28 = vmul.f32 0.2, %v1464_v12  ;;  %vm2560_vm1 = vcmp.gt.f32.partialorder %v1976_v13, 0.0  ;;  %v2816_v29 = vmul.f32 0.2, %v1976_v13 }
 0x151   : > { %5970 = vst [vmem:[%s7135_s20 + $0x238] sm:$0xff] %v5618_v21   ;;  %v5293_v30 = vpack.c.bf16 %v2939_v27, %v2938_v1  ;;  %v3067_v31 = vsel %vm2555_vm15, %v1955_v9, %v2811_v22  ;;  %v1456_v32 = vadd.f32 %v7116_v46, %v1455_v5  ;;  %v1968_v33 = vadd.f32 %v7116_v46, %v1967_v6  ;;  %v6201_v34 = vpop.f32.mrf.mxu0  ;;  %v6329_v35 = vpop.f32.mrf.mxu1  ;;  %v6672_v27 = vld [vmem:[%s7004_s7 + $0x1f8] sm:$0xff]  }
 0x152   : > { %6296 = vmatmul.mubr.bf16.gmra.mxu0 %v6664_v16  ;;  %v5613_v36 = vpack.c.bf16 %v3067_v31, %v3066_v10  ;;  %v2944_v37 = vsel %vm2432_vm0, %v1464_v12, %v2688_v28  ;;  %v3072_v38 = vsel %vm2560_vm1, %v1976_v13, %v2816_v29  ;;  %v1467_v39 = vadd.f32 %v6198_v14, %v7116_v46  ;;  %v6673_v28 = vld [vmem:[%s7004_s7 + $0x3f8] sm:$0xff]  }
 0x153   : > { %6424 = vmatmul.mubr.bf16.gmra.mxu1 %v6665_v20  ;;  %5905 = vst [vmem:[%s7135_s20 + $0x30] sm:$0xff] %v5293_v30   ;;  %vm2430_vm2 = vcmp.gt.f32.partialorder %v1456_v32, 0.0  ;;  %v2686_v40 = vmul.f32 0.2, %v1456_v32  ;;  %vm2558_vm3 = vcmp.gt.f32.partialorder %v1968_v33, 0.0  ;;  %v1471_v42 = vpop.f32.mrf.mxu0  ;;  %v1983_v43 = vpop.f32.mrf.mxu1  ;;  %6299 = vmatprep.mubr.bf16.mxu0 %v6666_v25  ;;  %v1979_v45 = vadd.f32 %v6326_v15, %v7116_v46 }
 0x154   : > { %v2814_v41 = vmul.f32 0.2, %v1968_v33  ;;  %6427 = vmatprep.mubr.bf16.mxu1 %v6667_v26  ;;  %5969 = vst [vmem:[%s7135_s20 + $0x230] sm:$0xff] %v5613_v36   ;;  %vm2433_vm4 = vcmp.gt.f32.partialorder %v1467_v39, 0.0  ;;  %v2689_v44 = vmul.f32 0.2, %v1467_v39  ;;  %v1459_v47 = vadd.f32 %v7116_v46, %v1458_v23 }
 0x155   : > { %v2942_v48 = vsel %vm2430_vm2, %v1456_v32, %v2686_v40  ;;  %v1971_v50 = vadd.f32 %v7116_v46, %v1970_v24  ;;  %v1480_v51 = vadd.f32 %v6201_v34, %v7116_v46  ;;  %v6202_v52 = vpop.f32.mrf.mxu0  ;;  %v6330_v53 = vpop.f32.mrf.mxu1  ;;  %vm2561_vm5 = vcmp.gt.f32.partialorder %v1979_v45, 0.0 }
 0x156   : > { %v3070_v49 = vsel %vm2558_vm3, %v1968_v33, %v2814_v41  ;;  %v2945_v55 = vsel %vm2433_vm4, %v1467_v39, %v2689_v44  ;;  %v2817_v56 = vmul.f32 0.2, %v1979_v45  ;;  %vm2431_vm6 = vcmp.gt.f32.partialorder %v1459_v47, 0.0 }
 0x157   : > { %v5308_v59 = vpack.c.bf16 %v2945_v55, %v2944_v37  ;;  %v2687_v60 = vmul.f32 0.2, %v1459_v47  ;;  %vm2559_vm7 = vcmp.gt.f32.partialorder %v1971_v50, 0.0  ;;  %v2815_v61 = vmul.f32 0.2, %v1971_v50  ;;  %v1474_v62 = vpop.f32.mrf.mxu0  ;;  %v1986_v63 = vpop.f32.mrf.mxu1 }
 0x158   : > { %v3073_v1 = vsel %vm2561_vm5, %v1979_v45, %v2817_v56  ;;  %vm2436_vm8 = vcmp.gt.f32.partialorder %v1480_v51, 0.0  ;;  %v2692_v2 = vmul.f32 0.2, %v1480_v51  ;;  %v1992_v3 = vadd.f32 %v6329_v35, %v7116_v46 }
 0x159   : > { %5908 = vst [vmem:[%s7135_s20 + $0x48] sm:$0xff] %v5308_v59   ;;  %v5628_v4 = vpack.c.bf16 %v3073_v1, %v3072_v38  ;;  %v2943_v5 = vsel %vm2431_vm6, %v1459_v47, %v2687_v60  ;;  %v3071_v6 = vsel %vm2559_vm7, %v1971_v50, %v2815_v61  ;;  %v1472_v7 = vadd.f32 %v7116_v46, %v1471_v42  ;;  %v6205_v8 = vpop.f32.mrf.mxu0  ;;  %v6333_v9 = vpop.f32.mrf.mxu1 }
 0x15a   : > { %6300 = vmatmul.mubr.bf16.gmra.mxu0 %v6668_v54  ;;  %v5303_v10 = vpack.c.bf16 %v2943_v5, %v2942_v48  ;;  %v5623_v11 = vpack.c.bf16 %v3071_v6, %v3070_v49  ;;  %v2948_v12 = vsel %vm2436_vm8, %v1480_v51, %v2692_v2  ;;  %vm2564_vm9 = vcmp.gt.f32.partialorder %v1992_v3, 0.0 }
 0x15b   : > { %6428 = vmatmul.mubr.bf16.gmra.mxu1 %v6669_v57  ;;  %6303 = vmatprep.mubr.bf16.mxu0 %v6670_v58  ;;  %5972 = vst [vmem:[%s7135_s20 + $0x248] sm:$0xff] %v5628_v4   ;;  %v2820_v13 = vmul.f32 0.2, %v1992_v3  ;;  %vm2434_vm10 = vcmp.gt.f32.partialorder %v1472_v7, 0.0  ;;  %v2690_v14 = vmul.f32 0.2, %v1472_v7  ;;  %v1984_v15 = vadd.f32 %v7116_v46, %v1983_v43  ;;  %v1487_v16 = vpop.f32.mrf.mxu0  ;;  %v1999_v17 = vpop.f32.mrf.mxu1 }
 0x15c   : > { %6431 = vmatprep.mubr.bf16.mxu1 %v6671_v0  ;;  %5907 = vst [vmem:[%s7135_s20 + $0x40] sm:$0xff] %v5303_v10   ;;  %5971 = vst [vmem:[%s7135_s20 + $0x240] sm:$0xff] %v5623_v11   ;;  %v1483_v18 = vadd.f32 %v6202_v52, %v7116_v46  ;;  %v1995_v19 = vadd.f32 %v6330_v53, %v7116_v46  ;;  %v1475_v20 = vadd.f32 %v7116_v46, %v1474_v62 }
 0x15d   : > { %v1987_v21 = vadd.f32 %v7116_v46, %v1986_v63  ;;  %v3076_v22 = vsel %vm2564_vm9, %v1992_v3, %v2820_v13  ;;  %v2946_v23 = vsel %vm2434_vm10, %v1472_v7, %v2690_v14  ;;  %vm2562_vm11 = vcmp.gt.f32.partialorder %v1984_v15, 0.0  ;;  %v6206_v25 = vpop.f32.mrf.mxu0  ;;  %v6334_v26 = vpop.f32.mrf.mxu1 }
 0x15e   : > { %v2818_v24 = vmul.f32 0.2, %v1984_v15  ;;  %vm2437_vm12 = vcmp.gt.f32.partialorder %v1483_v18, 0.0  ;;  %v2693_v29 = vmul.f32 0.2, %v1483_v18  ;;  %vm2565_vm13 = vcmp.gt.f32.partialorder %v1995_v19, 0.0 }
 0x15f   : > { %v2821_v30 = vmul.f32 0.2, %v1995_v19  ;;  %vm2435_vm14 = vcmp.gt.f32.partialorder %v1475_v20, 0.0  ;;  %v2691_v32 = vmul.f32 0.2, %v1475_v20  ;;  %vm2563_vm15 = vcmp.gt.f32.partialorder %v1987_v21, 0.0  ;;  %v1490_v33 = vpop.f32.mrf.mxu0  ;;  %v2002_v34 = vpop.f32.mrf.mxu1 }
 0x160   : > { %v3074_v31 = vsel %vm2562_vm11, %v1984_v15, %v2818_v24  ;;  %v2949_v35 = vsel %vm2437_vm12, %v1483_v18, %v2693_v29  ;;  %v2819_v37 = vmul.f32 0.2, %v1987_v21  ;;  %v1496_v38 = vadd.f32 %v6205_v8, %v7116_v46 }
 0x161   : > { %v3077_v36 = vsel %vm2565_vm13, %v1995_v19, %v2821_v30  ;;  %v5318_v39 = vpack.c.bf16 %v2949_v35, %v2948_v12  ;;  %v2947_v41 = vsel %vm2435_vm14, %v1475_v20, %v2691_v32  ;;  %v2008_v42 = vadd.f32 %v6333_v9, %v7116_v46  ;;  %v6209_v43 = vpop.f32.mrf.mxu0  ;;  %v6337_v44 = vpop.f32.mrf.mxu1 }
 0x162   : > { %v5638_v40 = vpack.c.bf16 %v3077_v36, %v3076_v22  ;;  %6304 = vmatmul.mubr.bf16.gmra.mxu0 %v6672_v27  ;;  %v5313_v45 = vpack.c.bf16 %v2947_v41, %v2946_v23  ;;  %v3075_v47 = vsel %vm2563_vm15, %v1987_v21, %v2819_v37  ;;  %vm2440_vm0 = vcmp.gt.f32.partialorder %v1496_v38, 0.0 }
 0x163   : > { %v2696_v48 = vmul.f32 0.2, %v1496_v38  ;;  %6432 = vmatmul.mubr.bf16.gmra.mxu1 %v6673_v28  ;;  %5910 = vst [vmem:[%s7135_s20 + $0x58] sm:$0xff] %v5318_v39   ;;  %v5633_v49 = vpack.c.bf16 %v3075_v47, %v3074_v31  ;;  %vm2568_vm1 = vcmp.gt.f32.partialorder %v2008_v42, 0.0  ;;  %v2824_v50 = vmul.f32 0.2, %v2008_v42  ;;  %v1503_v52 = vpop.f32.mrf.mxu0  ;;  %v2015_v53 = vpop.f32.mrf.mxu1 }
 0x164   : > { %5974 = vst [vmem:[%s7135_s20 + $0x258] sm:$0xff] %v5638_v40   ;;  %v1488_v51 = vadd.f32 %v7116_v46, %v1487_v16  ;;  %5909 = vst [vmem:[%s7135_s20 + $0x50] sm:$0xff] %v5313_v45   ;;  %v2000_v55 = vadd.f32 %v7116_v46, %v1999_v17  ;;  %v1499_v56 = vadd.f32 %v6206_v25, %v7116_v46 }
 0x165   : > { %v2952_v54 = vsel %vm2440_vm0, %v1496_v38, %v2696_v48  ;;  %v2011_v57 = vadd.f32 %v6334_v26, %v7116_v46  ;;  %5973 = vst [vmem:[%s7135_s20 + $0x250] sm:$0xff] %v5633_v49   ;;  %v3080_v58 = vsel %vm2568_vm1, %v2008_v42, %v2824_v50  ;;  %v1491_v60 = vadd.f32 %v7116_v46, %v1490_v33  ;;  %v6210_v61 = vpop.f32.mrf.mxu0  ;;  %v6338_v62 = vpop.f32.mrf.mxu1 }
 0x166   : > { %vm2438_vm2 = vcmp.gt.f32.partialorder %v1488_v51, 0.0  ;;  %v2694_v59 = vmul.f32 0.2, %v1488_v51  ;;  %vm2566_vm3 = vcmp.gt.f32.partialorder %v2000_v55, 0.0  ;;  %v2822_v63 = vmul.f32 0.2, %v2000_v55 }
 0x167   : > { %vm2441_vm4 = vcmp.gt.f32.partialorder %v1499_v56, 0.0  ;;  %v2697_v0 = vmul.f32 0.2, %v1499_v56  ;;  %vm2569_vm5 = vcmp.gt.f32.partialorder %v2011_v57, 0.0  ;;  %v2825_v2 = vmul.f32 0.2, %v2011_v57  ;;  %v1506_v3 = vpop.f32.mrf.mxu0  ;;  %v2018_v4 = vpop.f32.mrf.mxu1 }
 0x168   : > { %v2950_v1 = vsel %vm2438_vm2, %v1488_v51, %v2694_v59  ;;  %vm2439_vm6 = vcmp.gt.f32.partialorder %v1491_v60, 0.0  ;;  %v3078_v5 = vsel %vm2566_vm3, %v2000_v55, %v2822_v63  ;;  %v2695_v7 = vmul.f32 0.2, %v1491_v60 }
 0x169   : > { %v2953_v6 = vsel %vm2441_vm4, %v1499_v56, %v2697_v0  ;;  %v2003_v8 = vadd.f32 %v7116_v46, %v2002_v34  ;;  %v3081_v10 = vsel %vm2569_vm5, %v2011_v57, %v2825_v2  ;;  %v1512_v11 = vadd.f32 %v6209_v43, %v7116_v46  ;;  %v6213_v13 = vpop.f32.mrf.mxu0  ;;  %v6341_v14 = vpop.f32.mrf.mxu1 }
 0x16a   : > { %v5328_v9 = vpack.c.bf16 %v2953_v6, %v2952_v54  ;;  %v2024_v12 = vadd.f32 %v6337_v44, %v7116_v46  ;;  %v5648_v15 = vpack.c.bf16 %v3081_v10, %v3080_v58  ;;  %v2951_v16 = vsel %vm2439_vm6, %v1491_v60, %v2695_v7 }
 0x16b   : > { %vm2567_vm7 = vcmp.gt.f32.partialorder %v2003_v8, 0.0  ;;  %v2823_v17 = vmul.f32 0.2, %v2003_v8  ;;  %v5323_v18 = vpack.c.bf16 %v2951_v16, %v2950_v1  ;;  %vm2444_vm8 = vcmp.gt.f32.partialorder %v1512_v11, 0.0  ;;  %v1519_v20 = vpop.f32.mrf.mxu0  ;;  %v2031_v21 = vpop.f32.mrf.mxu1 }
 0x16c   : > { %5912 = vst [vmem:[%s7135_s20 + $0x68] sm:$0xff] %v5328_v9   ;;  %v2700_v19 = vmul.f32 0.2, %v1512_v11  ;;  %vm2572_vm9 = vcmp.gt.f32.partialorder %v2024_v12, 0.0  ;;  %5976 = vst [vmem:[%s7135_s20 + $0x268] sm:$0xff] %v5648_v15   ;;  %v1504_v24 = vadd.f32 %v7116_v46, %v1503_v52  ;;  %v2016_v25 = vadd.f32 %v7116_v46, %v2015_v53 }
 0x16d   : > { %v3079_v22 = vsel %vm2567_vm7, %v2003_v8, %v2823_v17  ;;  %v2828_v23 = vmul.f32 0.2, %v2024_v12  ;;  %5911 = vst [vmem:[%s7135_s20 + $0x60] sm:$0xff] %v5323_v18   ;;  %v1515_v28 = vadd.f32 %v6210_v61, %v7116_v46  ;;  %v2027_v29 = vadd.f32 %v6338_v62, %v7116_v46  ;;  %v6214_v30 = vpop.f32.mrf.mxu0  ;;  %v6342_v31 = vpop.f32.mrf.mxu1 }
 0x16e   : > { %v5643_v26 = vpack.c.bf16 %v3079_v22, %v3078_v5  ;;  %v2956_v27 = vsel %vm2444_vm8, %v1512_v11, %v2700_v19  ;;  %vm2442_vm10 = vcmp.gt.f32.partialorder %v1504_v24, 0.0  ;;  %v2698_v33 = vmul.f32 0.2, %v1504_v24 }
 0x16f   : > { %v3084_v32 = vsel %vm2572_vm9, %v2024_v12, %v2828_v23  ;;  %vm2570_vm11 = vcmp.gt.f32.partialorder %v2016_v25, 0.0  ;;  %v2826_v34 = vmul.f32 0.2, %v2016_v25  ;;  %vm2445_vm12 = vcmp.gt.f32.partialorder %v1515_v28, 0.0  ;;  %v1522_v36 = vpop.f32.mrf.mxu0  ;;  %v2034_v37 = vpop.f32.mrf.mxu1 }
 0x170   : > { %5975 = vst [vmem:[%s7135_s20 + $0x260] sm:$0xff] %v5643_v26   ;;  %v2701_v35 = vmul.f32 0.2, %v1515_v28  ;;  %vm2573_vm13 = vcmp.gt.f32.partialorder %v2027_v29, 0.0  ;;  %v2954_v38 = vsel %vm2442_vm10, %v1504_v24, %v2698_v33  ;;  %v2829_v39 = vmul.f32 0.2, %v2027_v29 }
 0x171   : > { %v1507_v40 = vadd.f32 %v7116_v46, %v1506_v3  ;;  %v2019_v41 = vadd.f32 %v7116_v46, %v2018_v4  ;;  %v3082_v42 = vsel %vm2570_vm11, %v2016_v25, %v2826_v34  ;;  %v1528_v44 = vadd.f32 %v6213_v13, %v7116_v46  ;;  %v6217_v47 = vpop.f32.mrf.mxu0  ;;  %v6345_v48 = vpop.f32.mrf.mxu1 }
 0x172   : > { %v2957_v43 = vsel %vm2445_vm12, %v1515_v28, %v2701_v35  ;;  %v2040_v45 = vadd.f32 %v6341_v14, %v7116_v46  ;;  %v3085_v50 = vsel %vm2573_vm13, %v2027_v29, %v2829_v39  ;;  %v1520_v61 = vadd.f32 %v7116_v46, %v1519_v20  ;;  %v7276_v39 = vld [vmem:[#allocation7] ss:$0 sm:$0xff] }
 0x173   : > { %v5338_v49 = vpack.c.bf16 %v2957_v43, %v2956_v27  ;;  %vm2443_vm14 = vcmp.gt.f32.partialorder %v1507_v40, 0.0  ;;  %v2699_v51 = vmul.f32 0.2, %v1507_v40  ;;  %v5658_v52 = vpack.c.bf16 %v3085_v50, %v3084_v32  ;;  %v1535_v54 = vpop.f32.mrf.mxu0  ;;  %v7252_v55 = vpop.f32.mrf.mxu1 }
 0x174   : > { %vm2571_vm15 = vcmp.gt.f32.partialorder %v2019_v41, 0.0  ;;  %v2827_v53 = vmul.f32 0.2, %v2019_v41  ;;  %vm2448_vm0 = vcmp.gt.f32.partialorder %v1528_v44, 0.0  ;;  %v2704_v57 = vmul.f32 0.2, %v1528_v44 }
 0x175   : > { %5914 = vst [vmem:[%s7135_s20 + $0x78] sm:$0xff] %v5338_v49   ;;  %v2955_v56 = vsel %vm2443_vm14, %v1507_v40, %v2699_v51  ;;  %vm2576_vm1 = vcmp.gt.f32.partialorder %v2040_v45, 0.0  ;;  %v2832_v58 = vmul.f32 0.2, %v2040_v45  ;;  %5978 = vst [vmem:[%s7135_s20 + $0x278] sm:$0xff] %v5658_v52   ;;  %v2032_v62 = vadd.f32 %v7116_v46, %v2031_v21  ;;  %v6218_v63 = vpop.f32.mrf.mxu0  ;;  %v6346_v0 = vpop.f32.mrf.mxu1 }
 0x176   : > { %v5333_v59 = vpack.c.bf16 %v2955_v56, %v2954_v38  ;;  %v3083_v60 = vsel %vm2571_vm15, %v2019_v41, %v2827_v53  ;;  %v2960_v2 = vsel %vm2448_vm0, %v1528_v44, %v2704_v57  ;;  %v1531_v4 = vadd.f32 %v6214_v30, %v7116_v46 }
 0x177   : > { %v5653_v1 = vpack.c.bf16 %v3083_v60, %v3082_v42  ;;  %v3088_v3 = vsel %vm2576_vm1, %v2040_v45, %v2832_v58  ;;  %vm2446_vm2 = vcmp.gt.f32.partialorder %v1520_v61, 0.0  ;;  %v2702_v5 = vmul.f32 0.2, %v1520_v61  ;;  %v1538_v7 = vpop.f32.mrf.mxu0  ;;  %v2050_v8 = vpop.f32.mrf.mxu1 }
 0x178   : > { %5913 = vst [vmem:[%s7135_s20 + $0x70] sm:$0xff] %v5333_v59   ;;  %vm2574_vm3 = vcmp.gt.f32.partialorder %v2032_v62, 0.0  ;;  %v2830_v6 = vmul.f32 0.2, %v2032_v62  ;;  %vm2449_vm4 = vcmp.gt.f32.partialorder %v1531_v4, 0.0  ;;  %v2043_v10 = vadd.f32 %v6342_v31, %v7116_v46 }
 0x179   : > { %5977 = vst [vmem:[%s7135_s20 + $0x270] sm:$0xff] %v5653_v1   ;;  %v2705_v9 = vmul.f32 0.2, %v1531_v4  ;;  %v1523_v11 = vadd.f32 %v7116_v46, %v1522_v36  ;;  %v2958_v12 = vsel %vm2446_vm2, %v1520_v61, %v2702_v5  ;;  %v2035_v14 = vadd.f32 %v7116_v46, %v2034_v37  ;;  %v6221_v16 = vpop.f32.mrf.mxu0  ;;  %v7266_v17 = vpop.f32.mrf.mxu1 }
 0x17a   : > { %v3086_v13 = vsel %vm2574_vm3, %v2032_v62, %v2830_v6  ;;  %v1544_v15 = vadd.f32 %v6217_v47, %v7116_v46  ;;  %vm2577_vm5 = vcmp.gt.f32.partialorder %v2043_v10, 0.0  ;;  %v2833_v19 = vmul.f32 0.2, %v2043_v10 }
 0x17b   : > { %v2961_v18 = vsel %vm2449_vm4, %v1531_v4, %v2705_v9  ;;  %vm2447_vm6 = vcmp.gt.f32.partialorder %v1523_v11, 0.0  ;;  %v2703_v21 = vmul.f32 0.2, %v1523_v11  ;;  %vm2575_vm7 = vcmp.gt.f32.partialorder %v2035_v14, 0.0  ;;  %v7268_v23 = vpop.f32.mrf.mxu0  ;;  %v7270_v24 = vpop.f32.mrf.mxu1 }
 0x17c   : > { %v5348_v20 = vpack.c.bf16 %v2961_v18, %v2960_v2  ;;  %v2831_v22 = vmul.f32 0.2, %v2035_v14  ;;  %v3089_v25 = vsel %vm2577_vm5, %v2043_v10, %v2833_v19  ;;  %vm2452_vm8 = vcmp.gt.f32.partialorder %v1544_v15, 0.0 }
 0x17d   : > { %v2708_v26 = vmul.f32 0.2, %v1544_v15  ;;  %v2056_v27 = vadd.f32 %v6345_v48, %v7116_v46  ;;  %v5668_v28 = vpack.c.bf16 %v3089_v25, %v3088_v3  ;;  %v2959_v29 = vsel %vm2447_vm6, %v1523_v11, %v2703_v21  ;;  %v6222_v32 = vpop.f32.mrf.mxu0  ;;  %v6350_v33 = vpop.f32.mrf.mxu1 }
 0x17e   : > { %5916 = vst [vmem:[%s7135_s20 + $0x88] sm:$0xff] %v5348_v20   ;;  %v3087_v30 = vsel %vm2575_vm7, %v2035_v14, %v2831_v22  ;;  %v1536_v31 = vadd.f32 %v7116_v46, %v1535_v54  ;;  %v5343_v34 = vpack.c.bf16 %v2959_v29, %v2958_v12  ;;  %v2048_v40 = vadd.f32 %v7276_v39, %v7252_v55 }
 0x17f   : > { %v5663_v35 = vpack.c.bf16 %v3087_v30, %v3086_v13  ;;  %v2964_v36 = vsel %vm2452_vm8, %v1544_v15, %v2708_v26  ;;  %vm2580_vm9 = vcmp.gt.f32.partialorder %v2056_v27, 0.0  ;;  %5980 = vst [vmem:[%s7135_s20 + $0x288] sm:$0xff] %v5668_v28   ;;  %v2836_v37 = vmul.f32 0.2, %v2056_v27  ;;  %v1554_v41 = vpop.f32.mrf.mxu0  ;;  %v7280_v42 = vpop.f32.mrf.mxu1 }
 0x180   : > { %vm2450_vm10 = vcmp.gt.f32.partialorder %v1536_v31, 0.0  ;;  %v2706_v38 = vmul.f32 0.2, %v1536_v31  ;;  %5915 = vst [vmem:[%s7135_s20 + $0x80] sm:$0xff] %v5343_v34   ;;  %v1547_v46 = vadd.f32 %v7276_v39, %v6218_v63  ;;  %v2059_v43 = vadd.f32 %v7276_v39, %v6346_v0 }
 0x181   : > { %5979 = vst [vmem:[%s7135_s20 + $0x280] sm:$0xff] %v5663_v35   ;;  %v1539_v44 = vadd.f32 %v7276_v39, %v1538_v7  ;;  %v2051_v45 = vadd.f32 %v7276_v39, %v2050_v8  ;;  %v3092_v47 = vsel %vm2580_vm9, %v2056_v27, %v2836_v37  ;;  %vm2578_vm11 = vcmp.gt.f32.partialorder %v2048_v40, 0.0  ;;  %v7288_v50 = vpop.f32.mrf.mxu0  ;;  %v6353_v51 = vpop.f32.mrf.mxu1 }
 0x182   : > { %v2962_v48 = vsel %vm2450_vm10, %v1536_v31, %v2706_v38  ;;  %v2834_v49 = vmul.f32 0.2, %v2048_v40  ;;  %vm2453_vm12 = vcmp.gt.f32.partialorder %v1547_v46, 0.0  ;;  %v2709_v52 = vmul.f32 0.2, %v1547_v46 }
 0x183   : > { %vm2581_vm13 = vcmp.gt.f32.partialorder %v2059_v43, 0.0  ;;  %v2837_v53 = vmul.f32 0.2, %v2059_v43  ;;  %vm2451_vm14 = vcmp.gt.f32.partialorder %v1539_v44, 0.0  ;;  %v2707_v55 = vmul.f32 0.2, %v1539_v44  ;;  %v7290_v56 = vpop.f32.mrf.mxu0  ;;  %v7292_v57 = vpop.f32.mrf.mxu1 }
 0x184   : > { %v3090_v54 = vsel %vm2578_vm11, %v2048_v40, %v2834_v49  ;;  %vm2579_vm15 = vcmp.gt.f32.partialorder %v2051_v45, 0.0  ;;  %v2965_v58 = vsel %vm2453_vm12, %v1547_v46, %v2709_v52  ;;  %v2835_v60 = vmul.f32 0.2, %v2051_v45 }
 0x185   : > { %v3093_v59 = vsel %vm2581_vm13, %v2059_v43, %v2837_v53  ;;  %v1560_v61 = vadd.f32 %v7276_v39, %v6221_v16  ;;  %v5358_v62 = vpack.c.bf16 %v2965_v58, %v2964_v36  ;;  %v2963_v0 = vsel %vm2451_vm14, %v1539_v44, %v2707_v55  ;;  %v7297_v2 = vpop.f32.mrf.mxu0  ;;  %v7299_v3 = vpop.f32.mrf.mxu1 }
 0x186   : > { %v5678_v63 = vpack.c.bf16 %v3093_v59, %v3092_v47  ;;  %v2072_v1 = vadd.f32 %v7276_v39, %v7266_v17  ;;  %v5353_v4 = vpack.c.bf16 %v2963_v0, %v2962_v48  ;;  %v3091_v5 = vsel %vm2579_vm15, %v2051_v45, %v2835_v60 }
 0x187   : > { %vm2456_vm0 = vcmp.gt.f32.partialorder %v1560_v61, 0.0  ;;  %v2712_v6 = vmul.f32 0.2, %v1560_v61  ;;  %5918 = vst [vmem:[%s7135_s20 + $0x98] sm:$0xff] %v5358_v62   ;;  %v5673_v7 = vpack.c.bf16 %v3091_v5, %v3090_v54  ;;  %v1552_v9 = vadd.f32 %v7276_v39, %v7268_v23  ;;  %v7305_v10 = vpop.f32.mrf.mxu0  ;;  %v7307_v11 = vpop.f32.mrf.mxu1 }
 0x188   : > { %5982 = vst [vmem:[%s7135_s20 + $0x298] sm:$0xff] %v5678_v63   ;;  %vm2584_vm1 = vcmp.gt.f32.partialorder %v2072_v1, 0.0  ;;  %v2840_v8 = vmul.f32 0.2, %v2072_v1  ;;  %5917 = vst [vmem:[%s7135_s20 + $0x90] sm:$0xff] %v5353_v4   ;;  %v2064_v13 = vadd.f32 %v7276_v39, %v7270_v24  ;;  %v1563_v14 = vadd.f32 %v7276_v39, %v6222_v32 }
 0x189   : > { %v2968_v12 = vsel %vm2456_vm0, %v1560_v61, %v2712_v6  ;;  %v2075_v15 = vadd.f32 %v7276_v39, %v6350_v33  ;;  %5981 = vst [vmem:[%s7135_s20 + $0x290] sm:$0xff] %v5673_v7   ;;  %vm2454_vm2 = vcmp.gt.f32.partialorder %v1552_v9, 0.0  ;;  %v2710_v17 = vmul.f32 0.2, %v1552_v9  ;;  %v7316_v19 = vpop.f32.mrf.mxu0  ;;  %v6357_v20 = vpop.f32.mrf.mxu1 }
 0x18a   : > { %v3096_v16 = vsel %vm2584_vm1, %v2072_v1, %v2840_v8  ;;  %v1555_v18 = vadd.f32 %v7276_v39, %v1554_v41  ;;  %vm2582_vm3 = vcmp.gt.f32.partialorder %v2064_v13, 0.0  ;;  %v2838_v21 = vmul.f32 0.2, %v2064_v13 }
 0x18b   : > { %vm2457_vm4 = vcmp.gt.f32.partialorder %v1563_v14, 0.0  ;;  %v2713_v22 = vmul.f32 0.2, %v1563_v14  ;;  %v2966_v23 = vsel %vm2454_vm2, %v1552_v9, %v2710_v17  ;;  %vm2585_vm5 = vcmp.gt.f32.partialorder %v2075_v15, 0.0  ;;  %v7318_v25 = vpop.f32.mrf.mxu0  ;;  %v7320_v26 = vpop.f32.mrf.mxu1 }
 0x18c   : > { %v2841_v24 = vmul.f32 0.2, %v2075_v15  ;;  %vm2455_vm6 = vcmp.gt.f32.partialorder %v1555_v18, 0.0  ;;  %v3094_v27 = vsel %vm2582_vm3, %v2064_v13, %v2838_v21  ;;  %v2711_v29 = vmul.f32 0.2, %v1555_v18 }
 0x18d   : > { %v2969_v28 = vsel %vm2457_vm4, %v1563_v14, %v2713_v22  ;;  %v2067_v30 = vadd.f32 %v7276_v39, %v7280_v42  ;;  %v1576_v33 = vadd.f32 %v7276_v39, %v7288_v50  ;;  %v2088_v34 = vadd.f32 %v7276_v39, %v6353_v51  ;;  %v7327_v35 = vpop.f32.mrf.mxu0  ;;  %v7329_v36 = vpop.f32.mrf.mxu1 }
 0x18e   : > { %v5368_v31 = vpack.c.bf16 %v2969_v28, %v2968_v12  ;;  %v3097_v32 = vsel %vm2585_vm5, %v2075_v15, %v2841_v24  ;;  %v2967_v38 = vsel %vm2455_vm6, %v1555_v18, %v2711_v29  ;;  %v1568_v47 = vadd.f32 %v7276_v39, %v7290_v56 }
 0x18f   : > { %v5688_v37 = vpack.c.bf16 %v3097_v32, %v3096_v16  ;;  %vm2583_vm7 = vcmp.gt.f32.partialorder %v2067_v30, 0.0  ;;  %v2839_v40 = vmul.f32 0.2, %v2067_v30  ;;  %v5363_v41 = vpack.c.bf16 %v2967_v38, %v2966_v23  ;;  %v7332_v46 = vpop.f32.mrf.mxu0  ;;  %v7334_v43 = vpop.f32.mrf.mxu1 }
 0x190   : > { %5920 = vst [vmem:[%s7135_s20 + $0xa8] sm:$0xff] %v5368_v31   ;;  %vm2460_vm8 = vcmp.gt.f32.partialorder %v1576_v33, 0.0  ;;  %v2716_v42 = vmul.f32 0.2, %v1576_v33  ;;  %vm2588_vm9 = vcmp.gt.f32.partialorder %v2088_v34, 0.0  ;;  %v2080_v48 = vadd.f32 %v7276_v39, %v7292_v57 }
 0x191   : > { %5984 = vst [vmem:[%s7135_s20 + $0x2a8] sm:$0xff] %v5688_v37   ;;  %v3095_v44 = vsel %vm2583_vm7, %v2067_v30, %v2839_v40  ;;  %v2844_v45 = vmul.f32 0.2, %v2088_v34  ;;  %5919 = vst [vmem:[%s7135_s20 + $0xa0] sm:$0xff] %v5363_v41   ;;  %v1579_v51 = vadd.f32 %v7276_v39, %v7297_v2  ;;  %v2091_v52 = vadd.f32 %v7276_v39, %v7299_v3  ;;  %v7346_v53 = vpop.f32.mrf.mxu0  ;;  %v7348_v54 = vpop.f32.mrf.mxu1 }
 0x192   : > { %v5683_v49 = vpack.c.bf16 %v3095_v44, %v3094_v27  ;;  %v2972_v50 = vsel %vm2460_vm8, %v1576_v33, %v2716_v42  ;;  %vm2458_vm10 = vcmp.gt.f32.partialorder %v1568_v47, 0.0  ;;  %v2714_v58 = vmul.f32 0.2, %v1568_v47 }
 0x193   : > { %v3100_v55 = vsel %vm2588_vm9, %v2088_v34, %v2844_v45  ;;  %vm2586_vm11 = vcmp.gt.f32.partialorder %v2080_v48, 0.0  ;;  %v2842_v56 = vmul.f32 0.2, %v2080_v48  ;;  %vm2461_vm12 = vcmp.gt.f32.partialorder %v1579_v51, 0.0  ;;  %v7351_v59 = vpop.f32.mrf.mxu0  ;;  %v7353_v60 = vpop.f32.mrf.mxu1 }
 0x194   : > { %5983 = vst [vmem:[%s7135_s20 + $0x2a0] sm:$0xff] %v5683_v49   ;;  %v2717_v57 = vmul.f32 0.2, %v1579_v51  ;;  %vm2589_vm13 = vcmp.gt.f32.partialorder %v2091_v52, 0.0  ;;  %v2970_v61 = vsel %vm2458_vm10, %v1568_v47, %v2714_v58  ;;  %v2845_v62 = vmul.f32 0.2, %v2091_v52 }
 0x195   : > { %v1571_v63 = vadd.f32 %v7276_v39, %v7305_v10  ;;  %v2083_v0 = vadd.f32 %v7276_v39, %v7307_v11  ;;  %v3098_v1 = vsel %vm2586_vm11, %v2080_v48, %v2842_v56  ;;  %v1592_v3 = vadd.f32 %v7276_v39, %v7316_v19  ;;  %v7362_v5 = vpop.f32.mrf.mxu0  ;;  %v7364_v6 = vpop.f32.mrf.mxu1 }
 0x196   : > { %v2973_v2 = vsel %vm2461_vm12, %v1579_v51, %v2717_v57  ;;  %v2104_v4 = vadd.f32 %v7276_v39, %v6357_v20  ;;  %v3101_v8 = vsel %vm2589_vm13, %v2091_v52, %v2845_v62  ;;  %v1584_v19 = vadd.f32 %v7276_v39, %v7318_v25 }
 0x197   : > { %v5378_v7 = vpack.c.bf16 %v2973_v2, %v2972_v50  ;;  %vm2459_vm14 = vcmp.gt.f32.partialorder %v1571_v63, 0.0  ;;  %v2715_v9 = vmul.f32 0.2, %v1571_v63  ;;  %v5698_v10 = vpack.c.bf16 %v3101_v8, %v3100_v55  ;;  %v7366_v12 = vpop.f32.mrf.mxu0  ;;  %v7368_v13 = vpop.f32.mrf.mxu1 }
 0x198   : > { %vm2587_vm15 = vcmp.gt.f32.partialorder %v2083_v0, 0.0  ;;  %v2843_v11 = vmul.f32 0.2, %v2083_v0  ;;  %vm2464_vm0 = vcmp.gt.f32.partialorder %v1592_v3, 0.0  ;;  %v2720_v15 = vmul.f32 0.2, %v1592_v3 }
 0x199   : > { %5922 = vst [vmem:[%s7135_s20 + $0xb8] sm:$0xff] %v5378_v7   ;;  %v2971_v14 = vsel %vm2459_vm14, %v1571_v63, %v2715_v9  ;;  %vm2592_vm1 = vcmp.gt.f32.partialorder %v2104_v4, 0.0  ;;  %v2848_v16 = vmul.f32 0.2, %v2104_v4  ;;  %5986 = vst [vmem:[%s7135_s20 + $0x2b8] sm:$0xff] %v5698_v10   ;;  %v2096_v20 = vadd.f32 %v7276_v39, %v7320_v26  ;;  %v7376_v21 = vpop.f32.mrf.mxu0  ;;  %v7378_v22 = vpop.f32.mrf.mxu1 }
 0x19a   : > { %v5373_v17 = vpack.c.bf16 %v2971_v14, %v2970_v61  ;;  %v3099_v18 = vsel %vm2587_vm15, %v2083_v0, %v2843_v11  ;;  %v2976_v24 = vsel %vm2464_vm0, %v1592_v3, %v2720_v15  ;;  %v1595_v28 = vadd.f32 %v7276_v39, %v7327_v35 }
 0x19b   : > { %v5693_v23 = vpack.c.bf16 %v3099_v18, %v3098_v1  ;;  %v3104_v27 = vsel %vm2592_vm1, %v2104_v4, %v2848_v16  ;;  %vm2462_vm2 = vcmp.gt.f32.partialorder %v1584_v19, 0.0  ;;  %v2718_v29 = vmul.f32 0.2, %v1584_v19  ;;  %v7384_v25 = vpop.f32.mrf.mxu0  ;;  %v7386_v31 = vpop.f32.mrf.mxu1 }
 0x19c   : > { %5921 = vst [vmem:[%s7135_s20 + $0xb0] sm:$0xff] %v5373_v17   ;;  %vm2590_vm3 = vcmp.gt.f32.partialorder %v2096_v20, 0.0  ;;  %v2846_v30 = vmul.f32 0.2, %v2096_v20  ;;  %vm2465_vm4 = vcmp.gt.f32.partialorder %v1595_v28, 0.0  ;;  %v2107_v32 = vadd.f32 %v7276_v39, %v7329_v36 }
 0x19d   : > { %5985 = vst [vmem:[%s7135_s20 + $0x2b0] sm:$0xff] %v5693_v23   ;;  %v2721_v26 = vmul.f32 0.2, %v1595_v28  ;;  %v1587_v33 = vadd.f32 %v7276_v39, %v7332_v46  ;;  %v2974_v34 = vsel %vm2462_vm2, %v1584_v19, %v2718_v29  ;;  %v2099_v37 = vadd.f32 %v7276_v39, %v7334_v43  ;;  %v7397_v40 = vpop.f32.mrf.mxu0  ;;  %v7399_v41 = vpop.f32.mrf.mxu1 }
 0x19e   : > { %v3102_v35 = vsel %vm2590_vm3, %v2096_v20, %v2846_v30  ;;  %v1608_v38 = vadd.f32 %v7276_v39, %v7346_v53  ;;  %vm2593_vm5 = vcmp.gt.f32.partialorder %v2107_v32, 0.0  ;;  %v2849_v44 = vmul.f32 0.2, %v2107_v32 }
 0x19f   : > { %v2977_v42 = vsel %vm2465_vm4, %v1595_v28, %v2721_v26  ;;  %vm2463_vm6 = vcmp.gt.f32.partialorder %v1587_v33, 0.0  ;;  %v2719_v45 = vmul.f32 0.2, %v1587_v33  ;;  %vm2591_vm7 = vcmp.gt.f32.partialorder %v2099_v37, 0.0  ;;  %v7401_v47 = vpop.f32.mrf.mxu0  ;;  %v7403_v48 = vpop.f32.mrf.mxu1 }
 0x1a0   : > { %v5388_v36 = vpack.c.bf16 %v2977_v42, %v2976_v24  ;;  %v2847_v46 = vmul.f32 0.2, %v2099_v37  ;;  %v3105_v43 = vsel %vm2593_vm5, %v2107_v32, %v2849_v44  ;;  %vm2468_vm8 = vcmp.gt.f32.partialorder %v1608_v38, 0.0 }
 0x1a1   : > { %v2724_v49 = vmul.f32 0.2, %v1608_v38  ;;  %v2120_v50 = vadd.f32 %v7276_v39, %v7348_v54  ;;  %v5708_v51 = vpack.c.bf16 %v3105_v43, %v3104_v27  ;;  %v2975_v52 = vsel %vm2463_vm6, %v1587_v33, %v2719_v45  ;;  %v7410_v58 = vpop.f32.mrf.mxu0  ;;  %v7412_v56 = vpop.f32.mrf.mxu1 }
 0x1a2   : > { %5924 = vst [vmem:[%s7135_s20 + $0xc8] sm:$0xff] %v5388_v36   ;;  %v3103_v53 = vsel %vm2591_vm7, %v2099_v37, %v2847_v46  ;;  %v1600_v55 = vadd.f32 %v7276_v39, %v7351_v59  ;;  %v5383_v57 = vpack.c.bf16 %v2975_v52, %v2974_v34  ;;  %v2112_v0 = vadd.f32 %v7276_v39, %v7353_v60 }
 0x1a3   : > { %v5703_v61 = vpack.c.bf16 %v3103_v53, %v3102_v35  ;;  %v2980_v62 = vsel %vm2468_vm8, %v1608_v38, %v2724_v49  ;;  %vm2596_vm9 = vcmp.gt.f32.partialorder %v2120_v50, 0.0  ;;  %5988 = vst [vmem:[%s7135_s20 + $0x2c8] sm:$0xff] %v5708_v51   ;;  %v2852_v63 = vmul.f32 0.2, %v2120_v50  ;;  %v7417_v1 = vpop.f32.mrf.mxu0  ;;  %v7419_v2 = vpop.f32.mrf.mxu1 }
 0x1a4   : > { %vm2466_vm10 = vcmp.gt.f32.partialorder %v1600_v55, 0.0  ;;  %v2722_v54 = vmul.f32 0.2, %v1600_v55  ;;  %5923 = vst [vmem:[%s7135_s20 + $0xc0] sm:$0xff] %v5383_v57   ;;  %v1611_v59 = vadd.f32 %v7276_v39, %v7362_v5  ;;  %v2123_v3 = vadd.f32 %v7276_v39, %v7364_v6 }
 0x1a5   : > { %5987 = vst [vmem:[%s7135_s20 + $0x2c0] sm:$0xff] %v5703_v61   ;;  %v1603_v4 = vadd.f32 %v7276_v39, %v7366_v12  ;;  %v2115_v7 = vadd.f32 %v7276_v39, %v7368_v13  ;;  %v3108_v8 = vsel %vm2596_vm9, %v2120_v50, %v2852_v63  ;;  %vm2594_vm11 = vcmp.gt.f32.partialorder %v2112_v0, 0.0  ;;  %v7431_v10 = vpop.f32.mrf.mxu0  ;;  %v7433_v11 = vpop.f32.mrf.mxu1 }
 0x1a6   : > { %v2978_v60 = vsel %vm2466_vm10, %v1600_v55, %v2722_v54  ;;  %v2850_v9 = vmul.f32 0.2, %v2112_v0  ;;  %vm2469_vm12 = vcmp.gt.f32.partialorder %v1611_v59, 0.0  ;;  %v2725_v14 = vmul.f32 0.2, %v1611_v59 }
 0x1a7   : > { %vm2597_vm13 = vcmp.gt.f32.partialorder %v2123_v3, 0.0  ;;  %v2853_v5 = vmul.f32 0.2, %v2123_v3  ;;  %vm2467_vm14 = vcmp.gt.f32.partialorder %v1603_v4, 0.0  ;;  %v2723_v6 = vmul.f32 0.2, %v1603_v4  ;;  %v7435_v12 = vpop.f32.mrf.mxu0  ;;  %v7437_v13 = vpop.f32.mrf.mxu1 }
 0x1a8   : > { %v3106_v15 = vsel %vm2594_vm11, %v2112_v0, %v2850_v9  ;;  %vm2595_vm15 = vcmp.gt.f32.partialorder %v2115_v7, 0.0  ;;  %v2981_v16 = vsel %vm2469_vm12, %v1611_v59, %v2725_v14  ;;  %v2851_v18 = vmul.f32 0.2, %v2115_v7 }
 0x1a9   : > { %v3109_v17 = vsel %vm2597_vm13, %v2123_v3, %v2853_v5  ;;  %v1624_v19 = vadd.f32 %v7276_v39, %v7376_v21  ;;  %v5398_v20 = vpack.c.bf16 %v2981_v16, %v2980_v62  ;;  %v2979_v24 = vsel %vm2467_vm14, %v1603_v4, %v2723_v6  ;;  %v7443_v28 = vpop.f32.mrf.mxu0  ;;  %v7445_v29 = vpop.f32.mrf.mxu1 }
 0x1aa   : > { %v5718_v23 = vpack.c.bf16 %v3109_v17, %v3108_v8  ;;  %v2136_v27 = vadd.f32 %v7276_v39, %v7378_v22  ;;  %v5393_v30 = vpack.c.bf16 %v2979_v24, %v2978_v60  ;;  %v3107_v26 = vsel %vm2595_vm15, %v2115_v7, %v2851_v18 }
 0x1ab   : > { %vm2472_vm0 = vcmp.gt.f32.partialorder %v1624_v19, 0.0  ;;  %v2728_v32 = vmul.f32 0.2, %v1624_v19  ;;  %5926 = vst [vmem:[%s7135_s20 + $0xd8] sm:$0xff] %v5398_v20   ;;  %v5713_v33 = vpack.c.bf16 %v3107_v26, %v3106_v15  ;;  %v1616_v34 = vadd.f32 %v7276_v39, %v7384_v25  ;;  %v7451_v35 = vpop.f32.mrf.mxu0  ;;  %v7453_v22 = vpop.f32.mrf.mxu1 }
 0x1ac   : > { %5990 = vst [vmem:[%s7135_s20 + $0x2d8] sm:$0xff] %v5718_v23   ;;  %vm2600_vm1 = vcmp.gt.f32.partialorder %v2136_v27, 0.0  ;;  %v2856_v21 = vmul.f32 0.2, %v2136_v27  ;;  %5925 = vst [vmem:[%s7135_s20 + $0xd0] sm:$0xff] %v5393_v30   ;;  %v2128_v38 = vadd.f32 %v7276_v39, %v7386_v31  ;;  %v1627_v42 = vadd.f32 %v7276_v39, %v7397_v40 }
 0x1ad   : > { %v2984_v37 = vsel %vm2472_vm0, %v1624_v19, %v2728_v32  ;;  %v2139_v44 = vadd.f32 %v7276_v39, %v7399_v41  ;;  %5989 = vst [vmem:[%s7135_s20 + $0x2d0] sm:$0xff] %v5713_v33   ;;  %vm2470_vm2 = vcmp.gt.f32.partialorder %v1616_v34, 0.0  ;;  %v2726_v45 = vmul.f32 0.2, %v1616_v34  ;;  %v7465_v46 = vpop.f32.mrf.mxu0  ;;  %v7467_v43 = vpop.f32.mrf.mxu1 }
 0x1ae   : > { %v3112_v36 = vsel %vm2600_vm1, %v2136_v27, %v2856_v21  ;;  %v1619_v25 = vadd.f32 %v7276_v39, %v7401_v47  ;;  %vm2598_vm3 = vcmp.gt.f32.partialorder %v2128_v38, 0.0  ;;  %v2854_v49 = vmul.f32 0.2, %v2128_v38 }
 0x1af   : > { %vm2473_vm4 = vcmp.gt.f32.partialorder %v1627_v42, 0.0  ;;  %v2729_v31 = vmul.f32 0.2, %v1627_v42  ;;  %v2982_v50 = vsel %vm2470_vm2, %v1616_v34, %v2726_v45  ;;  %vm2601_vm5 = vcmp.gt.f32.partialorder %v2139_v44, 0.0  ;;  %v7469_v41 = vpop.f32.mrf.mxu0  ;;  %v7471_v51 = vpop.f32.mrf.mxu1 }
 0x1b0   : > { %v2857_v40 = vmul.f32 0.2, %v2139_v44  ;;  %vm2471_vm6 = vcmp.gt.f32.partialorder %v1619_v25, 0.0  ;;  %v3110_v52 = vsel %vm2598_vm3, %v2128_v38, %v2854_v49  ;;  %v2727_v47 = vmul.f32 0.2, %v1619_v25 }
 0x1b1   : > { %v2985_v53 = vsel %vm2473_vm4, %v1627_v42, %v2729_v31  ;;  %v2131_v55 = vadd.f32 %v7276_v39, %v7403_v48  ;;  %v1640_v62 = vadd.f32 %v7276_v39, %v7410_v58  ;;  %v2152_v63 = vadd.f32 %v7276_v39, %v7412_v56  ;;  %v7479_v54 = vpop.f32.mrf.mxu0  ;;  %v7481_v0 = vpop.f32.mrf.mxu1 }
 0x1b2   : > { %v5408_v57 = vpack.c.bf16 %v2985_v53, %v2984_v37  ;;  %v3113_v61 = vsel %vm2601_vm5, %v2139_v44, %v2857_v40  ;;  %v2983_v3 = vsel %vm2471_vm6, %v1619_v25, %v2727_v47  ;;  %v1632_v9 = vadd.f32 %v7276_v39, %v7417_v1 }
 0x1b3   : > { %v5728_v59 = vpack.c.bf16 %v3113_v61, %v3112_v36  ;;  %vm2599_vm7 = vcmp.gt.f32.partialorder %v2131_v55, 0.0  ;;  %v2855_v4 = vmul.f32 0.2, %v2131_v55  ;;  %v5403_v48 = vpack.c.bf16 %v2983_v3, %v2982_v50  ;;  %v7484_v8 = vpop.f32.mrf.mxu0  ;;  %v7486_v58 = vpop.f32.mrf.mxu1 }
 0x1b4   : > { %5928 = vst [vmem:[%s7135_s20 + $0xe8] sm:$0xff] %v5408_v57   ;;  %vm2476_vm8 = vcmp.gt.f32.partialorder %v1640_v62, 0.0  ;;  %v2732_v7 = vmul.f32 0.2, %v1640_v62  ;;  %vm2604_vm9 = vcmp.gt.f32.partialorder %v2152_v63, 0.0  ;;  %v2144_v14 = vadd.f32 %v7276_v39, %v7419_v2 }
 0x1b5   : > { %5992 = vst [vmem:[%s7135_s20 + $0x2e8] sm:$0xff] %v5728_v59   ;;  %v3111_v56 = vsel %vm2599_vm7, %v2131_v55, %v2855_v4  ;;  %v2860_v60 = vmul.f32 0.2, %v2152_v63  ;;  %5927 = vst [vmem:[%s7135_s20 + $0xe0] sm:$0xff] %v5403_v48   ;;  %v1643_v6 = vadd.f32 %v7276_v39, %v7431_v10  ;;  %v2155_v16 = vadd.f32 %v7276_v39, %v7433_v11  ;;  %v7498_v17 = vpop.f32.mrf.mxu0  ;;  %v7500_v18 = vpop.f32.mrf.mxu1 }
 0x1b6   : > { %v5723_v5 = vpack.c.bf16 %v3111_v56, %v3110_v52  ;;  %v2988_v15 = vsel %vm2476_vm8, %v1640_v62, %v2732_v7  ;;  %vm2474_vm10 = vcmp.gt.f32.partialorder %v1632_v9, 0.0  ;;  %v2730_v20 = vmul.f32 0.2, %v1632_v9 }
 0x1b7   : > { %v3116_v19 = vsel %vm2604_vm9, %v2152_v63, %v2860_v60  ;;  %vm2602_vm11 = vcmp.gt.f32.partialorder %v2144_v14, 0.0  ;;  %v2858_v1 = vmul.f32 0.2, %v2144_v14  ;;  %vm2477_vm12 = vcmp.gt.f32.partialorder %v1643_v6, 0.0  ;;  %v7503_v23 = vpop.f32.mrf.mxu0  ;;  %v7505_v24 = vpop.f32.mrf.mxu1 }
 0x1b8   : > { %5991 = vst [vmem:[%s7135_s20 + $0x2e0] sm:$0xff] %v5723_v5   ;;  %v2733_v2 = vmul.f32 0.2, %v1643_v6  ;;  %vm2605_vm13 = vcmp.gt.f32.partialorder %v2155_v16, 0.0  ;;  %v2986_v10 = vsel %vm2474_vm10, %v1632_v9, %v2730_v20  ;;  %v2861_v27 = vmul.f32 0.2, %v2155_v16 }
 0x1b9   : > { %v1635_v11 = vadd.f32 %v7276_v39, %v7435_v12  ;;  %v2147_v30 = vadd.f32 %v7276_v39, %v7437_v13  ;;  %v3114_v26 = vsel %vm2602_vm11, %v2144_v14, %v2858_v1  ;;  %v1656_v33 = vadd.f32 %v7276_v39, %v7443_v28  ;;  %v7515_v34 = vpop.f32.mrf.mxu0  ;;  %v7517_v37 = vpop.f32.mrf.mxu1 }
 0x1ba   : > { %v2989_v32 = vsel %vm2477_vm12, %v1643_v6, %v2733_v2  ;;  %v2168_v21 = vadd.f32 %v7276_v39, %v7445_v29  ;;  %v3117_v42 = vsel %vm2605_vm13, %v2155_v16, %v2861_v27  ;;  %v1648_v50 = vadd.f32 %v7276_v39, %v7451_v35 }
 0x1bb   : > { %v5418_v38 = vpack.c.bf16 %v2989_v32, %v2988_v15  ;;  %vm2475_vm14 = vcmp.gt.f32.partialorder %v1635_v11, 0.0  ;;  %v2731_v12 = vmul.f32 0.2, %v1635_v11  ;;  %v5738_v44 = vpack.c.bf16 %v3117_v42, %v3116_v19  ;;  %v7519_v36 = vpop.f32.mrf.mxu0  ;;  %v7521_v45 = vpop.f32.mrf.mxu1 }
 0x1bc   : > { %vm2603_vm15 = vcmp.gt.f32.partialorder %v2147_v30, 0.0  ;;  %v2859_v13 = vmul.f32 0.2, %v2147_v30  ;;  %vm2480_vm0 = vcmp.gt.f32.partialorder %v1656_v33, 0.0  ;;  %v2736_v29 = vmul.f32 0.2, %v1656_v33 }
 0x1bd   : > { %5930 = vst [vmem:[%s7135_s20 + $0xf8] sm:$0xff] %v5418_v38   ;;  %v2987_v28 = vsel %vm2475_vm14, %v1635_v11, %v2731_v12  ;;  %vm2608_vm1 = vcmp.gt.f32.partialorder %v2168_v21, 0.0  ;;  %v2864_v25 = vmul.f32 0.2, %v2168_v21  ;;  %5994 = vst [vmem:[%s7135_s20 + $0x2f8] sm:$0xff] %v5738_v44   ;;  %v2160_v40 = vadd.f32 %v7276_v39, %v7453_v22  ;;  %v7529_v52 = vpop.f32.mrf.mxu0  ;;  %v7531_v53 = vpop.f32.mrf.mxu1 }
 0x1be   : > { %v5413_v49 = vpack.c.bf16 %v2987_v28, %v2986_v10  ;;  %v3115_v31 = vsel %vm2603_vm15, %v2147_v30, %v2859_v13  ;;  %v2992_v55 = vsel %vm2480_vm0, %v1656_v33, %v2736_v29  ;;  %v1659_v61 = vadd.f32 %v7276_v39, %v7465_v46 }
 0x1bf   : > { %v5733_v47 = vpack.c.bf16 %v3115_v31, %v3114_v26  ;;  %v3120_v57 = vsel %vm2608_vm1, %v2168_v21, %v2864_v25  ;;  %vm2478_vm2 = vcmp.gt.f32.partialorder %v1648_v50, 0.0  ;;  %v2734_v62 = vmul.f32 0.2, %v1648_v50  ;;  %v7537_v35 = vpop.f32.mrf.mxu0  ;;  %v7539_v59 = vpop.f32.mrf.mxu1 }
 0x1c0   : > { %5929 = vst [vmem:[%s7135_s20 + $0xf0] sm:$0xff] %v5413_v49   ;;  %vm2606_vm3 = vcmp.gt.f32.partialorder %v2160_v40, 0.0  ;;  %v2862_v63 = vmul.f32 0.2, %v2160_v40  ;;  %vm2481_vm4 = vcmp.gt.f32.partialorder %v1659_v61, 0.0  ;;  %v2171_v3 = vadd.f32 %v7276_v39, %v7467_v43 }
 0x1c1   : > { %5993 = vst [vmem:[%s7135_s20 + $0x2f0] sm:$0xff] %v5733_v47   ;;  %v2737_v22 = vmul.f32 0.2, %v1659_v61  ;;  %v1651_v4 = vadd.f32 %v7276_v39, %v7469_v41  ;;  %v2990_v48 = vsel %vm2478_vm2, %v1648_v50, %v2734_v62  ;;  %v2163_v7 = vadd.f32 %v7276_v39, %v7471_v51  ;;  %v7550_v60 = vpop.f32.mrf.mxu0  ;;  %v7552_v9 = vpop.f32.mrf.mxu1 }
 0x1c2   : > { %v3118_v46 = vsel %vm2606_vm3, %v2160_v40, %v2862_v63  ;;  %v1672_v56 = vadd.f32 %v7276_v39, %v7479_v54  ;;  %vm2609_vm5 = vcmp.gt.f32.partialorder %v2171_v3, 0.0  ;;  %v2865_v5 = vmul.f32 0.2, %v2171_v3 }
 0x1c3   : > { %v2993_v14 = vsel %vm2481_vm4, %v1659_v61, %v2737_v22  ;;  %vm2479_vm6 = vcmp.gt.f32.partialorder %v1651_v4, 0.0  ;;  %v2735_v15 = vmul.f32 0.2, %v1651_v4  ;;  %vm2607_vm7 = vcmp.gt.f32.partialorder %v2163_v7, 0.0  ;;  %v7554_v6 = vpop.f32.mrf.mxu0  ;;  %v7556_v16 = vpop.f32.mrf.mxu1 }
 0x1c4   : > { %v5428_v43 = vpack.c.bf16 %v2993_v14, %v2992_v55  ;;  %v2863_v41 = vmul.f32 0.2, %v2163_v7  ;;  %v3121_v51 = vsel %vm2609_vm5, %v2171_v3, %v2865_v5  ;;  %vm2484_vm8 = vcmp.gt.f32.partialorder %v1672_v56, 0.0 }
 0x1c5   : > { %v2740_v54 = vmul.f32 0.2, %v1672_v56  ;;  %v2184_v19 = vadd.f32 %v7276_v39, %v7481_v0  ;;  %v5748_v20 = vpack.c.bf16 %v3121_v51, %v3120_v57  ;;  %v2991_v1 = vsel %vm2479_vm6, %v1651_v4, %v2735_v15  ;;  %v7563_v27 = vpop.f32.mrf.mxu0  ;;  %v7565_v11 = vpop.f32.mrf.mxu1 }
 0x1c6   : > { %5932 = vst [vmem:[%s7135_s20 + $0x108] sm:$0xff] %v5428_v43   ;;  %v3119_v2 = vsel %vm2607_vm7, %v2163_v7, %v2863_v41  ;;  %v1664_v10 = vadd.f32 %v7276_v39, %v7484_v8  ;;  %v5423_v30 = vpack.c.bf16 %v2991_v1, %v2990_v48  ;;  %v2176_v21 = vadd.f32 %v7276_v39, %v7486_v58 }
 0x1c7   : > { %v5743_v26 = vpack.c.bf16 %v3119_v2, %v3118_v46  ;;  %v2996_v32 = vsel %vm2484_vm8, %v1672_v56, %v2740_v54  ;;  %vm2612_vm9 = vcmp.gt.f32.partialorder %v2184_v19, 0.0  ;;  %5996 = vst [vmem:[%s7135_s20 + $0x308] sm:$0xff] %v5748_v20   ;;  %v2868_v33 = vmul.f32 0.2, %v2184_v19  ;;  %v7570_v38 = vpop.f32.mrf.mxu0  ;;  %v7572_v42 = vpop.f32.mrf.mxu1 }
 0x1c8   : > { %vm2482_vm10 = vcmp.gt.f32.partialorder %v1664_v10, 0.0  ;;  %v2738_v0 = vmul.f32 0.2, %v1664_v10  ;;  %5931 = vst [vmem:[%s7135_s20 + $0x100] sm:$0xff] %v5423_v30   ;;  %v1675_v8 = vadd.f32 %v7276_v39, %v7498_v17  ;;  %v2187_v12 = vadd.f32 %v7276_v39, %v7500_v18 }
 0x1c9   : > { %5995 = vst [vmem:[%s7135_s20 + $0x300] sm:$0xff] %v5743_v26   ;;  %v1667_v44 = vadd.f32 %v7276_v39, %v7503_v23  ;;  %v2179_v13 = vadd.f32 %v7276_v39, %v7505_v24  ;;  %v3124_v28 = vsel %vm2612_vm9, %v2184_v19, %v2868_v33  ;;  %vm2610_vm11 = vcmp.gt.f32.partialorder %v2176_v21, 0.0  ;;  %v7584_v25 = vpop.f32.mrf.mxu0  ;;  %v7586_v49 = vpop.f32.mrf.mxu1 }
 0x1ca   : > { %v2994_v58 = vsel %vm2482_vm10, %v1664_v10, %v2738_v0  ;;  %v2866_v29 = vmul.f32 0.2, %v2176_v21  ;;  %vm2485_vm12 = vcmp.gt.f32.partialorder %v1675_v8, 0.0  ;;  %v2741_v31 = vmul.f32 0.2, %v1675_v8 }
 0x1cb   : > { %vm2613_vm13 = vcmp.gt.f32.partialorder %v2187_v12, 0.0  ;;  %v2869_v17 = vmul.f32 0.2, %v2187_v12  ;;  %vm2483_vm14 = vcmp.gt.f32.partialorder %v1667_v44, 0.0  ;;  %v2739_v18 = vmul.f32 0.2, %v1667_v44  ;;  %v7588_v23 = vpop.f32.mrf.mxu0  ;;  %v7590_v24 = vpop.f32.mrf.mxu1 }
 0x1cc   : > { %v3122_v50 = vsel %vm2610_vm11, %v2176_v21, %v2866_v29  ;;  %vm2611_vm15 = vcmp.gt.f32.partialorder %v2179_v13, 0.0  ;;  %v2997_v40 = vsel %vm2485_vm12, %v1675_v8, %v2741_v31  ;;  %v2867_v55 = vmul.f32 0.2, %v2179_v13 }
 0x1cd   : > { %v3125_v47 = vsel %vm2613_vm13, %v2187_v12, %v2869_v17  ;;  %v1688_v57 = vadd.f32 %v7276_v39, %v7515_v34  ;;  %v5438_v61 = vpack.c.bf16 %v2997_v40, %v2996_v32  ;;  %v2995_v63 = vsel %vm2483_vm14, %v1667_v44, %v2739_v18  ;;  %v7596_v3 = vpop.f32.mrf.mxu0  ;;  %v7598_v4 = vpop.f32.mrf.mxu1 }
 0x1ce   : > { %v5758_v62 = vpack.c.bf16 %v3125_v47, %v3124_v28  ;;  %v2200_v22 = vadd.f32 %v7276_v39, %v7517_v37  ;;  %v5433_v48 = vpack.c.bf16 %v2995_v63, %v2994_v58  ;;  %v3123_v46 = vsel %vm2611_vm15, %v2179_v13, %v2867_v55 }
 0x1cf   : > { %vm2488_vm0 = vcmp.gt.f32.partialorder %v1688_v57, 0.0  ;;  %v2744_v7 = vmul.f32 0.2, %v1688_v57  ;;  %5934 = vst [vmem:[%s7135_s20 + $0x118] sm:$0xff] %v5438_v61   ;;  %v5753_v56 = vpack.c.bf16 %v3123_v46, %v3122_v50  ;;  %v1680_v14 = vadd.f32 %v7276_v39, %v7519_v36  ;;  %v7604_v5 = vpop.f32.mrf.mxu0  ;;  %v7606_v37 = vpop.f32.mrf.mxu1 }
 0x1d0   : > { %5998 = vst [vmem:[%s7135_s20 + $0x318] sm:$0xff] %v5758_v62   ;;  %vm2616_vm1 = vcmp.gt.f32.partialorder %v2200_v22, 0.0  ;;  %v2872_v34 = vmul.f32 0.2, %v2200_v22  ;;  %5933 = vst [vmem:[%s7135_s20 + $0x110] sm:$0xff] %v5433_v48   ;;  %v2192_v15 = vadd.f32 %v7276_v39, %v7521_v45  ;;  %v1691_v41 = vadd.f32 %v7276_v39, %v7529_v52 }
 0x1d1   : > { %v3000_v43 = vsel %vm2488_vm0, %v1688_v57, %v2744_v7  ;;  %v2203_v51 = vadd.f32 %v7276_v39, %v7531_v53  ;;  %5997 = vst [vmem:[%s7135_s20 + $0x310] sm:$0xff] %v5753_v56   ;;  %vm2486_vm2 = vcmp.gt.f32.partialorder %v1680_v14, 0.0  ;;  %v2742_v19 = vmul.f32 0.2, %v1680_v14  ;;  %v7618_v20 = vpop.f32.mrf.mxu0  ;;  %v7620_v1 = vpop.f32.mrf.mxu1 }
 0x1d2   : > { %v3128_v54 = vsel %vm2616_vm1, %v2200_v22, %v2872_v34  ;;  %v1683_v36 = vadd.f32 %v7276_v39, %v7537_v35  ;;  %vm2614_vm3 = vcmp.gt.f32.partialorder %v2192_v15, 0.0  ;;  %v2870_v2 = vmul.f32 0.2, %v2192_v15 }
 0x1d3   : > { %vm2489_vm4 = vcmp.gt.f32.partialorder %v1691_v41, 0.0  ;;  %v2745_v45 = vmul.f32 0.2, %v1691_v41  ;;  %v2998_v10 = vsel %vm2486_vm2, %v1680_v14, %v2742_v19  ;;  %vm2617_vm5 = vcmp.gt.f32.partialorder %v2203_v51, 0.0  ;;  %v7622_v53 = vpop.f32.mrf.mxu0  ;;  %v7624_v30 = vpop.f32.mrf.mxu1 }
 0x1d4   : > { %v2873_v52 = vmul.f32 0.2, %v2203_v51  ;;  %vm2487_vm6 = vcmp.gt.f32.partialorder %v1683_v36, 0.0  ;;  %v3126_v26 = vsel %vm2614_vm3, %v2192_v15, %v2870_v2  ;;  %v2743_v35 = vmul.f32 0.2, %v1683_v36 }
 0x1d5   : > { %v3001_v32 = vsel %vm2489_vm4, %v1691_v41, %v2745_v45  ;;  %v2195_v33 = vadd.f32 %v7276_v39, %v7539_v59  ;;  %v1704_v8 = vadd.f32 %v7276_v39, %v7550_v60  ;;  %v2216_v12 = vadd.f32 %v7276_v39, %v7552_v9  ;;  %v7632_v44 = vpop.f32.mrf.mxu0  ;;  %v7634_v13 = vpop.f32.mrf.mxu1  ;;  %v7666_v41 = vld [vmem:[#allocation7] ss:$0 sm:$0xff] }
 0x1d6   : > { %v5448_v0 = vpack.c.bf16 %v3001_v32, %v3000_v43  ;;  %v3129_v21 = vsel %vm2617_vm5, %v2203_v51, %v2873_v52  ;;  %v2999_v58 = vsel %vm2487_vm6, %v1683_v36, %v2743_v35  ;;  %v1696_v18 = vadd.f32 %v7276_v39, %v7554_v6 }
 0x1d7   : > { %v5768_v28 = vpack.c.bf16 %v3129_v21, %v3128_v54  ;;  %vm2615_vm7 = vcmp.gt.f32.partialorder %v2195_v33, 0.0  ;;  %v2871_v29 = vmul.f32 0.2, %v2195_v33  ;;  %v5443_v59 = vpack.c.bf16 %v2999_v58, %v2998_v10  ;;  %v7637_v17 = vpop.f32.mrf.mxu0  ;;  %v7639_v60 = vpop.f32.mrf.mxu1 }
 0x1d8   : > { %5936 = vst [vmem:[%s7135_s20 + $0x128] sm:$0xff] %v5448_v0   ;;  %vm2492_vm8 = vcmp.gt.f32.partialorder %v1704_v8, 0.0  ;;  %v2748_v31 = vmul.f32 0.2, %v1704_v8  ;;  %vm2620_vm9 = vcmp.gt.f32.partialorder %v2216_v12, 0.0  ;;  %v2208_v40 = vadd.f32 %v7276_v39, %v7556_v16 }
 0x1d9   : > { %6000 = vst [vmem:[%s7135_s20 + $0x328] sm:$0xff] %v5768_v28   ;;  %v3127_v9 = vsel %vm2615_vm7, %v2195_v33, %v2871_v29  ;;  %v2876_v50 = vmul.f32 0.2, %v2216_v12  ;;  %5935 = vst [vmem:[%s7135_s20 + $0x120] sm:$0xff] %v5443_v59   ;;  %v1707_v57 = vadd.f32 %v7276_v39, %v7563_v27  ;;  %v2219_v61 = vadd.f32 %v7276_v39, %v7565_v11  ;;  %v7651_v62 = vpop.f32.mrf.mxu0  ;;  %v7653_v63 = vpop.f32.mrf.mxu1 }
 0x1da   : > { %v5763_v47 = vpack.c.bf16 %v3127_v9, %v3126_v26  ;;  %v3004_v55 = vsel %vm2492_vm8, %v1704_v8, %v2748_v31  ;;  %vm2490_vm10 = vcmp.gt.f32.partialorder %v1696_v18, 0.0  ;;  %v2746_v48 = vmul.f32 0.2, %v1696_v18 }
 0x1db   : > { %v3132_v22 = vsel %vm2620_vm9, %v2216_v12, %v2876_v50  ;;  %vm2618_vm11 = vcmp.gt.f32.partialorder %v2208_v40, 0.0  ;;  %v2874_v6 = vmul.f32 0.2, %v2208_v40  ;;  %vm2493_vm12 = vcmp.gt.f32.partialorder %v1707_v57, 0.0  ;;  %v7656_v46 = vpop.f32.mrf.mxu0  ;;  %v7658_v7 = vpop.f32.mrf.mxu1 }
 0x1dc   : > { %5999 = vst [vmem:[%s7135_s20 + $0x320] sm:$0xff] %v5763_v47   ;;  %v2749_v16 = vmul.f32 0.2, %v1707_v57  ;;  %vm2621_vm13 = vcmp.gt.f32.partialorder %v2219_v61, 0.0  ;;  %v3002_v27 = vsel %vm2490_vm10, %v1696_v18, %v2746_v48  ;;  %v2877_v56 = vmul.f32 0.2, %v2219_v61 }
 0x1dd   : > { %v1699_v11 = vadd.f32 %v7276_v39, %v7570_v38  ;;  %v2211_v34 = vadd.f32 %v7276_v39, %v7572_v42  ;;  %v3130_v14 = vsel %vm2618_vm11, %v2208_v40, %v2874_v6  ;;  %v1720_v15 = vadd.f32 %v7276_v39, %v7584_v25  ;;  %v7670_v54 = vpop.f32.mrf.mxu0  ;;  %v7672_v19 = vpop.f32.mrf.mxu1 }
 0x1de   : > { %v3005_v43 = vsel %vm2493_vm12, %v1707_v57, %v2749_v16  ;;  %v2232_v51 = vadd.f32 %v7666_v41, %v7586_v49  ;;  %v3133_v36 = vsel %vm2621_vm13, %v2219_v61, %v2877_v56  ;;  %v1712_v35 = vadd.f32 %v7666_v41, %v7588_v23 }
 0x1df   : > { %v5458_v38 = vpack.c.bf16 %v3005_v43, %v3004_v55  ;;  %vm2491_vm14 = vcmp.gt.f32.partialorder %v1699_v11, 0.0  ;;  %v2747_v42 = vmul.f32 0.2, %v1699_v11  ;;  %v5778_v2 = vpack.c.bf16 %v3133_v36, %v3132_v22  ;;  %v7674_v10 = vpop.f32.mrf.mxu0  ;;  %v7676_v39 = vpop.f32.mrf.mxu1 }
 0x1e0   : > { %vm2619_vm15 = vcmp.gt.f32.partialorder %v2211_v34, 0.0  ;;  %v2875_v45 = vmul.f32 0.2, %v2211_v34  ;;  %vm2496_vm0 = vcmp.gt.f32.partialorder %v1720_v15, 0.0  ;;  %v2752_v49 = vmul.f32 0.2, %v1720_v15 }
 0x1e1   : > { %5938 = vst [vmem:[%s7135_s20 + $0x138] sm:$0xff] %v5458_v38   ;;  %v3003_v25 = vsel %vm2491_vm14, %v1699_v11, %v2747_v42  ;;  %vm2624_vm1 = vcmp.gt.f32.partialorder %v2232_v51, 0.0  ;;  %v2880_v52 = vmul.f32 0.2, %v2232_v51  ;;  %6002 = vst [vmem:[%s7135_s20 + $0x338] sm:$0xff] %v5778_v2   ;;  %v2224_v33 = vadd.f32 %v7666_v41, %v7590_v24  ;;  %v7684_v0 = vpop.f32.mrf.mxu0  ;;  %v7686_v21 = vpop.f32.mrf.mxu1 }
 0x1e2   : > { %v5453_v26 = vpack.c.bf16 %v3003_v25, %v3002_v27  ;;  %v3131_v32 = vsel %vm2619_vm15, %v2211_v34, %v2875_v45  ;;  %v3008_v12 = vsel %vm2496_vm0, %v1720_v15, %v2752_v49  ;;  %v1723_v58 = vadd.f32 %v7666_v41, %v7596_v3 }
 0x1e3   : > { %v5773_v8 = vpack.c.bf16 %v3131_v32, %v3130_v14  ;;  %v3136_v28 = vsel %vm2624_vm1, %v2232_v51, %v2880_v52  ;;  %vm2494_vm2 = vcmp.gt.f32.partialorder %v1712_v35, 0.0  ;;  %v2750_v29 = vmul.f32 0.2, %v1712_v35  ;;  %v7692_v23 = vpop.f32.mrf.mxu0  ;;  %v7694_v31 = vpop.f32.mrf.mxu1 }
 0x1e4   : > { %5937 = vst [vmem:[%s7135_s20 + $0x130] sm:$0xff] %v5453_v26   ;;  %vm2622_vm3 = vcmp.gt.f32.partialorder %v2224_v33, 0.0  ;;  %v2878_v59 = vmul.f32 0.2, %v2224_v33  ;;  %vm2497_vm4 = vcmp.gt.f32.partialorder %v1723_v58, 0.0  ;;  %v2235_v9 = vadd.f32 %v7666_v41, %v7598_v4 }
 0x1e5   : > { %6001 = vst [vmem:[%s7135_s20 + $0x330] sm:$0xff] %v5773_v8   ;;  %v2753_v24 = vmul.f32 0.2, %v1723_v58  ;;  %v1715_v50 = vadd.f32 %v7666_v41, %v7604_v5  ;;  %v3006_v18 = vsel %vm2494_vm2, %v1712_v35, %v2750_v29  ;;  %v2227_v40 = vadd.f32 %v7666_v41, %v7606_v37  ;;  %v7705_v55 = vpop.f32.mrf.mxu0  ;;  %v7707_v57 = vpop.f32.mrf.mxu1 }
 0x1e6   : > { %v3134_v3 = vsel %vm2622_vm3, %v2224_v33, %v2878_v59  ;;  %v1736_v47 = vadd.f32 %v7666_v41, %v7618_v20  ;;  %vm2625_vm5 = vcmp.gt.f32.partialorder %v2235_v9, 0.0  ;;  %v2881_v22 = vmul.f32 0.2, %v2235_v9 }
 0x1e7   : > { %v3009_v61 = vsel %vm2497_vm4, %v1723_v58, %v2753_v24  ;;  %vm2495_vm6 = vcmp.gt.f32.partialorder %v1715_v50, 0.0  ;;  %v2751_v48 = vmul.f32 0.2, %v1715_v50  ;;  %vm2623_vm7 = vcmp.gt.f32.partialorder %v2227_v40, 0.0  ;;  %v7709_v6 = vpop.f32.mrf.mxu0  ;;  %v7711_v16 = vpop.f32.mrf.mxu1 }
 0x1e8   : > { %v5468_v4 = vpack.c.bf16 %v3009_v61, %v3008_v12  ;;  %v2879_v5 = vmul.f32 0.2, %v2227_v40  ;;  %v3137_v37 = vsel %vm2625_vm5, %v2235_v9, %v2881_v22  ;;  %vm2500_vm8 = vcmp.gt.f32.partialorder %v1736_v47, 0.0 }
 0x1e9   : > { %v2756_v20 = vmul.f32 0.2, %v1736_v47  ;;  %v2248_v27 = vadd.f32 %v7666_v41, %v7620_v1  ;;  %v5788_v56 = vpack.c.bf16 %v3137_v37, %v3136_v28  ;;  %v3007_v11 = vsel %vm2495_vm6, %v1715_v50, %v2751_v48  ;;  %v7718_v43 = vpop.f32.mrf.mxu0  ;;  %v7720_v15 = vpop.f32.mrf.mxu1 }
 0x1ea   : > { %5940 = vst [vmem:[%s7135_s20 + $0x148] sm:$0xff] %v5468_v4   ;;  %v3135_v34 = vsel %vm2623_vm7, %v2227_v40, %v2879_v5  ;;  %v1728_v14 = vadd.f32 %v7666_v41, %v7622_v53  ;;  %v5463_v51 = vpack.c.bf16 %v3007_v11, %v3006_v18  ;;  %v2240_v2 = vadd.f32 %v7666_v41, %v7624_v30 }
 0x1eb   : > { %v5783_v38 = vpack.c.bf16 %v3135_v34, %v3134_v3  ;;  %v3012_v36 = vsel %vm2500_vm8, %v1736_v47, %v2756_v20  ;;  %vm2628_vm9 = vcmp.gt.f32.partialorder %v2248_v27, 0.0  ;;  %6004 = vst [vmem:[%s7135_s20 + $0x348] sm:$0xff] %v5788_v56   ;;  %v2884_v42 = vmul.f32 0.2, %v2248_v27  ;;  %v7725_v45 = vpop.f32.mrf.mxu0  ;;  %v7727_v25 = vpop.f32.mrf.mxu1 }
 0x1ec   : > { %vm2498_vm10 = vcmp.gt.f32.partialorder %v1728_v14, 0.0  ;;  %v2754_v1 = vmul.f32 0.2, %v1728_v14  ;;  %5939 = vst [vmem:[%s7135_s20 + $0x140] sm:$0xff] %v5463_v51   ;;  %v1739_v53 = vadd.f32 %v7666_v41, %v7632_v44  ;;  %v2251_v49 = vadd.f32 %v7666_v41, %v7634_v13 }
 0x1ed   : > { %6003 = vst [vmem:[%s7135_s20 + $0x340] sm:$0xff] %v5783_v38   ;;  %v1731_v52 = vadd.f32 %v7666_v41, %v7637_v17  ;;  %v2243_v26 = vadd.f32 %v7666_v41, %v7639_v60  ;;  %v3140_v32 = vsel %vm2628_vm9, %v2248_v27, %v2884_v42  ;;  %vm2626_vm11 = vcmp.gt.f32.partialorder %v2240_v2, 0.0  ;;  %v7739_v33 = vpop.f32.mrf.mxu0  ;;  %v7741_v8 = vpop.f32.mrf.mxu1 }
 0x1ee   : > { %v3010_v30 = vsel %vm2498_vm10, %v1728_v14, %v2754_v1  ;;  %v2882_v35 = vmul.f32 0.2, %v2240_v2  ;;  %vm2501_vm12 = vcmp.gt.f32.partialorder %v1739_v53, 0.0  ;;  %v2757_v12 = vmul.f32 0.2, %v1739_v53 }
 0x1ef   : > { %vm2629_vm13 = vcmp.gt.f32.partialorder %v2251_v49, 0.0  ;;  %v2885_v44 = vmul.f32 0.2, %v2251_v49  ;;  %vm2499_vm14 = vcmp.gt.f32.partialorder %v1731_v52, 0.0  ;;  %v2755_v13 = vmul.f32 0.2, %v1731_v52  ;;  %v7743_v17 = vpop.f32.mrf.mxu0  ;;  %v7745_v60 = vpop.f32.mrf.mxu1 }
 0x1f0   : > { %v3138_v28 = vsel %vm2626_vm11, %v2240_v2, %v2882_v35  ;;  %vm2627_vm15 = vcmp.gt.f32.partialorder %v2243_v26, 0.0  ;;  %v3013_v58 = vsel %vm2501_vm12, %v1739_v53, %v2757_v12  ;;  %v2883_v59 = vmul.f32 0.2, %v2243_v26 }
 0x1f1   : > { %v3141_v29 = vsel %vm2629_vm13, %v2251_v49, %v2885_v44  ;;  %v1752_v24 = vadd.f32 %v7666_v41, %v7651_v62  ;;  %v5478_v9 = vpack.c.bf16 %v3013_v58, %v3012_v36  ;;  %v3011_v18 = vsel %vm2499_vm14, %v1731_v52, %v2755_v13  ;;  %v7751_v40 = vpop.f32.mrf.mxu0  ;;  %v7753_v4 = vpop.f32.mrf.mxu1 }
 0x1f2   : > { %v5798_v50 = vpack.c.bf16 %v3141_v29, %v3140_v32  ;;  %v2264_v3 = vadd.f32 %v7666_v41, %v7653_v63  ;;  %v5473_v47 = vpack.c.bf16 %v3011_v18, %v3010_v30  ;;  %v3139_v61 = vsel %vm2627_vm15, %v2243_v26, %v2883_v59 }
 0x1f3   : > { %vm2504_vm0 = vcmp.gt.f32.partialorder %v1752_v24, 0.0  ;;  %v2760_v22 = vmul.f32 0.2, %v1752_v24  ;;  %5942 = vst [vmem:[%s7135_s20 + $0x158] sm:$0xff] %v5478_v9   ;;  %v5793_v48 = vpack.c.bf16 %v3139_v61, %v3138_v28  ;;  %v1744_v5 = vadd.f32 %v7666_v41, %v7656_v46  ;;  %v7759_v37 = vpop.f32.mrf.mxu0  ;;  %v7768_v11 = vpop.f32.mrf.mxu1 }
 0x1f4   : > { %6006 = vst [vmem:[%s7135_s20 + $0x358] sm:$0xff] %v5798_v50   ;;  %vm2632_vm1 = vcmp.gt.f32.partialorder %v2264_v3, 0.0  ;;  %v2888_v62 = vmul.f32 0.2, %v2264_v3  ;;  %5941 = vst [vmem:[%s7135_s20 + $0x150] sm:$0xff] %v5473_v47   ;;  %v2256_v20 = vadd.f32 %v7666_v41, %v7658_v7  ;;  %v1755_v27 = vadd.f32 %v7666_v41, %v7670_v54 }
 0x1f5   : > { %v3016_v63 = vsel %vm2504_vm0, %v1752_v24, %v2760_v22  ;;  %v2267_v56 = vadd.f32 %v7666_v41, %v7672_v19  ;;  %6005 = vst [vmem:[%s7135_s20 + $0x350] sm:$0xff] %v5793_v48   ;;  %vm2502_vm2 = vcmp.gt.f32.partialorder %v1744_v5, 0.0  ;;  %v2758_v14 = vmul.f32 0.2, %v1744_v5  ;;  %v7773_v51 = vpop.f32.mrf.mxu0  ;;  %v7775_v36 = vpop.f32.mrf.mxu1 }
 0x1f6   : > { %v3144_v34 = vsel %vm2632_vm1, %v2264_v3, %v2888_v62  ;;  %v1747_v46 = vadd.f32 %v7666_v41, %v7674_v10  ;;  %vm2630_vm3 = vcmp.gt.f32.partialorder %v2256_v20, 0.0  ;;  %v2886_v38 = vmul.f32 0.2, %v2256_v20 }
 0x1f7   : > { %vm2505_vm4 = vcmp.gt.f32.partialorder %v1755_v27, 0.0  ;;  %v2761_v7 = vmul.f32 0.2, %v1755_v27  ;;  %v3014_v54 = vsel %vm2502_vm2, %v1744_v5, %v2758_v14  ;;  %vm2633_vm5 = vcmp.gt.f32.partialorder %v2267_v56, 0.0  ;;  %v7777_v42 = vpop.f32.mrf.mxu0  ;;  %v7781_v49 = vpop.f32.mrf.mxu1 }
 0x1f8   : > { %v2889_v19 = vmul.f32 0.2, %v2267_v56  ;;  %vm2503_vm6 = vcmp.gt.f32.partialorder %v1747_v46, 0.0  ;;  %v3142_v1 = vsel %vm2630_vm3, %v2256_v20, %v2886_v38  ;;  %v2759_v53 = vmul.f32 0.2, %v1747_v46 }
 0x1f9   : > { %v3017_v2 = vsel %vm2505_vm4, %v1755_v27, %v2761_v7  ;;  %v2259_v10 = vadd.f32 %v7666_v41, %v7676_v39  ;;  %v1768_v32 = vadd.f32 %v7666_v41, %v7684_v0  ;;  %v2280_v30 = vadd.f32 %v7666_v41, %v7686_v21 }
 0x1fa   : > { %v5488_v52 = vpack.c.bf16 %v3017_v2, %v3016_v63  ;;  %v3145_v26 = vsel %vm2633_vm5, %v2267_v56, %v2889_v19  ;;  %v7787_v35 = vpop.f32.mrf.mxu0  ;;  %v3015_v44 = vsel %vm2503_vm6, %v1747_v46, %v2759_v53  ;;  %v7789_v13 = vpop.f32.mrf.mxu1  ;;  %v1760_v59 = vadd.f32 %v7666_v41, %v7692_v23 }
 0x1fb   : > { %v5808_v12 = vpack.c.bf16 %v3145_v26, %v3144_v34  ;;  %vm2631_vm7 = vcmp.gt.f32.partialorder %v2259_v10, 0.0  ;;  %v2887_v28 = vmul.f32 0.2, %v2259_v10  ;;  %v5483_v39 = vpack.c.bf16 %v3015_v44, %v3014_v54 }
 0x1fc   : > { %5944 = vst [vmem:[%s7135_s20 + $0x168] sm:$0xff] %v5488_v52   ;;  %vm2508_vm8 = vcmp.gt.f32.partialorder %v1768_v32, 0.0  ;;  %v2764_v58 = vmul.f32 0.2, %v1768_v32  ;;  %vm2636_vm9 = vcmp.gt.f32.partialorder %v2280_v30, 0.0  ;;  %v7792_v29 = vpop.f32.mrf.mxu0  ;;  %v2272_v24 = vadd.f32 %v7666_v41, %v7694_v31  ;;  %v7799_v9 = vpop.f32.mrf.mxu1 }
 0x1fd   : > { %6008 = vst [vmem:[%s7135_s20 + $0x368] sm:$0xff] %v5808_v12   ;;  %v3143_v0 = vsel %vm2631_vm7, %v2259_v10, %v2887_v28  ;;  %v2892_v21 = vmul.f32 0.2, %v2280_v30  ;;  %5943 = vst [vmem:[%s7135_s20 + $0x160] sm:$0xff] %v5483_v39   ;;  %v1771_v3 = vadd.f32 %v7666_v41, %v7705_v55  ;;  %v2283_v47 = vadd.f32 %v7666_v41, %v7707_v57 }
 0x1fe   : > { %v5803_v50 = vpack.c.bf16 %v3143_v0, %v3142_v1  ;;  %v3020_v18 = vsel %vm2508_vm8, %v1768_v32, %v2764_v58  ;;  %v7806_v61 = vpop.f32.mrf.mxu0  ;;  %vm2506_vm10 = vcmp.gt.f32.partialorder %v1760_v59, 0.0  ;;  %v2762_v48 = vmul.f32 0.2, %v1760_v59  ;;  %v7808_v23 = vpop.f32.mrf.mxu1 }
 0x1ff   : > { %v3148_v22 = vsel %vm2636_vm9, %v2280_v30, %v2892_v21  ;;  %vm2634_vm11 = vcmp.gt.f32.partialorder %v2272_v24, 0.0  ;;  %v2890_v31 = vmul.f32 0.2, %v2272_v24  ;;  %vm2509_vm12 = vcmp.gt.f32.partialorder %v1771_v3, 0.0 }
 0x200   : > { %6007 = vst [vmem:[%s7135_s20 + $0x360] sm:$0xff] %v5803_v50   ;;  %v2765_v62 = vmul.f32 0.2, %v1771_v3  ;;  %vm2637_vm13 = vcmp.gt.f32.partialorder %v2283_v47, 0.0  ;;  %v7811_v5 = vpop.f32.mrf.mxu0  ;;  %v3018_v63 = vsel %vm2506_vm10, %v1760_v59, %v2762_v48  ;;  %v2893_v55 = vmul.f32 0.2, %v2283_v47  ;;  %v7817_v27 = vpop.f32.mrf.mxu1 }
 0x201   : > { %v1763_v57 = vadd.f32 %v7666_v41, %v7709_v6  ;;  %v2275_v20 = vadd.f32 %v7666_v41, %v7711_v16  ;;  %v3146_v56 = vsel %vm2634_vm11, %v2272_v24, %v2890_v31  ;;  %v1784_v14 = vadd.f32 %v7666_v41, %v7718_v43 }
 0x202   : > { %v3021_v34 = vsel %vm2509_vm12, %v1771_v3, %v2765_v62  ;;  %v2296_v46 = vadd.f32 %v7666_v41, %v7720_v15  ;;  %v7823_v38 = vpop.f32.mrf.mxu0  ;;  %v3149_v54 = vsel %vm2637_vm13, %v2283_v47, %v2893_v55  ;;  %v7825_v19 = vpop.f32.mrf.mxu1  ;;  %v1776_v32 = vadd.f32 %v7666_v41, %v7725_v45 }
 0x203   : > { %v5498_v7 = vpack.c.bf16 %v3021_v34, %v3020_v18  ;;  %vm2507_vm14 = vcmp.gt.f32.partialorder %v1763_v57, 0.0  ;;  %v2763_v6 = vmul.f32 0.2, %v1763_v57  ;;  %v5818_v16 = vpack.c.bf16 %v3149_v54, %v3148_v22 }
 0x204   : > { %vm2635_vm15 = vcmp.gt.f32.partialorder %v2275_v20, 0.0  ;;  %v2891_v1 = vmul.f32 0.2, %v2275_v20  ;;  %vm2512_vm0 = vcmp.gt.f32.partialorder %v1784_v14, 0.0  ;;  %v7827_v2 = vpop.f32.mrf.mxu0  ;;  %v2768_v53 = vmul.f32 0.2, %v1784_v14  ;;  %v7830_v10 = vpop.f32.mrf.mxu1 }
 0x205   : > { %5946 = vst [vmem:[%s7135_s20 + $0x178] sm:$0xff] %v5498_v7   ;;  %v3019_v43 = vsel %vm2507_vm14, %v1763_v57, %v2763_v6  ;;  %vm2640_vm1 = vcmp.gt.f32.partialorder %v2296_v46, 0.0  ;;  %v2896_v15 = vmul.f32 0.2, %v2296_v46  ;;  %6010 = vst [vmem:[%s7135_s20 + $0x378] sm:$0xff] %v5818_v16   ;;  %v2288_v30 = vadd.f32 %v7666_v41, %v7727_v25 }
 0x206   : > { %v5493_v52 = vpack.c.bf16 %v3019_v43, %v3018_v63  ;;  %v3147_v26 = vsel %vm2635_vm15, %v2275_v20, %v2891_v1  ;;  %v7837_v12 = vpop.f32.mrf.mxu0  ;;  %v3024_v28 = vsel %vm2512_vm0, %v1784_v14, %v2768_v53  ;;  %v1787_v58 = vadd.f32 %v7666_v41, %v7739_v33  ;;  %v7841_v0 = vpop.f32.mrf.mxu1 }
 0x207   : > { %v5813_v44 = vpack.c.bf16 %v3147_v26, %v3146_v56  ;;  %v3152_v39 = vsel %vm2640_vm1, %v2296_v46, %v2896_v15  ;;  %vm2510_vm2 = vcmp.gt.f32.partialorder %v1776_v32, 0.0  ;;  %v2766_v21 = vmul.f32 0.2, %v1776_v32 }
 0x208   : > { %5945 = vst [vmem:[%s7135_s20 + $0x170] sm:$0xff] %v5493_v52   ;;  %vm2638_vm3 = vcmp.gt.f32.partialorder %v2288_v30, 0.0  ;;  %v2894_v59 = vmul.f32 0.2, %v2288_v30  ;;  %v7844_v24 = vpop.f32.mrf.mxu0  ;;  %vm2513_vm4 = vcmp.gt.f32.partialorder %v1787_v58, 0.0  ;;  %v2299_v25 = vadd.f32 %v7666_v41, %v7741_v8  ;;  %v7851_v18 = vpop.f32.mrf.mxu1 }
 0x209   : > { %6009 = vst [vmem:[%s7135_s20 + $0x370] sm:$0xff] %v5813_v44   ;;  %v2769_v45 = vmul.f32 0.2, %v1787_v58  ;;  %v1779_v50 = vadd.f32 %v7666_v41, %v7743_v17  ;;  %v3022_v33 = vsel %vm2510_vm2, %v1776_v32, %v2766_v21  ;;  %v2291_v47 = vadd.f32 %v7666_v41, %v7745_v60 }
 0x20a   : > { %v3150_v3 = vsel %vm2638_vm3, %v2288_v30, %v2894_v59  ;;  %v1800_v22 = vadd.f32 %v7666_v41, %v7751_v40  ;;  %v7857_v48 = vpop.f32.mrf.mxu0  ;;  %vm2641_vm5 = vcmp.gt.f32.partialorder %v2299_v25, 0.0  ;;  %v2897_v62 = vmul.f32 0.2, %v2299_v25  ;;  %v7859_v8 = vpop.f32.mrf.mxu1 }
 0x20b   : > { %v3025_v31 = vsel %vm2513_vm4, %v1787_v58, %v2769_v45  ;;  %vm2511_vm6 = vcmp.gt.f32.partialorder %v1779_v50, 0.0  ;;  %v2767_v63 = vmul.f32 0.2, %v1779_v50  ;;  %vm2639_vm7 = vcmp.gt.f32.partialorder %v2291_v47, 0.0 }
 0x20c   : > { %v5508_v17 = vpack.c.bf16 %v3025_v31, %v3024_v28  ;;  %v2895_v55 = vmul.f32 0.2, %v2291_v47  ;;  %v3153_v57 = vsel %vm2641_vm5, %v2299_v25, %v2897_v62  ;;  %vm2516_vm8 = vcmp.gt.f32.partialorder %v1800_v22, 0.0  ;;  %v7866_v46 = vpop.f32.mrf.mxu0  ;;  %v7868_v7 = vpop.f32.mrf.mxu1 }
 0x20d   : > { %v2772_v60 = vmul.f32 0.2, %v1800_v22  ;;  %v2312_v20 = vadd.f32 %v7666_v41, %v7753_v4  ;;  %v5828_v40 = vpack.c.bf16 %v3153_v57, %v3152_v39  ;;  %v3023_v56 = vsel %vm2511_vm6, %v1779_v50, %v2767_v63 }
 0x20e   : > { %5948 = vst [vmem:[%s7135_s20 + $0x188] sm:$0xff] %v5508_v17   ;;  %v3151_v34 = vsel %vm2639_vm7, %v2291_v47, %v2895_v55  ;;  %v1792_v14 = vadd.f32 %v7666_v41, %v7759_v37  ;;  %v5503_v54 = vpack.c.bf16 %v3023_v56, %v3022_v33  ;;  %v2304_v43 = vadd.f32 %v7666_v41, %v7768_v11  ;;  %v7883_v44 = vpop.f32.mrf.mxu0  ;;  %v7885_v11 = vpop.f32.mrf.mxu1 }
 0x20f   : > { %v5823_v6 = vpack.c.bf16 %v3151_v34, %v3150_v3  ;;  %v3028_v16 = vsel %vm2516_vm8, %v1800_v22, %v2772_v60  ;;  %vm2644_vm9 = vcmp.gt.f32.partialorder %v2312_v20, 0.0  ;;  %6012 = vst [vmem:[%s7135_s20 + $0x388] sm:$0xff] %v5828_v40   ;;  %v2900_v1 = vmul.f32 0.2, %v2312_v20 }
 0x210   : > { %vm2514_vm10 = vcmp.gt.f32.partialorder %v1792_v14, 0.0  ;;  %v2770_v4 = vmul.f32 0.2, %v1792_v14  ;;  %5947 = vst [vmem:[%s7135_s20 + $0x180] sm:$0xff] %v5503_v54   ;;  %v1803_v37 = vadd.f32 %v7666_v41, %v7773_v51  ;;  %v2315_v53 = vadd.f32 %v7666_v41, %v7775_v36  ;;  %v7891_v33 = vpop.f32.mrf.mxu0  ;;  %v7893_v3 = vpop.f32.mrf.mxu1 }
 0x211   : > { %6011 = vst [vmem:[%s7135_s20 + $0x380] sm:$0xff] %v5823_v6   ;;  %v1795_v15 = vadd.f32 %v7666_v41, %v7777_v42  ;;  %v2307_v52 = vadd.f32 %v7666_v41, %v7781_v49  ;;  %v3156_v26 = vsel %vm2644_vm9, %v2312_v20, %v2900_v1  ;;  %vm2642_vm11 = vcmp.gt.f32.partialorder %v2304_v43, 0.0 }
 0x212   : > { %v3026_v32 = vsel %vm2514_vm10, %v1792_v14, %v2770_v4  ;;  %v2898_v30 = vmul.f32 0.2, %v2304_v43  ;;  %vm2517_vm12 = vcmp.gt.f32.partialorder %v1803_v37, 0.0  ;;  %v2773_v28 = vmul.f32 0.2, %v1803_v37  ;;  %v7909_v56 = vpop.f32.mrf.mxu0 }
 0x213   : > { %vm2645_vm13 = vcmp.gt.f32.partialorder %v2315_v53, 0.0  ;;  %v2901_v51 = vmul.f32 0.2, %v2315_v53  ;;  %vm2515_vm14 = vcmp.gt.f32.partialorder %v1795_v15, 0.0  ;;  %v2771_v36 = vmul.f32 0.2, %v1795_v15 }
 0x214   : > { %v3154_v39 = vsel %vm2642_vm11, %v2304_v43, %v2898_v30  ;;  %vm2643_vm15 = vcmp.gt.f32.partialorder %v2307_v52, 0.0  ;;  %v3029_v42 = vsel %vm2517_vm12, %v1803_v37, %v2773_v28  ;;  %v2899_v58 = vmul.f32 0.2, %v2307_v52  ;;  %v7919_v37 = vpop.f32.mrf.mxu0 }
 0x215   : > { %v3157_v49 = vsel %vm2645_vm13, %v2315_v53, %v2901_v51  ;;  %v1816_v21 = vadd.f32 %v7666_v41, %v7787_v35  ;;  %v5518_v59 = vpack.c.bf16 %v3029_v42, %v3028_v16  ;;  %v3027_v25 = vsel %vm2515_vm14, %v1795_v15, %v2771_v36 }
 0x216   : > { %v5838_v45 = vpack.c.bf16 %v3157_v49, %v3156_v26  ;;  %v2328_v50 = vadd.f32 %v7666_v41, %v7789_v13  ;;  %v5513_v47 = vpack.c.bf16 %v3027_v25, %v3026_v32  ;;  %v3155_v22 = vsel %vm2643_vm15, %v2307_v52, %v2899_v58  ;;  %v7934_v49 = vpop.f32.mrf.mxu0 }
 0x217   : > { %vm2520_vm0 = vcmp.gt.f32.partialorder %v1816_v21, 0.0  ;;  %v2776_v31 = vmul.f32 0.2, %v1816_v21  ;;  %5950 = vst [vmem:[%s7135_s20 + $0x198] sm:$0xff] %v5518_v59   ;;  %v5833_v62 = vpack.c.bf16 %v3155_v22, %v3154_v39  ;;  %v1808_v17 = vadd.f32 %v7666_v41, %v7792_v29  ;;  %v7911_v29 = vpop.f32.mrf.mxu1 }
 0x218   : > { %6014 = vst [vmem:[%s7135_s20 + $0x398] sm:$0xff] %v5838_v45   ;;  %vm2648_vm1 = vcmp.gt.f32.partialorder %v2328_v50, 0.0  ;;  %v2904_v35 = vmul.f32 0.2, %v2328_v50  ;;  %5949 = vst [vmem:[%s7135_s20 + $0x190] sm:$0xff] %v5513_v47   ;;  %v2320_v13 = vadd.f32 %v7666_v41, %v7799_v9  ;;  %v1819_v55 = vadd.f32 %v7666_v41, %v7806_v61 }
 0x219   : > { %v3032_v63 = vsel %vm2520_vm0, %v1816_v21, %v2776_v31  ;;  %v2331_v57 = vadd.f32 %v7666_v41, %v7808_v23  ;;  %6013 = vst [vmem:[%s7135_s20 + $0x390] sm:$0xff] %v5833_v62   ;;  %vm2518_vm2 = vcmp.gt.f32.partialorder %v1808_v17, 0.0  ;;  %v2774_v20 = vmul.f32 0.2, %v1808_v17  ;;  %v7921_v53 = vpop.f32.mrf.mxu1  ;;  %v7947_v62 = vpop.f32.mrf.mxu0 }
 0x21a   : > { %v3160_v60 = vsel %vm2648_vm1, %v2328_v50, %v2904_v35  ;;  %v1811_v40 = vadd.f32 %v7666_v41, %v7811_v5  ;;  %vm2646_vm3 = vcmp.gt.f32.partialorder %v2320_v13, 0.0  ;;  %v2902_v34 = vmul.f32 0.2, %v2320_v13 }
 0x21b   : > { %vm2521_vm4 = vcmp.gt.f32.partialorder %v1819_v55, 0.0  ;;  %v2777_v9 = vmul.f32 0.2, %v1819_v55  ;;  %v3030_v14 = vsel %vm2518_vm2, %v1808_v17, %v2774_v20  ;;  %vm2649_vm5 = vcmp.gt.f32.partialorder %v2331_v57, 0.0  ;;  %v7936_v58 = vpop.f32.mrf.mxu1 }
 0x21c   : > { %v2905_v61 = vmul.f32 0.2, %v2331_v57  ;;  %vm2519_vm6 = vcmp.gt.f32.partialorder %v1811_v40, 0.0  ;;  %v3158_v23 = vsel %vm2646_vm3, %v2320_v13, %v2902_v34  ;;  %v2775_v6 = vmul.f32 0.2, %v1811_v40  ;;  %v7957_v34 = vpop.f32.mrf.mxu0 }
 0x21d   : > { %v3033_v54 = vsel %vm2521_vm4, %v1819_v55, %v2777_v9  ;;  %v2323_v16 = vadd.f32 %v7666_v41, %v7817_v27  ;;  %v1832_v4 = vadd.f32 %v7666_v41, %v7823_v38  ;;  %v2344_v43 = vadd.f32 %v7666_v41, %v7825_v19  ;;  %v7949_v35 = vpop.f32.mrf.mxu1 }
 0x21e   : > { %v5528_v5 = vpack.c.bf16 %v3033_v54, %v3032_v63  ;;  %v3161_v1 = vsel %vm2649_vm5, %v2331_v57, %v2905_v61  ;;  %v3031_v52 = vsel %vm2519_vm6, %v1811_v40, %v2775_v6  ;;  %v1824_v19 = vadd.f32 %v7666_v41, %v7827_v2 }
 0x21f   : > { %v5848_v15 = vpack.c.bf16 %v3161_v1, %v3160_v60  ;;  %vm2647_vm7 = vcmp.gt.f32.partialorder %v2323_v16, 0.0  ;;  %v2903_v26 = vmul.f32 0.2, %v2323_v16  ;;  %v5523_v27 = vpack.c.bf16 %v3031_v52, %v3030_v14  ;;  %v7959_v9 = vpop.f32.mrf.mxu1 }
 0x220   : > { %5952 = vst [vmem:[%s7135_s20 + $0x1a8] sm:$0xff] %v5528_v5   ;;  %vm2524_vm8 = vcmp.gt.f32.partialorder %v1832_v4, 0.0  ;;  %v2780_v32 = vmul.f32 0.2, %v1832_v4  ;;  %vm2652_vm9 = vcmp.gt.f32.partialorder %v2344_v43, 0.0  ;;  %v2336_v28 = vadd.f32 %v7666_v41, %v7830_v10 }
 0x221   : > { %6016 = vst [vmem:[%s7135_s20 + $0x3a8] sm:$0xff] %v5848_v15   ;;  %v3159_v38 = vsel %vm2647_vm7, %v2323_v16, %v2903_v26  ;;  %v2908_v30 = vmul.f32 0.2, %v2344_v43  ;;  %5951 = vst [vmem:[%s7135_s20 + $0x1a0] sm:$0xff] %v5523_v27   ;;  %v1835_v36 = vadd.f32 %v7666_v41, %v7837_v12  ;;  %v2347_v42 = vadd.f32 %v7666_v41, %v7841_v0  ;;  %v7973_v15 = vpop.f32.mrf.mxu0  ;;  %v7975_v52 = vpop.f32.mrf.mxu1 }
 0x222   : > { %v5843_v51 = vpack.c.bf16 %v3159_v38, %v3158_v23  ;;  %v3036_v39 = vsel %vm2524_vm8, %v1832_v4, %v2780_v32  ;;  %vm2522_vm10 = vcmp.gt.f32.partialorder %v1824_v19, 0.0  ;;  %v2778_v59 = vmul.f32 0.2, %v1824_v19 }
 0x223   : > { %v3164_v21 = vsel %vm2652_vm9, %v2344_v43, %v2908_v30  ;;  %vm2650_vm11 = vcmp.gt.f32.partialorder %v2336_v28, 0.0  ;;  %v2906_v2 = vmul.f32 0.2, %v2336_v28  ;;  %vm2525_vm12 = vcmp.gt.f32.partialorder %v1835_v36, 0.0 }
 0x224   : > { %6015 = vst [vmem:[%s7135_s20 + $0x3a0] sm:$0xff] %v5843_v51   ;;  %v2781_v10 = vmul.f32 0.2, %v1835_v36  ;;  %vm2653_vm13 = vcmp.gt.f32.partialorder %v2347_v42, 0.0  ;;  %v3034_v45 = vsel %vm2522_vm10, %v1824_v19, %v2778_v59  ;;  %v2909_v25 = vmul.f32 0.2, %v2347_v42 }
 0x225   : > { %v1827_v12 = vadd.f32 %v7666_v41, %v7844_v24  ;;  %v2339_v0 = vadd.f32 %v7666_v41, %v7851_v18  ;;  %v3162_v50 = vsel %vm2650_vm11, %v2336_v28, %v2906_v2  ;;  %v1848_v22 = vadd.f32 %v7666_v41, %v7857_v48 }
 0x226   : > { %v3037_v47 = vsel %vm2525_vm12, %v1835_v36, %v2781_v10  ;;  %v2360_v31 = vadd.f32 %v7666_v41, %v7859_v8  ;;  %v3165_v63 = vsel %vm2653_vm13, %v2347_v42, %v2909_v25  ;;  %v1840_v20 = vadd.f32 %v7666_v41, %v7866_v46  ;;  %v6430_v36 = vpop.f32.mrf.mxu1 }
 0x227   : > { %v5538_v17 = vpack.c.bf16 %v3037_v47, %v3036_v39  ;;  %vm2523_vm14 = vcmp.gt.f32.partialorder %v1827_v12, 0.0  ;;  %v2779_v24 = vmul.f32 0.2, %v1827_v12  ;;  %v5858_v13 = vpack.c.bf16 %v3165_v63, %v3164_v21  ;;  %v6302_v39 = vpop.f32.mrf.mxu0 }
 0x228   : > { %vm2651_vm15 = vcmp.gt.f32.partialorder %v2339_v0, 0.0  ;;  %v2907_v18 = vmul.f32 0.2, %v2339_v0  ;;  %vm2528_vm0 = vcmp.gt.f32.partialorder %v1848_v22, 0.0  ;;  %v2784_v48 = vmul.f32 0.2, %v1848_v22 }
 0x229   : > { %5954 = vst [vmem:[%s7135_s20 + $0x1b8] sm:$0xff] %v5538_v17   ;;  %v3035_v55 = vsel %vm2523_vm14, %v1827_v12, %v2779_v24  ;;  %vm2656_vm1 = vcmp.gt.f32.partialorder %v2360_v31, 0.0  ;;  %v2912_v57 = vmul.f32 0.2, %v2360_v31  ;;  %6018 = vst [vmem:[%s7135_s20 + $0x3b8] sm:$0xff] %v5858_v13   ;;  %v2352_v40 = vadd.f32 %v7666_v41, %v7868_v7 }
 0x22a   : > { %v5533_v8 = vpack.c.bf16 %v3035_v55, %v3034_v45  ;;  %v3163_v60 = vsel %vm2651_vm15, %v2339_v0, %v2907_v18  ;;  %v3040_v61 = vsel %vm2528_vm0, %v1848_v22, %v2784_v48  ;;  %v1851_v54 = vadd.f32 %v7666_v41, %v7883_v44  ;;  %v1874_v22 = vpop.f32.mrf.mxu0 }
 0x22b   : > { %v5853_v14 = vpack.c.bf16 %v3163_v60, %v3162_v50  ;;  %v3168_v23 = vsel %vm2656_vm1, %v2360_v31, %v2912_v57  ;;  %vm2526_vm2 = vcmp.gt.f32.partialorder %v1840_v20, 0.0  ;;  %v2782_v6 = vmul.f32 0.2, %v1840_v20 }
 0x22c   : > { %5953 = vst [vmem:[%s7135_s20 + $0x1b0] sm:$0xff] %v5533_v8   ;;  %vm2654_vm3 = vcmp.gt.f32.partialorder %v2352_v40, 0.0  ;;  %v2910_v16 = vmul.f32 0.2, %v2352_v40  ;;  %vm2529_vm4 = vcmp.gt.f32.partialorder %v1851_v54, 0.0  ;;  %v2363_v7 = vadd.f32 %v7666_v41, %v7885_v11  ;;  %v6305_v57 = vpop.f32.mrf.mxu0 }
 0x22d   : > { %6017 = vst [vmem:[%s7135_s20 + $0x3b0] sm:$0xff] %v5853_v14   ;;  %v2785_v46 = vmul.f32 0.2, %v1851_v54  ;;  %v1843_v5 = vadd.f32 %v7666_v41, %v7891_v33  ;;  %v3038_v1 = vsel %vm2526_vm2, %v1840_v20, %v2782_v6  ;;  %v2355_v43 = vadd.f32 %v7666_v41, %v7893_v3 }
 0x22e   : > { %v3166_v4 = vsel %vm2654_vm3, %v2352_v40, %v2910_v16  ;;  %v1864_v44 = vadd.f32 %v7666_v41, %v7909_v56  ;;  %vm2657_vm5 = vcmp.gt.f32.partialorder %v2363_v7, 0.0  ;;  %v2913_v27 = vmul.f32 0.2, %v2363_v7 }
 0x22f   : > { %v3041_v26 = vsel %vm2529_vm4, %v1851_v54, %v2785_v46  ;;  %vm2527_vm6 = vcmp.gt.f32.partialorder %v1843_v5, 0.0  ;;  %v2783_v32 = vmul.f32 0.2, %v1843_v5  ;;  %vm2655_vm7 = vcmp.gt.f32.partialorder %v2355_v43, 0.0 }
 0x230   : > { %v5548_v11 = vpack.c.bf16 %v3041_v26, %v3040_v61  ;;  %v2911_v33 = vmul.f32 0.2, %v2355_v43  ;;  %v3169_v38 = vsel %vm2657_vm5, %v2363_v7, %v2913_v27  ;;  %vm2532_vm8 = vcmp.gt.f32.partialorder %v1864_v44, 0.0  ;;  %v1887_v7 = vpop.f32.mrf.mxu0 }
 0x231   : > { %v2788_v3 = vmul.f32 0.2, %v1864_v44  ;;  %v2376_v30 = vadd.f32 %v7666_v41, %v7911_v29  ;;  %v5868_v56 = vpack.c.bf16 %v3169_v38, %v3168_v23  ;;  %v3039_v19 = vsel %vm2527_vm6, %v1843_v5, %v2783_v32 }
 0x232   : > { %5956 = vst [vmem:[%s7135_s20 + $0x1c8] sm:$0xff] %v5548_v11   ;;  %v3167_v28 = vsel %vm2655_vm7, %v2355_v43, %v2911_v33  ;;  %v1856_v51 = vadd.f32 %v7666_v41, %v7919_v37  ;;  %v5543_v42 = vpack.c.bf16 %v3039_v19, %v3038_v1  ;;  %v2368_v29 = vadd.f32 %v7666_v41, %v7921_v53  ;;  %v2386_v53 = vpop.f32.mrf.mxu1  ;;  %v6676_v33 = vld [vmem:[#allocation7] ss:$0 sm:$0xff] }
 0x233   : > { %v5863_v21 = vpack.c.bf16 %v3167_v28, %v3166_v4  ;;  %v3044_v59 = vsel %vm2532_vm8, %v1864_v44, %v2788_v3  ;;  %vm2660_vm9 = vcmp.gt.f32.partialorder %v2376_v30, 0.0  ;;  %6020 = vst [vmem:[%s7135_s20 + $0x3c8] sm:$0xff] %v5868_v56   ;;  %v2916_v2 = vmul.f32 0.2, %v2376_v30 }
 0x234   : > { %vm2530_vm10 = vcmp.gt.f32.partialorder %v1856_v51, 0.0  ;;  %v2786_v10 = vmul.f32 0.2, %v1856_v51  ;;  %5955 = vst [vmem:[%s7135_s20 + $0x1c0] sm:$0xff] %v5543_v42   ;;  %v1867_v45 = vadd.f32 %v7666_v41, %v7934_v49  ;;  %v2379_v37 = vadd.f32 %v7666_v41, %v7936_v58  ;;  %v6433_v8 = vpop.f32.mrf.mxu1 }
 0x235   : > { %6019 = vst [vmem:[%s7135_s20 + $0x3c0] sm:$0xff] %v5863_v21   ;;  %v1859_v25 = vadd.f32 %v7666_v41, %v7947_v62  ;;  %v2371_v12 = vadd.f32 %v7666_v41, %v7949_v35  ;;  %v3172_v0 = vsel %vm2660_vm9, %v2376_v30, %v2916_v2  ;;  %vm2658_vm11 = vcmp.gt.f32.partialorder %v2368_v29, 0.0  ;;  %v6306_v30 = vpop.f32.mrf.mxu0 }
 0x236   : > { %v3042_v50 = vsel %vm2530_vm10, %v1856_v51, %v2786_v10  ;;  %v2914_v47 = vmul.f32 0.2, %v2368_v29  ;;  %vm2533_vm12 = vcmp.gt.f32.partialorder %v1867_v45, 0.0  ;;  %v2789_v31 = vmul.f32 0.2, %v1867_v45  ;;  %v2399_v5 = vpop.f32.mrf.mxu1 }
 0x237   : > { %vm2661_vm13 = vcmp.gt.f32.partialorder %v2379_v37, 0.0  ;;  %v2917_v17 = vmul.f32 0.2, %v2379_v37  ;;  %vm2531_vm14 = vcmp.gt.f32.partialorder %v1859_v25, 0.0  ;;  %v2787_v63 = vmul.f32 0.2, %v1859_v25 }
 0x238   : > { %v3170_v49 = vsel %vm2658_vm11, %v2368_v29, %v2914_v47  ;;  %vm2659_vm15 = vcmp.gt.f32.partialorder %v2371_v12, 0.0  ;;  %v3045_v58 = vsel %vm2533_vm12, %v1867_v45, %v2789_v31  ;;  %v2915_v24 = vmul.f32 0.2, %v2371_v12  ;;  %v6434_v56 = vpop.f32.mrf.mxu1 }
 0x239   : > { %v3173_v62 = vsel %vm2661_vm13, %v2379_v37, %v2917_v17  ;;  %v1880_v35 = vadd.f32 %v7666_v41, %v7957_v34  ;;  %v5558_v13 = vpack.c.bf16 %v3045_v58, %v3044_v59  ;;  %v3043_v55 = vsel %vm2531_vm14, %v1859_v25, %v2787_v63  ;;  %v1890_v37 = vpop.f32.mrf.mxu0 }
 0x23a   : > { %v5878_v18 = vpack.c.bf16 %v3173_v62, %v3172_v0  ;;  %v2392_v48 = vadd.f32 %v7666_v41, %v7959_v9  ;;  %v5553_v60 = vpack.c.bf16 %v3043_v55, %v3042_v50  ;;  %v3171_v20 = vsel %vm2659_vm15, %v2371_v12, %v2915_v24  ;;  %v2402_v25 = vpop.f32.mrf.mxu1 }
 0x23b   : > { %vm2536_vm0 = vcmp.gt.f32.partialorder %v1880_v35, 0.0  ;;  %v2792_v40 = vmul.f32 0.2, %v1880_v35  ;;  %5958 = vst [vmem:[%s7135_s20 + $0x1d8] sm:$0xff] %v5558_v13   ;;  %v5873_v14 = vpack.c.bf16 %v3171_v20, %v3170_v49  ;;  %v1872_v34 = vadd.f32 %v7666_v41, %v7973_v15 }
 0x23c   : > { %6022 = vst [vmem:[%s7135_s20 + $0x3d8] sm:$0xff] %v5878_v18   ;;  %vm2664_vm1 = vcmp.gt.f32.partialorder %v2392_v48, 0.0  ;;  %v2920_v61 = vmul.f32 0.2, %v2392_v48  ;;  %5957 = vst [vmem:[%s7135_s20 + $0x1d0] sm:$0xff] %v5553_v60   ;;  %v2384_v23 = vadd.f32 %v7666_v41, %v7975_v52  ;;  %v1883_v9 = vadd.f32 %v7666_v41, %v6302_v39 }
 0x23d   : > { %v2395_v54 = vadd.f32 %v7666_v41, %v6430_v36  ;;  %6021 = vst [vmem:[%s7135_s20 + $0x3d0] sm:$0xff] %v5873_v14   ;;  %v3048_v6 = vsel %vm2536_vm0, %v1880_v35, %v2792_v40  ;;  %vm2534_vm2 = vcmp.gt.f32.partialorder %v1872_v34, 0.0  ;;  %v2790_v16 = vmul.f32 0.2, %v1872_v34 }
 0x23e   : > { %v1875_v46 = vadd.f32 %v7666_v41, %v1874_v22  ;;  %v3176_v1 = vsel %vm2664_vm1, %v2392_v48, %v2920_v61  ;;  %vm2662_vm3 = vcmp.gt.f32.partialorder %v2384_v23, 0.0  ;;  %vm2537_vm4 = vcmp.gt.f32.partialorder %v1883_v9, 0.0 }
 0x23f   : > { %v2793_v4 = vmul.f32 0.2, %v1883_v9  ;;  %v2918_v43 = vmul.f32 0.2, %v2384_v23  ;;  %vm2665_vm5 = vcmp.gt.f32.partialorder %v2395_v54, 0.0  ;;  %v3046_v15 = vsel %vm2534_vm2, %v1872_v34, %v2790_v16 }
 0x240   : > { %v2921_v44 = vmul.f32 0.2, %v2395_v54  ;;  %vm2535_vm6 = vcmp.gt.f32.partialorder %v1875_v46, 0.0  ;;  %v2791_v26 = vmul.f32 0.2, %v1875_v46  ;;  %v2387_v27 = vadd.f32 %v7666_v41, %v2386_v53 }
 0x241   : > { %v3049_v52 = vsel %vm2537_vm4, %v1883_v9, %v2793_v4  ;;  %v1896_v38 = vadd.f32 %v6676_v33, %v6305_v57  ;;  %v2408_v3 = vadd.f32 %v6676_v33, %v6433_v8  ;;  %v3174_v39 = vsel %vm2662_vm3, %v2384_v23, %v2918_v43 }
 0x242   : > { %v5568_v11 = vpack.c.bf16 %v3049_v52, %v3048_v6  ;;  %v3177_v32 = vsel %vm2665_vm5, %v2395_v54, %v2921_v44  ;;  %v3047_v28 = vsel %vm2535_vm6, %v1875_v46, %v2791_v26  ;;  %vm2663_vm7 = vcmp.gt.f32.partialorder %v2387_v27, 0.0 }
 0x243   : > { %v5888_v19 = vpack.c.bf16 %v3177_v32, %v3176_v1  ;;  %v2919_v51 = vmul.f32 0.2, %v2387_v27  ;;  %v5563_v36 = vpack.c.bf16 %v3047_v28, %v3046_v15  ;;  %vm2540_vm8 = vcmp.gt.f32.partialorder %v1896_v38, 0.0 }
 0x244   : > { %5960 = vst [vmem:[%s7135_s20 + $0x1e8] sm:$0xff] %v5568_v11   ;;  %v2796_v41 = vmul.f32 0.2, %v1896_v38  ;;  %vm2668_vm9 = vcmp.gt.f32.partialorder %v2408_v3, 0.0  ;;  %v2924_v21 = vmul.f32 0.2, %v2408_v3  ;;  %v1888_v59 = vadd.f32 %v6676_v33, %v1887_v7 }
 0x245   : > { %6024 = vst [vmem:[%s7135_s20 + $0x3e8] sm:$0xff] %v5888_v19   ;;  %v3175_v42 = vsel %vm2663_vm7, %v2387_v27, %v2919_v51  ;;  %5959 = vst [vmem:[%s7135_s20 + $0x1e0] sm:$0xff] %v5563_v36   ;;  %v2400_v10 = vadd.f32 %v6676_v33, %v2399_v5  ;;  %v1899_v29 = vadd.f32 %v6676_v33, %v6306_v30 }
 0x246   : > { %v5883_v2 = vpack.c.bf16 %v3175_v42, %v3174_v39  ;;  %v2411_v45 = vadd.f32 %v6676_v33, %v6434_v56  ;;  %v3052_v12 = vsel %vm2540_vm8, %v1896_v38, %v2796_v41  ;;  %v3180_v0 = vsel %vm2668_vm9, %v2408_v3, %v2924_v21 }
 0x247   : > { %vm2541_vm10 = vcmp.gt.f32.partialorder %v1899_v29, 0.0  ;;  %v2797_v50 = vmul.f32 0.2, %v1899_v29  ;;  %v2794_v47 = vmul.f32 0.2, %v1888_v59  ;;  %v1891_v53 = vadd.f32 %v6676_v33, %v1890_v37 }
 0x248   : > { %6023 = vst [vmem:[%s7135_s20 + $0x3e0] sm:$0xff] %v5883_v2   ;;  %vm2669_vm11 = vcmp.gt.f32.partialorder %v2411_v45, 0.0  ;;  %v2925_v22 = vmul.f32 0.2, %v2411_v45  ;;  %v2403_v31 = vadd.f32 %v6676_v33, %v2402_v25  ;;  %vm2538_vm12 = vcmp.gt.f32.partialorder %v1888_v59, 0.0 }
 0x249   : > { %vm2666_vm13 = vcmp.gt.f32.partialorder %v2400_v10, 0.0  ;;  %v2922_v17 = vmul.f32 0.2, %v2400_v10  ;;  %v3053_v49 = vsel %vm2541_vm10, %v1899_v29, %v2797_v50  ;;  %vm2539_vm14 = vcmp.gt.f32.partialorder %v1891_v53, 0.0 }
 0x24a   : > { %v5578_v63 = vpack.c.bf16 %v3053_v49, %v3052_v12  ;;  %v3181_v58 = vsel %vm2669_vm11, %v2411_v45, %v2925_v22  ;;  %v2795_v62 = vmul.f32 0.2, %v1891_v53  ;;  %vm2667_vm15 = vcmp.gt.f32.partialorder %v2403_v31, 0.0 }
 0x24b   : > { %v5898_v24 = vpack.c.bf16 %v3181_v58, %v3180_v0  ;;  %v2923_v35 = vmul.f32 0.2, %v2403_v31  ;;  %v3050_v13 = vsel %vm2538_vm12, %v1888_v59, %v2794_v47  ;;  %v3178_v55 = vsel %vm2666_vm13, %v2400_v10, %v2922_v17 }
 0x24c   : > { %5962 = vst [vmem:[%s7135_s20 + $0x1f8] sm:$0xff] %v5578_v63   ;;  %v3051_v18 = vsel %vm2539_vm14, %v1891_v53, %v2795_v62 }
 0x24d   : > { %6026 = vst [vmem:[%s7135_s20 + $0x3f8] sm:$0xff] %v5898_v24   ;;  %v5573_v48 = vpack.c.bf16 %v3051_v18, %v3050_v13  ;;  %v3179_v57 = vsel %vm2667_vm15, %v2403_v31, %v2923_v35 }
 0x24e   : > { %v5893_v8 = vpack.c.bf16 %v3179_v57, %v3178_v55 }
 0x24f   : > { %5961 = vst [vmem:[%s7135_s20 + $0x1f0] sm:$0xff] %v5573_v48  }
 0x250   : > { %6025 = vst [vmem:[%s7135_s20 + $0x3f0] sm:$0xff] %v5893_v8  }
 0x251   : > { %6770 = shalt.err (!%p6767_p2)
}
 0x252   : > { %s6771_s19 = scalar_lea.hbm %s8023_s9, 16384  ;;  %s6775_s4 = scalar_lea.hbm %s8077_s3, 131072 }
 0x253   : > { %p6772_p9 = scmp.ne.s32.totalorder %s8023_s9, %s6771_s19  ;;  %p6776_p13 = scmp.lt.s32.totalorder %s8023_s9, %s8077_s3 }
 0x254   : > { %p6777_p7 = scmp.lt.s32.totalorder %s6775_s4, %s6771_s19 }
 0x255   : > { %p6773_p11 = pnand %p6772_p9, %p6968_p5 }
 0x256   : > { %p6778_p3 = por %p6777_p7, %p6776_p13 }
 0x257   : > { %p6774_p12 = pneg %p6773_p11 }
 0x259   : > { %p6779_p1 = pnand %p6778_p3, %p6774_p12 }
 0x25b   : > { %6782 = shalt.err (!%p6779_p1)
}
 0x25c   : > { %s6849_s20 = smov 64   ;;  %s6850_s22 = smov 4  }
 0x25d   : > { %6461 = dma.vmem_to_hbm [thread:$0]  (%p6968_p5), %s8025_s24, 16384, %s8023_s9, %s4463_s15, %s6849_s20, %s6849_s20, %s6850_s22  }
 0x25e PF: > { %p6483_p4 = scmp.ge.s32.totalorder %s6841_s17, 2  ;;  %s4492_s5 = sand.u32 1, %s6821_s12  }
 0x25f   : > { %p8088_p6 = scmp.ne.s32.totalorder %s8082_s23, 0  ;;  %s4493_s8 = scalar_lea.sflag [#allocation4], %s4492_s5 }
 0x261   : > { %p6475_p8 = pnand %p6483_p4, %p8088_p6 }
 0x263   : > { %p6476_p0 = pneg %p6475_p8 }
 0x265   : > { %6816 = dma.done.wait (%p6476_p0), %s4493_s8, 16384  }
 0x266   : > { %6818 = vsyncadd (%p6476_p0), %s4493_s8, 4294950912  ;;  %s20_s17 = sadd.s32 1, %s6841_s17   ;;  %s8089_s12 = smov %s6825_s13 }
 0x267   : > { %p17_p10 = scmp.ge.s32.totalorder %s20_s17, 10   ;;  %s8090_s13 = smov %s6829_s14 }
 0x268   : > { %s8091_s14 = smov %s6977_s30  ;;  %s8092_s15 = smov %s6837_s16 }
 0x269   : > { %s8093_s16 = smov %s8095_s18  ;;  %19 = sbr.rel (!%p17_p10) target bundleno = 7 (0x7), region = 87 }
 0x26e   :  { %4498 = vsyncpa [#allocation3], 1 }
 0x26f   :  { %4500 = vsyncpa [#allocation3 + $0x1], 1 }
 0x270   :  { %4501 = vsyncpa [#allocation6], 1 }
 0x271   :  { %4502 = vsyncpa [#allocation4], 1 }
 0x272   :  { %4504 = vsyncpa [#allocation4 + $0x1], 1 }

</bundles_post_ra>
